<compile_context>
chip_gen: v6e
topology: v6e:2x2x1
jax: 0.10.0
libtpu: 0.0.40
codegen_flags: <defaults>
</compile_context>

<pallas_src>
import jax
import jax.numpy as jnp
from jax.experimental import pallas as pl
from jax.experimental.pallas import tpu as pltpu

N_HIDDEN = 1024
N_OUT = 10
N_OUT_PAD = 128  # lane-dense padded output width


def mlp_kernel(x_ref, w1_ref, b1_ref, w2_ref, b2_ref, w3_ref, b3_ref, o_ref):
    # Dropout is identity in eval mode.
    # Layer 1: Linear(in_features, 1024) + ReLU   (bf16 matmul, f32 accumulate)
    h1 = jnp.dot(x_ref[...], w1_ref[...], preferred_element_type=jnp.float32)
    h1 = jnp.maximum(h1 + b1_ref[...], 0.0)
    # Layer 2: Linear(1024, 1024) + ReLU
    h2 = jnp.dot(h1.astype(jnp.bfloat16), w2_ref[...],
                 preferred_element_type=jnp.float32)
    h2 = jnp.maximum(h2 + b2_ref[...], 0.0)
    # Layer 3: Linear(1024, 10), padded to 128 lanes for unmasked stores
    out = jnp.dot(h2.astype(jnp.bfloat16), w3_ref[...],
                  preferred_element_type=jnp.float32)
    o_ref[...] = (out + b3_ref[...]).astype(o_ref.dtype)


def _round_up(v, m):
    return ((v + m - 1) // m) * m


def _pick_batch_tile(B, tile_b):
    if B >= 2 * tile_b:
        return tile_b                      # big batch: max-size tiles
    if B > 16:
        # Split into >=2 tiles (keeps both v7x TensorCores busy) and round to
        # the bf16 sublane pack (16) so vregs stay fully packed.
        return min(tile_b, _round_up(pl.cdiv(B, 2), 16))
    # Tiny batch: single full-extent block (block dim == array dim is exempt
    # from the sublane-multiple rule) -> no padding, grid of 1.
    return B


def mlp_forward(x, params, *, tile_b=512):
    """x: (B, C, H, W).  Returns logits (B, 10) in float32."""
    w1, b1, w2, b2, w3p, b3p = params  # w*: bf16, b*: f32, w3p/b3p padded->128
    B = x.shape[0]
    x_flat = x.reshape(B, -1).astype(jnp.bfloat16)  # torch.flatten(x, 1)
    in_features = x_flat.shape[1]

    tb = _pick_batch_tile(B, tile_b)
    grid = (pl.cdiv(B, tb),)   # last block may be partial; Pallas masks it

    out = pl.pallas_call(
        mlp_kernel,
        out_shape=jax.ShapeDtypeStruct((B, N_OUT_PAD), jnp.float32),
        grid=grid,
        in_specs=[
            pl.BlockSpec((tb, in_features), lambda i: (i, 0)),   # x tile
            pl.BlockSpec(w1.shape, lambda i: (0, 0)),            # resident
            pl.BlockSpec(b1.shape, lambda i: (0, 0)),
            pl.BlockSpec(w2.shape, lambda i: (0, 0)),
            pl.BlockSpec(b2.shape, lambda i: (0, 0)),
            pl.BlockSpec(w3p.shape, lambda i: (0, 0)),
            pl.BlockSpec(b3p.shape, lambda i: (0, 0)),
        ],
        out_specs=pl.BlockSpec((tb, N_OUT_PAD), lambda i: (i, 0)),
        compiler_params=pltpu.CompilerParams(
            dimension_semantics=("parallel",),   # shard tiles across v7x TCs
            vmem_limit_bytes=32 << 20,
        ),
    )(x_flat, w1, b1, w2, b2, w3p, b3p)
    return out[:, :N_OUT]


def init_params(key, in_features, n_hidden=N_HIDDEN, n_out=N_OUT):
    """Deterministic uniform init mimicking nn.Linear default scaling.

    Weights are stored bf16 (halves HBM traffic / VMEM, doubles MXU rate);
    biases stay f32.  The last layer is padded to N_OUT_PAD lanes with zeros.
    """
    ks = jax.random.split(key, 6)

    def linear(kw, kb, fan_in, fan_out):
        bound = 1.0 / jnp.sqrt(jnp.float32(fan_in))
        w = jax.random.uniform(kw, (fan_in, fan_out), jnp.float32, -bound, bound)
        b = jax.random.uniform(kb, (1, fan_out), jnp.float32, -bound, bound)
        return w, b

    w1, b1 = linear(ks[0], ks[1], in_features, n_hidden)
    w2, b2 = linear(ks[2], ks[3], n_hidden, n_hidden)
    w3, b3 = linear(ks[4], ks[5], n_hidden, n_out)

    # Pad last layer to a lane-dense 128-wide output.
    w3p = jnp.pad(w3, ((0, 0), (0, N_OUT_PAD - n_out)))
    b3p = jnp.pad(b3, ((0, 0), (0, N_OUT_PAD - n_out)))

    return (
        w1.astype(jnp.bfloat16), b1,
        w2.astype(jnp.bfloat16), b2,
        w3p.astype(jnp.bfloat16), b3p,
    )


if __name__ == "__main__":
    key = jax.random.PRNGKey(0)
    k_x, k_p = jax.random.split(key)

    # Small NCHW input: batch=2, channels=4, spatial=16x16 -> in_features=1024
    B, C, H, W = 2, 4, 16, 16
    in_features = C * H * W
    x = jax.random.normal(k_x, (B, C, H, W), jnp.float32)

    params = init_params(k_p, in_features)

    y = mlp_forward(x, params)
    y = jax.block_until_ready(y)

    # Reference in plain JAX (dropout = identity in eval mode), same bf16
    # weights / f32 accumulation as the kernel.
    w1, b1, w2, b2, w3p, b3p = params
    xf = x.reshape(B, -1).astype(jnp.bfloat16)
    h1 = jnp.maximum(
        jnp.dot(xf, w1, preferred_element_type=jnp.float32) + b1, 0.0)
    h2 = jnp.maximum(
        jnp.dot(h1.astype(jnp.bfloat16), w2,
                preferred_element_type=jnp.float32) + b2, 0.0)
    ref = (jnp.dot(h2.astype(jnp.bfloat16), w3p,
                   preferred_element_type=jnp.float32) + b3p)[:, :N_OUT]

    assert y.shape == (B, N_OUT)
    assert jnp.allclose(y, ref, atol=1e-2, rtol=1e-2), (
        float(jnp.max(jnp.abs(y - ref))))

    print("KERNEL_OK")
</pallas_src>

<mosaic_0001>
module attributes {stable_mosaic.version = 11 : i64} {
  func.func @mlp_kernel(%arg0: i32, %arg1: memref<2x1024xbf16, #tpu.memory_space<vmem>>, %arg2: memref<1024x1024xbf16, #tpu.memory_space<vmem>>, %arg3: memref<1x1024xf32, #tpu.memory_space<vmem>>, %arg4: memref<1024x1024xbf16, #tpu.memory_space<vmem>>, %arg5: memref<1x1024xf32, #tpu.memory_space<vmem>>, %arg6: memref<1024x128xbf16, #tpu.memory_space<vmem>>, %arg7: memref<1x128xf32, #tpu.memory_space<vmem>>, %arg8: memref<2x128xf32, #tpu.memory_space<vmem>>) attributes {dimension_semantics = [#tpu.dimension_semantics<parallel>], iteration_bounds = array<i64: 1>, scalar_prefetch = 0 : i64, scratch_operands = 0 : i64, tpu.core_type = #tpu.core_type<tc>, window_params = [{transform_indices = @transform_0, window_bounds = array<i64: 2, 1024>}, {pipeline_mode = #tpu.pipeline_mode<synchronous>, transform_indices = @transform_1, window_bounds = array<i64: 1024, 1024>}, {pipeline_mode = #tpu.pipeline_mode<synchronous>, transform_indices = @transform_2, window_bounds = array<i64: 1, 1024>}, {pipeline_mode = #tpu.pipeline_mode<synchronous>, transform_indices = @transform_3, window_bounds = array<i64: 1024, 1024>}, {pipeline_mode = #tpu.pipeline_mode<synchronous>, transform_indices = @transform_4, window_bounds = array<i64: 1, 1024>}, {pipeline_mode = #tpu.pipeline_mode<synchronous>, transform_indices = @transform_5, window_bounds = array<i64: 1024, 128>}, {pipeline_mode = #tpu.pipeline_mode<synchronous>, transform_indices = @transform_6, window_bounds = array<i64: 1, 128>}, {transform_indices = @transform_7, window_bounds = array<i64: 2, 128>}]} {
    %c0 = arith.constant 0 : index
    %c0_0 = arith.constant 0 : index
    %0 = vector.load %arg1[%c0, %c0_0] : memref<2x1024xbf16, #tpu.memory_space<vmem>>, vector<2x1024xbf16>
    %c0_1 = arith.constant 0 : index
    %c0_2 = arith.constant 0 : index
    %1 = vector.load %arg2[%c0_1, %c0_2] : memref<1024x1024xbf16, #tpu.memory_space<vmem>>, vector<1024x1024xbf16>
    %cst = arith.constant dense<0.000000e+00> : vector<2x1024xf32>
    %2 = tpu.matmul %0, %1, %cst {dimension_numbers = #tpu.dot_dimension_numbers<[1], [0], [0], [1], [0, 0, 1, 1], [], []>} : vector<2x1024xbf16>, vector<1024x1024xbf16>, vector<2x1024xf32> -> vector<2x1024xf32>
    %c0_3 = arith.constant 0 : index
    %c0_4 = arith.constant 0 : index
    %3 = vector.load %arg3[%c0_3, %c0_4] : memref<1x1024xf32, #tpu.memory_space<vmem>>, vector<1x1024xf32>
    %4 = vector.broadcast %3 : vector<1x1024xf32> to vector<2x1024xf32>
    %5 = arith.addf %2, %4 : vector<2x1024xf32>
    %cst_5 = arith.constant 0.000000e+00 : f32
    %6 = vector.broadcast %cst_5 : f32 to vector<2x1024xf32>
    %7 = arith.maximumf %5, %6 : vector<2x1024xf32>
    %8 = arith.truncf %7 : vector<2x1024xf32> to vector<2x1024xbf16>
    %c0_6 = arith.constant 0 : index
    %c0_7 = arith.constant 0 : index
    %9 = vector.load %arg4[%c0_6, %c0_7] : memref<1024x1024xbf16, #tpu.memory_space<vmem>>, vector<1024x1024xbf16>
    %cst_8 = arith.constant dense<0.000000e+00> : vector<2x1024xf32>
    %10 = tpu.matmul %8, %9, %cst_8 {dimension_numbers = #tpu.dot_dimension_numbers<[1], [0], [0], [1], [0, 0, 1, 1], [], []>} : vector<2x1024xbf16>, vector<1024x1024xbf16>, vector<2x1024xf32> -> vector<2x1024xf32>
    %c0_9 = arith.constant 0 : index
    %c0_10 = arith.constant 0 : index
    %11 = vector.load %arg5[%c0_9, %c0_10] : memref<1x1024xf32, #tpu.memory_space<vmem>>, vector<1x1024xf32>
    %12 = vector.broadcast %11 : vector<1x1024xf32> to vector<2x1024xf32>
    %13 = arith.addf %10, %12 : vector<2x1024xf32>
    %cst_11 = arith.constant 0.000000e+00 : f32
    %14 = vector.broadcast %cst_11 : f32 to vector<2x1024xf32>
    %15 = arith.maximumf %13, %14 : vector<2x1024xf32>
    %16 = arith.truncf %15 : vector<2x1024xf32> to vector<2x1024xbf16>
    %c0_12 = arith.constant 0 : index
    %c0_13 = arith.constant 0 : index
    %17 = vector.load %arg6[%c0_12, %c0_13] : memref<1024x128xbf16, #tpu.memory_space<vmem>>, vector<1024x128xbf16>
    %cst_14 = arith.constant dense<0.000000e+00> : vector<2x128xf32>
    %18 = tpu.matmul %16, %17, %cst_14 {dimension_numbers = #tpu.dot_dimension_numbers<[1], [0], [0], [1], [0, 0, 1, 1], [], []>} : vector<2x1024xbf16>, vector<1024x128xbf16>, vector<2x128xf32> -> vector<2x128xf32>
    %c0_15 = arith.constant 0 : index
    %c0_16 = arith.constant 0 : index
    %19 = vector.load %arg7[%c0_15, %c0_16] : memref<1x128xf32, #tpu.memory_space<vmem>>, vector<1x128xf32>
    %20 = vector.broadcast %19 : vector<1x128xf32> to vector<2x128xf32>
    %21 = arith.addf %18, %20 : vector<2x128xf32>
    %c0_17 = arith.constant 0 : index
    %c0_18 = arith.constant 0 : index
    %22 = vector.load %arg8[%c0_17, %c0_18] : memref<2x128xf32, #tpu.memory_space<vmem>>, vector<2x128xf32>
    tpu.vector_store %arg8[%c0_17, %c0_18], %21 {strides = array<i32>} : memref<2x128xf32, #tpu.memory_space<vmem>>, vector<2x128xf32>,
    return
  }
  func.func @transform_0(%arg0: i32) -> (i32, i32) {
    %c0_i32 = arith.constant 0 : i32
    %c0_i32_0 = arith.constant 0 : i32
    return %arg0, %c0_i32 : i32, i32
  }
  func.func @transform_1(%arg0: i32) -> (i32, i32) {
    %c0_i32 = arith.constant 0 : i32
    %c0_i32_0 = arith.constant 0 : i32
    %c0_i32_1 = arith.constant 0 : i32
    return %c0_i32, %c0_i32_0 : i32, i32
  }
  func.func @transform_2(%arg0: i32) -> (i32, i32) {
    %c0_i32 = arith.constant 0 : i32
    %c0_i32_0 = arith.constant 0 : i32
    %c0_i32_1 = arith.constant 0 : i32
    return %c0_i32, %c0_i32_0 : i32, i32
  }
  func.func @transform_3(%arg0: i32) -> (i32, i32) {
    %c0_i32 = arith.constant 0 : i32
    %c0_i32_0 = arith.constant 0 : i32
    %c0_i32_1 = arith.constant 0 : i32
    return %c0_i32, %c0_i32_0 : i32, i32
  }
  func.func @transform_4(%arg0: i32) -> (i32, i32) {
    %c0_i32 = arith.constant 0 : i32
    %c0_i32_0 = arith.constant 0 : i32
    %c0_i32_1 = arith.constant 0 : i32
    return %c0_i32, %c0_i32_0 : i32, i32
  }
  func.func @transform_5(%arg0: i32) -> (i32, i32) {
    %c0_i32 = arith.constant 0 : i32
    %c0_i32_0 = arith.constant 0 : i32
    %c0_i32_1 = arith.constant 0 : i32
    return %c0_i32, %c0_i32_0 : i32, i32
  }
  func.func @transform_6(%arg0: i32) -> (i32, i32) {
    %c0_i32 = arith.constant 0 : i32
    %c0_i32_0 = arith.constant 0 : i32
    %c0_i32_1 = arith.constant 0 : i32
    return %c0_i32, %c0_i32_0 : i32, i32
  }
  func.func @transform_7(%arg0: i32) -> (i32, i32) {
    %c0_i32 = arith.constant 0 : i32
    %c0_i32_0 = arith.constant 0 : i32
    return %arg0, %c0_i32 : i32, i32
  }
}

</mosaic_0001>

<bundles_post_ra>
// kernel: tpu_custom_call.1
= control target key start
LH: loop header
LB: loop body
LE: loop exit
PB: predicated region body
PF: predicated region fallthrough
CT: control target
= control target key end

     0   :  { %12 = vsyncpa [#allocation3], 0  ;;  %s10242_s0 = inlined_call_operand.hbm [shape: bf16[2,1024], index: 0, kind: input, shape index: {}]   ;;  %s10243_s1 = inlined_call_operand.hbm [shape: bf16[1024,1024], index: 1, kind: input, shape index: {}]   ;;  %s10244_s2 = inlined_call_operand.hbm [shape: f32[1,1024], index: 2, kind: input, shape index: {}]   ;;  %s10245_s3 = inlined_call_operand.hbm [shape: bf16[1024,1024], index: 3, kind: input, shape index: {}]   ;;  %s10246_s4 = inlined_call_operand.hbm [shape: f32[1,1024], index: 4, kind: input, shape index: {}]   ;;  %s10247_s5 = inlined_call_operand.hbm [shape: bf16[1024,128], index: 5, kind: input, shape index: {}]   ;;  %s10248_s6 = inlined_call_operand.hbm [shape: f32[1,128], index: 6, kind: input, shape index: {}]   ;;  %s10249_s7 = inlined_call_operand.hbm [shape: f32[2,128], index: 7, kind: output, shape index: {}]  }
   0x1   :  { %13 = vsyncpa [#allocation6], 0 }
   0x2   :  { %14 = vsyncpa [#allocation9], 0 }
   0x3   :  { %15 = vsyncpa [#allocation12], 0 }
   0x4   :  { %16 = vsyncpa [#allocation4], 0  ;;  %s9872_s24 = smov [#allocation5]  }
   0x5   :  { %s32_s25 = sshll.u32 %s9872_s24, 4  ;;  %s33_s25 = int_to_ptr.vmem [resolvable:$true] %s32_s25 }
   0x6   :  { %s9710_s26 = scalar_lea.vmem %s33_s25, 65536  ;;  %p9715_p1 = scmp.lt.s32.totalorder %s33_s25, %s33_s25 }
   0x7   :  { %p9711_p0 = scmp.ne.s32.totalorder %s33_s25, %s9710_s26  ;;  %p9716_p2 = scmp.lt.s32.totalorder %s9710_s26, %s9710_s26 }
   0x9   :  { %p9717_p3 = por %p9716_p2, %p9715_p1 }
   0xb   :  { %p9718_p4 = pnand %p9717_p3, %p9711_p0 }
   0xd   :  { %9721 = shalt.err (!%p9718_p4)
}
   0xe   :  { %s9873_s27 = smov 512   ;;  %s9874_s28 = smov 32  }
   0xf   :  { %38 = dma.hbm_to_vmem [thread:$0]  %s10243_s1, 65536, %s33_s25, [#allocation6], %s9873_s27, %s9873_s27, %s9874_s28  }
  0x10   :  { %s9875_s8 = smov [#allocation8]   ;;  %s9876_s10 = smov [#allocation11]  }
  0x11   :  { %s54_s9 = sshll.u32 %s9875_s8, 4  ;;  %s76_s11 = sshll.u32 %s9876_s10, 4  ;;  %s55_s9 = int_to_ptr.vmem [resolvable:$true] %s54_s9  ;;  %s77_s11 = int_to_ptr.vmem [resolvable:$true] %s76_s11 }
  0x12   :  { %s9730_s12 = scalar_lea.vmem %s55_s9, 65536  ;;  %p9735_p6 = scmp.lt.s32.totalorder %s55_s9, %s55_s9 }
  0x13   :  { %p9731_p5 = scmp.ne.s32.totalorder %s55_s9, %s9730_s12  ;;  %p9736_p7 = scmp.lt.s32.totalorder %s9730_s12, %s9730_s12 }
  0x15   :  { %p9737_p8 = por %p9736_p7, %p9735_p6 }
  0x17   :  { %p9738_p9 = pnand %p9737_p8, %p9731_p5 }
  0x19   :  { %9741 = shalt.err (!%p9738_p9)
}
  0x1a   :  { %60 = dma.hbm_to_vmem [thread:$0]  %s10245_s3, 65536, %s55_s9, [#allocation9], %s9873_s27, %s9873_s27, %s9874_s28  }
  0x1b   :  { %s9750_s15 = scalar_lea.vmem %s77_s11, 8192  ;;  %p9755_p11 = scmp.lt.s32.totalorder %s77_s11, %s77_s11 }
  0x1c   :  { %p9751_p10 = scmp.ne.s32.totalorder %s77_s11, %s9750_s15  ;;  %p9756_p12 = scmp.lt.s32.totalorder %s9750_s15, %s9750_s15 }
  0x1e   :  { %p9757_p13 = por %p9756_p12, %p9755_p11 }
  0x20   :  { %p9758_p0 = pnand %p9757_p13, %p9751_p10 }
  0x22   :  { %9761 = shalt.err (!%p9758_p0)
}
  0x23   :  { %s9877_s1 = smov 64   ;;  %s9878_s16 = smov 4  }
  0x24   :  { %82 = dma.hbm_to_vmem [thread:$0]  %s10247_s5, 8192, %s77_s11, [#allocation12], %s9877_s1, %s9877_s1, %s9878_s16  }
  0x25   :  { %s9879_s19 = smov [#allocation2]   ;;  %s9880_s21 = smov [#allocation7]  }
  0x26   :  { %s23_s20 = sshll.u32 %s9879_s19, 4  ;;  %s45_s22 = sshll.u32 %s9880_s21, 4  ;;  %s24_s20 = int_to_ptr.vmem [resolvable:$true] %s23_s20  ;;  %s46_s22 = int_to_ptr.vmem [resolvable:$true] %s45_s22 }
  0x27   :  { %s9770_s3 = scalar_lea.vmem %s24_s20, 128  ;;  %p9775_p2 = scmp.lt.s32.totalorder %s24_s20, %s24_s20 }
  0x28   :  { %p9771_p1 = scmp.ne.s32.totalorder %s24_s20, %s9770_s3  ;;  %p9776_p3 = scmp.lt.s32.totalorder %s9770_s3, %s9770_s3 }
  0x2a   :  { %p9777_p4 = por %p9776_p3, %p9775_p2 }
  0x2c   :  { %p9778_p5 = pnand %p9777_p4, %p9771_p1 }
  0x2e   :  { %9781 = shalt.err (!%p9778_p5)
}
  0x2f   :  { %26 = dma.hbm_to_vmem [thread:$0]  %s10242_s0, 128, %s24_s20, [#allocation3]  }
  0x30   :  { %s9790_s25 = scalar_lea.vmem %s46_s22, 128  ;;  %p9795_p7 = scmp.lt.s32.totalorder %s46_s22, %s46_s22 }
  0x31   :  { %p9791_p6 = scmp.ne.s32.totalorder %s46_s22, %s9790_s25  ;;  %p9796_p8 = scmp.lt.s32.totalorder %s9790_s25, %s9790_s25 }
  0x33   :  { %p9797_p9 = por %p9796_p8, %p9795_p7 }
  0x35   :  { %p9798_p10 = pnand %p9797_p9, %p9791_p6 }
  0x37   :  { %9801 = shalt.err (!%p9798_p10)
}
  0x38   :  { %48 = dma.hbm_to_vmem [thread:$0]  %s10244_s2, 128, %s46_s22, [#allocation6]  }
  0x39   :  { %s9881_s27 = smov [#allocation10]   ;;  %s9882_s29 = smov [#allocation13]  }
  0x3a   :  { %s67_s28 = sshll.u32 %s9881_s27, 4  ;;  %s89_s30 = sshll.u32 %s9882_s29, 4  ;;  %s68_s28 = int_to_ptr.vmem [resolvable:$true] %s67_s28  ;;  %s90_s30 = int_to_ptr.vmem [resolvable:$true] %s89_s30 }
  0x3b   :  { %s9810_s8 = scalar_lea.vmem %s68_s28, 128  ;;  %p9815_p12 = scmp.lt.s32.totalorder %s68_s28, %s68_s28 }
  0x3c   :  { %p9811_p11 = scmp.ne.s32.totalorder %s68_s28, %s9810_s8  ;;  %p9816_p13 = scmp.lt.s32.totalorder %s9810_s8, %s9810_s8 }
  0x3e   :  { %p9817_p0 = por %p9816_p13, %p9815_p12 }
  0x40   :  { %p9818_p1 = pnand %p9817_p0, %p9811_p11 }
  0x42   :  { %9821 = shalt.err (!%p9818_p1)
}
  0x43   :  { %70 = dma.hbm_to_vmem [thread:$0]  %s10246_s4, 128, %s68_s28, [#allocation9]  }
  0x44   :  { %s9830_s10 = scalar_lea.vmem %s90_s30, 16  ;;  %s9834_s2 = scalar_lea.vmem %s90_s30, 32 }
  0x45   :  { %p9831_p2 = scmp.ne.s32.totalorder %s90_s30, %s9830_s10  ;;  %p9835_p3 = scmp.lt.s32.totalorder %s90_s30, %s90_s30 }
  0x46   :  { %p9836_p4 = scmp.lt.s32.totalorder %s9834_s2, %s9830_s10 }
  0x48   :  { %p9837_p5 = por %p9836_p4, %p9835_p3 }
  0x4a   :  { %p9838_p6 = pnand %p9837_p5, %p9831_p2 }
  0x4c   :  { %9841 = shalt.err (!%p9838_p6)
}
  0x4d   :  { %92 = dma.hbm_to_vmem [thread:$0]  %s10248_s6, 16, %s90_s30, [#allocation12]  }
  0x4e   :  { %9862 = dma.done.wait [#allocation3], 128  }
  0x4f   :  { %9863 = vsyncadd [#allocation3], 4294967168 }
  0x50   :  { %9864 = dma.done.wait [#allocation6], 65664  }
  0x51   :  { %9865 = vsyncadd [#allocation6], 4294901632 }
  0x52   :  { %9866 = dma.done.wait [#allocation9], 65664  }
  0x53   :  { %9867 = vsyncadd [#allocation9], 4294901632 }
  0x54   :  { %9868 = dma.done.wait [#allocation12], 8208  }
  0x55   :  { %9869 = vsyncadd [#allocation12], 4294959088  ;;  %v172_v0 = vld [vmem:[#allocation5 + $0x1c0] sm:$0xff]  ;;  %v630_v32 = vlaneseq  ;;  %v9883_v33 = vmov 1966171168   ;;  %v115_v59 = vld [vmem:[#allocation2] sm:$0xff] }
  0x56   :  { %v176_v1 = vld [vmem:[#allocation5 + $0x1e0] sm:$0xff]  ;;  %v673_v34 = vunpack.c.l.s4 %v9883_v33  ;;  %s9884_s4 = smov [#allocation14]  }
  0x57   :  { %v300_v2 = vld [vmem:[#allocation5 + $0x5c0] sm:$0xff]  ;;  %v8501_v3 = vcombine.high %v172_v0, %v176_v1  ;;  %v8500_v5 = vcombine.low %v172_v0, %v176_v1  ;;  %v9946_v43 = vshrl.u32 %v630_v32, 7  ;;  %s8432_s6 = sshll.u32 %s9884_s4, 4  ;;  %s8433_s6 = int_to_ptr.vmem [resolvable:$true] %s8432_s6 }
  0x58   :  { %v304_v4 = vld [vmem:[#allocation5 + $0x5e0] sm:$0xff]  ;;  %v674_v44 = vunpack.c.0.s8 %v673_v34  ;;  %s9842_s13 = scalar_lea.vmem %s8433_s6, 32  ;;  %p9847_p8 = scmp.lt.s32.totalorder %s8433_s6, %s8433_s6 }
  0x59   :  { %v164_v6 = vld [vmem:[#allocation5 + $0x180] sm:$0xff]  ;;  %v8629_v8 = vcombine.high %v300_v2, %v304_v4  ;;  %v8628_v9 = vcombine.low %v300_v2, %v304_v4  ;;  %3288 = vmatprep.subr.bf16.mxu0 %v8501_v3  ;;  %p9843_p7 = scmp.ne.s32.totalorder %s8433_s6, %s9842_s13  ;;  %p9848_p9 = scmp.lt.s32.totalorder %s9842_s13, %s9842_s13 }
  0x5a   :  { %v168_v7 = vld [vmem:[#allocation5 + $0x1a0] sm:$0xff]  ;;  %3289 = vmatpush1.bf16.msra.mxu0 %v8500_v5  ;;  %v9949_v53 = vsub.s32 %v674_v44, %v9946_v43 }
  0x5b   :  { %v8493_v10 = vcombine.high %v164_v6, %v168_v7  ;;  %v292_v11 = vld [vmem:[#allocation5 + $0x580] sm:$0xff]  ;;  %3329 = vmatprep.subr.bf16.mxu1 %v8629_v8  ;;  %v8492_v18 = vcombine.low %v164_v6, %v168_v7  ;;  %p9849_p10 = por %p9848_p9, %p9847_p8 }
  0x5c   :  { %v296_v12 = vld [vmem:[#allocation5 + $0x5a0] sm:$0xff]  ;;  %3330 = vmatpush1.bf16.msra.mxu1 %v8628_v9  ;;  %v9952_v63 = vrot.slane %v115_v59, %v9949_v53 }
  0x5d   :  { %v156_v13 = vld [vmem:[#allocation5 + $0x140] sm:$0xff]  ;;  %v8621_v14 = vcombine.high %v292_v11, %v296_v12  ;;  %3290 = vmatprep.subr.bf16.mxu0 %v8493_v10  ;;  %v8620_v19 = vcombine.low %v292_v11, %v296_v12  ;;  %p9850_p11 = pnand %p9849_p10, %p9843_p7 }
  0x5e   :  { %v160_v15 = vld [vmem:[#allocation5 + $0x160] sm:$0xff]  ;;  %3291 = vmatpush1.bf16.msra.mxu0 %v8492_v18  ;;  %v686_v3 = vcombine.high %v9952_v63, %v9952_v63 }
  0x5f   :  { %v284_v16 = vld [vmem:[#allocation5 + $0x540] sm:$0xff]  ;;  %v8485_v20 = vcombine.high %v156_v13, %v160_v15  ;;  %3331 = vmatprep.subr.bf16.mxu1 %v8621_v14  ;;  %v8484_v26 = vcombine.low %v156_v13, %v160_v15 }
  0x60   :  { %v288_v17 = vld [vmem:[#allocation5 + $0x560] sm:$0xff]  ;;  %3332 = vmatpush1.bf16.msra.mxu1 %v8620_v19  ;;  %v9957_v9 = vrot.slane %v686_v3, %v9949_v53  ;;  %v671_v19 = vcombine.high %v115_v59, %v115_v59 }
  0x61   :  { %v8613_v21 = vcombine.high %v284_v16, %v288_v17  ;;  %v148_v22 = vld [vmem:[#allocation5 + $0x100] sm:$0xff]  ;;  %3292 = vmatprep.subr.bf16.mxu0 %v8485_v20  ;;  %v8612_v27 = vcombine.low %v284_v16, %v288_v17 }
  0x62   :  { %v152_v23 = vld [vmem:[#allocation5 + $0x120] sm:$0xff]  ;;  %3293 = vmatpush1.bf16.msra.mxu0 %v8484_v26  ;;  %3320 = vmatprep.mubr.bf16.mxu0 %v9957_v9  ;;  %v9962_v13 = vcombine.high %v9957_v9, %v9957_v9 }
  0x63   :  { %v276_v24 = vld [vmem:[#allocation5 + $0x500] sm:$0xff]  ;;  %v8477_v28 = vcombine.high %v148_v22, %v152_v23  ;;  %3333 = vmatprep.subr.bf16.mxu1 %v8613_v21  ;;  %v8476_v37 = vcombine.low %v148_v22, %v152_v23 }
  0x64   :  { %v280_v25 = vld [vmem:[#allocation5 + $0x520] sm:$0xff]  ;;  %3334 = vmatpush1.bf16.msra.mxu1 %v8612_v27  ;;  %3361 = vmatprep.mubr.bf16.mxu1 %v9962_v13 }
  0x65   :  { %v8605_v29 = vcombine.high %v276_v24, %v280_v25  ;;  %v140_v30 = vld [vmem:[#allocation5 + $0xc0] sm:$0xff]  ;;  %3294 = vmatprep.subr.bf16.mxu0 %v8477_v28  ;;  %v8604_v38 = vcombine.low %v276_v24, %v280_v25  ;;  %v9966_v28 = vrot.slane %v671_v19, %v9949_v53 }
  0x66   :  { %v144_v31 = vld [vmem:[#allocation5 + $0xe0] sm:$0xff]  ;;  %3295 = vmatpush1.bf16.msra.mxu0 %v8476_v37 }
  0x67   :  { %v268_v35 = vld [vmem:[#allocation5 + $0x4c0] sm:$0xff]  ;;  %v8469_v39 = vcombine.high %v140_v30, %v144_v31  ;;  %3335 = vmatprep.subr.bf16.mxu1 %v8605_v29  ;;  %v8468_v47 = vcombine.low %v140_v30, %v144_v31  ;;  %v9970_v32 = vrot.slane %v9966_v28, %v9949_v53 }
  0x68   :  { %v272_v36 = vld [vmem:[#allocation5 + $0x4e0] sm:$0xff]  ;;  %3336 = vmatpush1.bf16.msra.mxu1 %v8604_v38 }
  0x69   :  { %v8597_v40 = vcombine.high %v268_v35, %v272_v36  ;;  %v132_v41 = vld [vmem:[#allocation5 + $0x80] sm:$0xff]  ;;  %3296 = vmatprep.subr.bf16.mxu0 %v8469_v39  ;;  %v8596_v48 = vcombine.low %v268_v35, %v272_v36 }
  0x6a   :  { %v136_v42 = vld [vmem:[#allocation5 + $0xa0] sm:$0xff]  ;;  %3297 = vmatpush1.bf16.msra.mxu0 %v8468_v47 }
  0x6b   :  { %v260_v45 = vld [vmem:[#allocation5 + $0x480] sm:$0xff]  ;;  %v8461_v49 = vcombine.high %v132_v41, %v136_v42  ;;  %3337 = vmatprep.subr.bf16.mxu1 %v8597_v40  ;;  %v8460_v56 = vcombine.low %v132_v41, %v136_v42 }
  0x6c   :  { %v264_v46 = vld [vmem:[#allocation5 + $0x4a0] sm:$0xff]  ;;  %3338 = vmatpush1.bf16.msra.mxu1 %v8596_v48 }
  0x6d   :  { %v8589_v50 = vcombine.high %v260_v45, %v264_v46  ;;  %v124_v51 = vld [vmem:[#allocation5 + $0x40] sm:$0xff]  ;;  %3298 = vmatprep.subr.bf16.mxu0 %v8461_v49  ;;  %v8588_v57 = vcombine.low %v260_v45, %v264_v46 }
  0x6e   :  { %v128_v52 = vld [vmem:[#allocation5 + $0x60] sm:$0xff]  ;;  %3299 = vmatpush1.bf16.msra.mxu0 %v8460_v56 }
  0x6f   :  { %v252_v54 = vld [vmem:[#allocation5 + $0x440] sm:$0xff]  ;;  %v8453_v58 = vcombine.high %v124_v51, %v128_v52  ;;  %3339 = vmatprep.subr.bf16.mxu1 %v8589_v50  ;;  %v8452_v2 = vcombine.low %v124_v51, %v128_v52 }
  0x70   :  { %v256_v55 = vld [vmem:[#allocation5 + $0x460] sm:$0xff]  ;;  %3340 = vmatpush1.bf16.msra.mxu1 %v8588_v57 }
  0x71   :  { %v8581_v60 = vcombine.high %v252_v54, %v256_v55  ;;  %v116_v61 = vld [vmem:[#allocation5] sm:$0xff]  ;;  %3300 = vmatprep.subr.bf16.mxu0 %v8453_v58  ;;  %v8580_v4 = vcombine.low %v252_v54, %v256_v55 }
  0x72   :  { %v120_v62 = vld [vmem:[#allocation5 + $0x20] sm:$0xff]  ;;  %3301 = vmatpush1.bf16.msra.mxu0 %v8452_v2 }
  0x73   :  { %v244_v0 = vld [vmem:[#allocation5 + $0x400] sm:$0xff]  ;;  %v8445_v5 = vcombine.high %v116_v61, %v120_v62  ;;  %3341 = vmatprep.subr.bf16.mxu1 %v8581_v60  ;;  %v8444_v12 = vcombine.low %v116_v61, %v120_v62 }
  0x74   :  { %v248_v1 = vld [vmem:[#allocation5 + $0x420] sm:$0xff]  ;;  %3342 = vmatpush1.bf16.msra.mxu1 %v8580_v4 }
  0x75   :  { %v8573_v6 = vcombine.high %v244_v0, %v248_v1  ;;  %v236_v7 = vld [vmem:[#allocation5 + $0x3c0] sm:$0xff]  ;;  %3302 = vmatprep.subr.bf16.mxu0 %v8445_v5  ;;  %v8572_v14 = vcombine.low %v244_v0, %v248_v1 }
  0x76   :  { %v240_v8 = vld [vmem:[#allocation5 + $0x3e0] sm:$0xff]  ;;  %3303 = vmatpush1.bf16.msra.mxu0 %v8444_v12 }
  0x77   :  { %v364_v10 = vld [vmem:[#allocation5 + $0x7c0] sm:$0xff]  ;;  %v8565_v15 = vcombine.high %v236_v7, %v240_v8  ;;  %3343 = vmatprep.subr.bf16.mxu1 %v8573_v6  ;;  %v8564_v22 = vcombine.low %v236_v7, %v240_v8 }
  0x78   :  { %v368_v11 = vld [vmem:[#allocation5 + $0x7e0] sm:$0xff]  ;;  %3344 = vmatpush1.bf16.msra.mxu1 %v8572_v14 }
  0x79   :  { %v8693_v16 = vcombine.high %v364_v10, %v368_v11  ;;  %v228_v17 = vld [vmem:[#allocation5 + $0x380] sm:$0xff]  ;;  %3304 = vmatprep.subr.bf16.mxu0 %v8565_v15  ;;  %v8692_v23 = vcombine.low %v364_v10, %v368_v11 }
  0x7a   :  { %v232_v18 = vld [vmem:[#allocation5 + $0x3a0] sm:$0xff]  ;;  %3305 = vmatpush2.bf16.msra.mxu0 %v8564_v22 }
  0x7b   :  { %v356_v20 = vld [vmem:[#allocation5 + $0x780] sm:$0xff]  ;;  %v8557_v24 = vcombine.high %v228_v17, %v232_v18  ;;  %3345 = vmatprep.subr.bf16.mxu1 %v8693_v16  ;;  %v8556_v31 = vcombine.low %v228_v17, %v232_v18 }
  0x7c   :  { %v360_v21 = vld [vmem:[#allocation5 + $0x7a0] sm:$0xff]  ;;  %3346 = vmatpush2.bf16.msra.mxu1 %v8692_v23  ;;  %v9976_v23 = vrot.slane %v9952_v63, %v9949_v53 }
  0x7d   :  { %v8685_v25 = vcombine.high %v356_v20, %v360_v21  ;;  %v220_v26 = vld [vmem:[#allocation5 + $0x340] sm:$0xff]  ;;  %3306 = vmatprep.subr.bf16.mxu0 %v8557_v24  ;;  %v8684_v33 = vcombine.low %v356_v20, %v360_v21  ;;  %v687_v21 = vcombine.high %v9966_v28, %v9966_v28 }
  0x7e   :  { %v224_v27 = vld [vmem:[#allocation5 + $0x360] sm:$0xff]  ;;  %3307 = vmatpush2.bf16.msra.mxu0 %v8556_v31  ;;  %v9983_v28 = vcombine.high %v9976_v23, %v9976_v23 }
  0x7f   :  { %v348_v29 = vld [vmem:[#allocation5 + $0x740] sm:$0xff]  ;;  %v8549_v34 = vcombine.high %v220_v26, %v224_v27  ;;  %3347 = vmatprep.subr.bf16.mxu1 %v8685_v25  ;;  %v8548_v40 = vcombine.low %v220_v26, %v224_v27 }
  0x80   :  { %v352_v30 = vld [vmem:[#allocation5 + $0x760] sm:$0xff]  ;;  %3348 = vmatpush2.bf16.msra.mxu1 %v8684_v33  ;;  %v9979_v33 = vrot.slane %v687_v21, %v9949_v53 }
  0x81   :  { %v8677_v35 = vcombine.high %v348_v29, %v352_v30  ;;  %v212_v36 = vld [vmem:[#allocation5 + $0x300] sm:$0xff]  ;;  %3308 = vmatprep.subr.bf16.mxu0 %v8549_v34  ;;  %v8676_v41 = vcombine.low %v348_v29, %v352_v30 }
  0x82   :  { %v216_v37 = vld [vmem:[#allocation5 + $0x320] sm:$0xff]  ;;  %3309 = vmatpush2.bf16.msra.mxu0 %v8548_v40  ;;  %v9988_v53 = vcombine.high %v9979_v33, %v9979_v33 }
  0x83   :  { %v340_v38 = vld [vmem:[#allocation5 + $0x700] sm:$0xff]  ;;  %v8541_v42 = vcombine.high %v212_v36, %v216_v37  ;;  %3349 = vmatprep.subr.bf16.mxu1 %v8677_v35  ;;  %v8540_v49 = vcombine.low %v212_v36, %v216_v37 }
  0x84   :  { %v344_v39 = vld [vmem:[#allocation5 + $0x720] sm:$0xff]  ;;  %3350 = vmatpush2.bf16.msra.mxu1 %v8676_v41 }
  0x85   :  { %v8669_v44 = vcombine.high %v340_v38, %v344_v39  ;;  %v204_v45 = vld [vmem:[#allocation5 + $0x2c0] sm:$0xff]  ;;  %3310 = vmatprep.subr.bf16.mxu0 %v8541_v42  ;;  %v8668_v50 = vcombine.low %v340_v38, %v344_v39 }
  0x86   :  { %v208_v46 = vld [vmem:[#allocation5 + $0x2e0] sm:$0xff]  ;;  %3311 = vmatpush2.bf16.msra.mxu0 %v8540_v49 }
  0x87   :  { %v332_v47 = vld [vmem:[#allocation5 + $0x6c0] sm:$0xff]  ;;  %v8533_v51 = vcombine.high %v204_v45, %v208_v46  ;;  %3351 = vmatprep.subr.bf16.mxu1 %v8669_v44  ;;  %v8532_v58 = vcombine.low %v204_v45, %v208_v46 }
  0x88   :  { %v336_v48 = vld [vmem:[#allocation5 + $0x6e0] sm:$0xff]  ;;  %3352 = vmatpush2.bf16.msra.mxu1 %v8668_v50 }
  0x89   :  { %v8661_v52 = vcombine.high %v332_v47, %v336_v48  ;;  %v196_v54 = vld [vmem:[#allocation5 + $0x280] sm:$0xff]  ;;  %3312 = vmatprep.subr.bf16.mxu0 %v8533_v51  ;;  %v8660_v59 = vcombine.low %v332_v47, %v336_v48 }
  0x8a   :  { %v200_v55 = vld [vmem:[#allocation5 + $0x2a0] sm:$0xff]  ;;  %3313 = vmatpush2.bf16.msra.mxu0 %v8532_v58 }
  0x8b   :  { %v324_v56 = vld [vmem:[#allocation5 + $0x680] sm:$0xff]  ;;  %v8525_v60 = vcombine.high %v196_v54, %v200_v55  ;;  %3353 = vmatprep.subr.bf16.mxu1 %v8661_v52  ;;  %v8524_v3 = vcombine.low %v196_v54, %v200_v55 }
  0x8c   :  { %v328_v57 = vld [vmem:[#allocation5 + $0x6a0] sm:$0xff]  ;;  %3354 = vmatpush2.bf16.msra.mxu1 %v8660_v59 }
  0x8d   :  { %v8653_v61 = vcombine.high %v324_v56, %v328_v57  ;;  %v188_v62 = vld [vmem:[#allocation5 + $0x240] sm:$0xff]  ;;  %3314 = vmatprep.subr.bf16.mxu0 %v8525_v60  ;;  %v8652_v4 = vcombine.low %v324_v56, %v328_v57 }
  0x8e   :  { %v192_v0 = vld [vmem:[#allocation5 + $0x260] sm:$0xff]  ;;  %3315 = vmatpush2.bf16.msra.mxu0 %v8524_v3 }
  0x8f   :  { %v316_v1 = vld [vmem:[#allocation5 + $0x640] sm:$0xff]  ;;  %v8517_v5 = vcombine.high %v188_v62, %v192_v0  ;;  %3355 = vmatprep.subr.bf16.mxu1 %v8653_v61  ;;  %v8516_v12 = vcombine.low %v188_v62, %v192_v0 }
  0x90   :  { %v320_v2 = vld [vmem:[#allocation5 + $0x660] sm:$0xff]  ;;  %3356 = vmatpush2.bf16.msra.mxu1 %v8652_v4 }
  0x91   :  { %v8645_v6 = vcombine.high %v316_v1, %v320_v2  ;;  %v180_v7 = vld [vmem:[#allocation5 + $0x200] sm:$0xff]  ;;  %3316 = vmatprep.subr.bf16.mxu0 %v8517_v5  ;;  %v8644_v14 = vcombine.low %v316_v1, %v320_v2 }
  0x92   :  { %v184_v8 = vld [vmem:[#allocation5 + $0x220] sm:$0xff]  ;;  %3317 = vmatpush2.bf16.msra.mxu0 %v8516_v12 }
  0x93   :  { %v308_v10 = vld [vmem:[#allocation5 + $0x600] sm:$0xff]  ;;  %v8509_v15 = vcombine.high %v180_v7, %v184_v8  ;;  %3357 = vmatprep.subr.bf16.mxu1 %v8645_v6  ;;  %v8508_v22 = vcombine.low %v180_v7, %v184_v8 }
  0x94   :  { %v312_v11 = vld [vmem:[#allocation5 + $0x620] sm:$0xff]  ;;  %3358 = vmatpush2.bf16.msra.mxu1 %v8644_v14 }
  0x95   :  { %v8637_v16 = vcombine.high %v308_v10, %v312_v11  ;;  %v428_v17 = vld [vmem:[#allocation5 + $0x9c0] sm:$0xff]  ;;  %3318 = vmatprep.subr.bf16.mxu0 %v8509_v15  ;;  %v8636_v24 = vcombine.low %v308_v10, %v312_v11 }
  0x96   :  { %v432_v18 = vld [vmem:[#allocation5 + $0x9e0] sm:$0xff]  ;;  %3319 = vmatpush2.bf16.msra.mxu0 %v8508_v22 }
  0x97   :  { %v556_v19 = vld [vmem:[#allocation5 + $0xdc0] sm:$0xff]  ;;  %v8757_v25 = vcombine.high %v428_v17, %v432_v18  ;;  %3359 = vmatprep.subr.bf16.mxu1 %v8637_v16  ;;  %v8756_v63 = vcombine.low %v428_v17, %v432_v18 }
  0x98   :  { %v560_v20 = vld [vmem:[#allocation5 + $0xde0] sm:$0xff]  ;;  %3360 = vmatpush2.bf16.msra.mxu1 %v8636_v24 }
  0x99   :  { %v8885_v26 = vcombine.high %v556_v19, %v560_v20  ;;  %v420_v27 = vld [vmem:[#allocation5 + $0x980] sm:$0xff]  ;;  %3370 = vmatprep.subr.bf16.mxu0 %v8757_v25  ;;  %v8884_v34 = vcombine.low %v556_v19, %v560_v20  ;;  %3321 = vmatmul.mubr.bf16.vlgmr.msra.gmra.mxu0 %v9976_v23 }
  0x9a   :  { %v424_v29 = vld [vmem:[#allocation5 + $0x9a0] sm:$0xff]  ;;  %3371 = vmatpush1.bf16.msra.mxu0 %v8756_v63  ;;  %3402 = vmatprep.mubr.bf16.mxu0 %v9979_v33 }
  0x9b   :  { %v548_v30 = vld [vmem:[#allocation5 + $0xd80] sm:$0xff]  ;;  %v8749_v35 = vcombine.high %v420_v27, %v424_v29  ;;  %3411 = vmatprep.subr.bf16.mxu1 %v8885_v26  ;;  %3362 = vmatmul.mubr.bf16.vlgmr.msra.gmra.mxu1 %v9983_v28  ;;  %v8748_v41 = vcombine.low %v420_v27, %v424_v29 }
  0x9c   :  { %v552_v31 = vld [vmem:[#allocation5 + $0xda0] sm:$0xff]  ;;  %3412 = vmatpush1.bf16.msra.mxu1 %v8884_v34  ;;  %3443 = vmatprep.mubr.bf16.mxu1 %v9988_v53 }
  0x9d   :  { %v412_v36 = vld [vmem:[#allocation5 + $0x940] sm:$0xff]  ;;  %v8877_v39 = vcombine.high %v548_v30, %v552_v31  ;;  %3372 = vmatprep.subr.bf16.mxu0 %v8749_v35  ;;  %v8876_v42 = vcombine.low %v548_v30, %v552_v31 }
  0x9e   :  { %v416_v37 = vld [vmem:[#allocation5 + $0x960] sm:$0xff]  ;;  %3373 = vmatpush1.bf16.msra.mxu0 %v8748_v41 }
  0x9f   :  { %v540_v38 = vld [vmem:[#allocation5 + $0xd40] sm:$0xff]  ;;  %v8741_v44 = vcombine.high %v412_v36, %v416_v37  ;;  %3413 = vmatprep.subr.bf16.mxu1 %v8877_v39  ;;  %v8740_v50 = vcombine.low %v412_v36, %v416_v37 }
  0xa0   :  { %v544_v40 = vld [vmem:[#allocation5 + $0xd60] sm:$0xff]  ;;  %3414 = vmatpush1.bf16.msra.mxu1 %v8876_v42 }
  0xa1   :  { %v404_v45 = vld [vmem:[#allocation5 + $0x900] sm:$0xff]  ;;  %v8869_v48 = vcombine.high %v540_v38, %v544_v40  ;;  %3374 = vmatprep.subr.bf16.mxu0 %v8741_v44  ;;  %v8868_v51 = vcombine.low %v540_v38, %v544_v40 }
  0xa2   :  { %v408_v46 = vld [vmem:[#allocation5 + $0x920] sm:$0xff]  ;;  %3375 = vmatpush1.bf16.msra.mxu0 %v8740_v50 }
  0xa3   :  { %v532_v47 = vld [vmem:[#allocation5 + $0xd00] sm:$0xff]  ;;  %v8733_v52 = vcombine.high %v404_v45, %v408_v46  ;;  %3415 = vmatprep.subr.bf16.mxu1 %v8869_v48  ;;  %v8732_v59 = vcombine.low %v404_v45, %v408_v46 }
  0xa4   :  { %v536_v49 = vld [vmem:[#allocation5 + $0xd20] sm:$0xff]  ;;  %3416 = vmatpush1.bf16.msra.mxu1 %v8868_v51 }
  0xa5   :  { %v396_v54 = vld [vmem:[#allocation5 + $0x8c0] sm:$0xff]  ;;  %v8861_v57 = vcombine.high %v532_v47, %v536_v49  ;;  %3376 = vmatprep.subr.bf16.mxu0 %v8733_v52  ;;  %v8860_v60 = vcombine.low %v532_v47, %v536_v49 }
  0xa6   :  { %v400_v55 = vld [vmem:[#allocation5 + $0x8e0] sm:$0xff]  ;;  %3377 = vmatpush1.bf16.msra.mxu0 %v8732_v59 }
  0xa7   :  { %v524_v56 = vld [vmem:[#allocation5 + $0xcc0] sm:$0xff]  ;;  %v8725_v61 = vcombine.high %v396_v54, %v400_v55  ;;  %3417 = vmatprep.subr.bf16.mxu1 %v8861_v57  ;;  %v8724_v4 = vcombine.low %v396_v54, %v400_v55 }
  0xa8   :  { %v528_v58 = vld [vmem:[#allocation5 + $0xce0] sm:$0xff]  ;;  %3418 = vmatpush1.bf16.msra.mxu1 %v8860_v60 }
  0xa9   :  { %v388_v62 = vld [vmem:[#allocation5 + $0x880] sm:$0xff]  ;;  %v8853_v2 = vcombine.high %v524_v56, %v528_v58  ;;  %3378 = vmatprep.subr.bf16.mxu0 %v8725_v61  ;;  %v8852_v5 = vcombine.low %v524_v56, %v528_v58 }
  0xaa   :  { %v392_v0 = vld [vmem:[#allocation5 + $0x8a0] sm:$0xff]  ;;  %3379 = vmatpush1.bf16.msra.mxu0 %v8724_v4 }
  0xab   :  { %v516_v1 = vld [vmem:[#allocation5 + $0xc80] sm:$0xff]  ;;  %v8717_v6 = vcombine.high %v388_v62, %v392_v0  ;;  %3419 = vmatprep.subr.bf16.mxu1 %v8853_v2  ;;  %v8716_v14 = vcombine.low %v388_v62, %v392_v0 }
  0xac   :  { %v520_v3 = vld [vmem:[#allocation5 + $0xca0] sm:$0xff]  ;;  %3420 = vmatpush1.bf16.msra.mxu1 %v8852_v5 }
  0xad   :  { %v380_v7 = vld [vmem:[#allocation5 + $0x840] sm:$0xff]  ;;  %v8845_v11 = vcombine.high %v516_v1, %v520_v3  ;;  %3380 = vmatprep.subr.bf16.mxu0 %v8717_v6  ;;  %v8844_v15 = vcombine.low %v516_v1, %v520_v3 }
  0xae   :  { %v384_v8 = vld [vmem:[#allocation5 + $0x860] sm:$0xff]  ;;  %3381 = vmatpush1.bf16.msra.mxu0 %v8716_v14 }
  0xaf   :  { %v508_v10 = vld [vmem:[#allocation5 + $0xc40] sm:$0xff]  ;;  %v8709_v16 = vcombine.high %v380_v7, %v384_v8  ;;  %3421 = vmatprep.subr.bf16.mxu1 %v8845_v11  ;;  %v8708_v22 = vcombine.low %v380_v7, %v384_v8 }
  0xb0   :  { %v512_v12 = vld [vmem:[#allocation5 + $0xc60] sm:$0xff]  ;;  %3422 = vmatpush1.bf16.msra.mxu1 %v8844_v15 }
  0xb1   :  { %v372_v17 = vld [vmem:[#allocation5 + $0x800] sm:$0xff]  ;;  %v8837_v20 = vcombine.high %v508_v10, %v512_v12  ;;  %3382 = vmatprep.subr.bf16.mxu0 %v8709_v16  ;;  %v8836_v24 = vcombine.low %v508_v10, %v512_v12 }
  0xb2   :  { %v376_v18 = vld [vmem:[#allocation5 + $0x820] sm:$0xff]  ;;  %3383 = vmatpush1.bf16.msra.mxu0 %v8708_v22 }
  0xb3   :  { %v500_v19 = vld [vmem:[#allocation5 + $0xc00] sm:$0xff]  ;;  %v8701_v25 = vcombine.high %v372_v17, %v376_v18  ;;  %3423 = vmatprep.subr.bf16.mxu1 %v8837_v20  ;;  %v8700_v63 = vcombine.low %v372_v17, %v376_v18 }
  0xb4   :  { %v504_v21 = vld [vmem:[#allocation5 + $0xc20] sm:$0xff]  ;;  %3424 = vmatpush1.bf16.msra.mxu1 %v8836_v24 }
  0xb5   :  { %v492_v26 = vld [vmem:[#allocation5 + $0xbc0] sm:$0xff]  ;;  %v8829_v30 = vcombine.high %v500_v19, %v504_v21  ;;  %3384 = vmatprep.subr.bf16.mxu0 %v8701_v25  ;;  %v8828_v34 = vcombine.low %v500_v19, %v504_v21 }
  0xb6   :  { %v496_v27 = vld [vmem:[#allocation5 + $0xbe0] sm:$0xff]  ;;  %3385 = vmatpush1.bf16.msra.mxu0 %v8700_v63 }
  0xb7   :  { %v620_v29 = vld [vmem:[#allocation5 + $0xfc0] sm:$0xff]  ;;  %v8821_v35 = vcombine.high %v492_v26, %v496_v27  ;;  %3425 = vmatprep.subr.bf16.mxu1 %v8829_v30  ;;  %v8820_v41 = vcombine.low %v492_v26, %v496_v27 }
  0xb8   :  { %v624_v31 = vld [vmem:[#allocation5 + $0xfe0] sm:$0xff]  ;;  %3426 = vmatpush1.bf16.msra.mxu1 %v8828_v34 }
  0xb9   :  { %v484_v36 = vld [vmem:[#allocation5 + $0xb80] sm:$0xff]  ;;  %v8949_v39 = vcombine.high %v620_v29, %v624_v31  ;;  %3386 = vmatprep.subr.bf16.mxu0 %v8821_v35  ;;  %v8948_v42 = vcombine.low %v620_v29, %v624_v31 }
  0xba   :  { %v488_v37 = vld [vmem:[#allocation5 + $0xba0] sm:$0xff]  ;;  %3387 = vmatpush2.bf16.msra.mxu0 %v8820_v41 }
  0xbb   :  { %v612_v38 = vld [vmem:[#allocation5 + $0xf80] sm:$0xff]  ;;  %v8813_v44 = vcombine.high %v484_v36, %v488_v37  ;;  %3427 = vmatprep.subr.bf16.mxu1 %v8949_v39  ;;  %v8812_v50 = vcombine.low %v484_v36, %v488_v37  ;;  %v173_v36 = vld [vmem:[#allocation5 + $0x1c8] sm:$0xff] }
  0xbc   :  { %v616_v40 = vld [vmem:[#allocation5 + $0xfa0] sm:$0xff]  ;;  %3428 = vmatpush2.bf16.msra.mxu1 %v8948_v42  ;;  %v177_v37 = vld [vmem:[#allocation5 + $0x1e8] sm:$0xff] }
  0xbd   :  { %v476_v45 = vld [vmem:[#allocation5 + $0xb40] sm:$0xff]  ;;  %v8941_v48 = vcombine.high %v612_v38, %v616_v40  ;;  %3388 = vmatprep.subr.bf16.mxu0 %v8813_v44  ;;  %v8940_v51 = vcombine.low %v612_v38, %v616_v40  ;;  %v301_v38 = vld [vmem:[#allocation5 + $0x5c8] sm:$0xff]  ;;  %v8503_v44 = vcombine.high %v173_v36, %v177_v37 }
  0xbe   :  { %v480_v46 = vld [vmem:[#allocation5 + $0xb60] sm:$0xff]  ;;  %3389 = vmatpush2.bf16.msra.mxu0 %v8812_v50  ;;  %v305_v40 = vld [vmem:[#allocation5 + $0x5e8] sm:$0xff]  ;;  %v9995_v50 = vcombine.high %v9970_v32, %v9970_v32 }
  0xbf   :  { %v604_v47 = vld [vmem:[#allocation5 + $0xf40] sm:$0xff]  ;;  %v8805_v52 = vcombine.high %v476_v45, %v480_v46  ;;  %3429 = vmatprep.subr.bf16.mxu1 %v8941_v48  ;;  %v8804_v59 = vcombine.low %v476_v45, %v480_v46  ;;  %v165_v45 = vld [vmem:[#allocation5 + $0x188] sm:$0xff]  ;;  %v8631_v48 = vcombine.high %v301_v38, %v305_v40 }
  0xc0   :  { %v608_v49 = vld [vmem:[#allocation5 + $0xf60] sm:$0xff]  ;;  %3430 = vmatpush2.bf16.msra.mxu1 %v8940_v51  ;;  %v169_v46 = vld [vmem:[#allocation5 + $0x1a8] sm:$0xff]  ;;  %v8502_v51 = vcombine.low %v173_v36, %v177_v37 }
  0xc1   :  { %v468_v54 = vld [vmem:[#allocation5 + $0xb00] sm:$0xff]  ;;  %v8933_v57 = vcombine.high %v604_v47, %v608_v49  ;;  %3390 = vmatprep.subr.bf16.mxu0 %v8805_v52  ;;  %v8932_v60 = vcombine.low %v604_v47, %v608_v49  ;;  %v293_v47 = vld [vmem:[#allocation5 + $0x588] sm:$0xff]  ;;  %v8630_v52 = vcombine.low %v301_v38, %v305_v40 }
  0xc2   :  { %v472_v55 = vld [vmem:[#allocation5 + $0xb20] sm:$0xff]  ;;  %3391 = vmatpush2.bf16.msra.mxu0 %v8804_v59  ;;  %v297_v49 = vld [vmem:[#allocation5 + $0x5a8] sm:$0xff] }
  0xc3   :  { %v596_v56 = vld [vmem:[#allocation5 + $0xf00] sm:$0xff]  ;;  %v8797_v61 = vcombine.high %v468_v54, %v472_v55  ;;  %3431 = vmatprep.subr.bf16.mxu1 %v8933_v57  ;;  %v8796_v4 = vcombine.low %v468_v54, %v472_v55  ;;  %v8495_v54 = vcombine.high %v165_v45, %v169_v46  ;;  %v8623_v55 = vcombine.high %v293_v47, %v297_v49  ;;  %v161_v57 = vld [vmem:[#allocation5 + $0x168] sm:$0xff] }
  0xc4   :  { %v600_v58 = vld [vmem:[#allocation5 + $0xf20] sm:$0xff]  ;;  %3432 = vmatpush2.bf16.msra.mxu1 %v8932_v60  ;;  %v289_v59 = vld [vmem:[#allocation5 + $0x568] sm:$0xff]  ;;  %v8494_v60 = vcombine.low %v165_v45, %v169_v46 }
  0xc5   :  { %v460_v62 = vld [vmem:[#allocation5 + $0xac0] sm:$0xff]  ;;  %v8925_v2 = vcombine.high %v596_v56, %v600_v58  ;;  %3392 = vmatprep.subr.bf16.mxu0 %v8797_v61  ;;  %v8924_v5 = vcombine.low %v596_v56, %v600_v58  ;;  %v157_v56 = vld [vmem:[#allocation5 + $0x148] sm:$0xff]  ;;  %v8622_v61 = vcombine.low %v293_v47, %v297_v49 }
  0xc6   :  { %v464_v0 = vld [vmem:[#allocation5 + $0xae0] sm:$0xff]  ;;  %3393 = vmatpush2.bf16.msra.mxu0 %v8796_v4  ;;  %v285_v58 = vld [vmem:[#allocation5 + $0x548] sm:$0xff] }
  0xc7   :  { %v588_v1 = vld [vmem:[#allocation5 + $0xec0] sm:$0xff]  ;;  %v8789_v6 = vcombine.high %v460_v62, %v464_v0  ;;  %3433 = vmatprep.subr.bf16.mxu1 %v8925_v2  ;;  %v8788_v14 = vcombine.low %v460_v62, %v464_v0  ;;  %v8487_v62 = vcombine.high %v157_v56, %v161_v57  ;;  %v8615_v0 = vcombine.high %v285_v58, %v289_v59  ;;  %v153_v2 = vld [vmem:[#allocation5 + $0x128] sm:$0xff] }
  0xc8   :  { %v592_v3 = vld [vmem:[#allocation5 + $0xee0] sm:$0xff]  ;;  %3434 = vmatpush2.bf16.msra.mxu1 %v8924_v5  ;;  %v281_v4 = vld [vmem:[#allocation5 + $0x528] sm:$0xff]  ;;  %v8486_v5 = vcombine.low %v157_v56, %v161_v57 }
  0xc9   :  { %v452_v7 = vld [vmem:[#allocation5 + $0xa80] sm:$0xff]  ;;  %v8917_v11 = vcombine.high %v588_v1, %v592_v3  ;;  %3394 = vmatprep.subr.bf16.mxu0 %v8789_v6  ;;  %v8916_v15 = vcombine.low %v588_v1, %v592_v3  ;;  %v149_v1 = vld [vmem:[#allocation5 + $0x108] sm:$0xff]  ;;  %v8614_v6 = vcombine.low %v285_v58, %v289_v59 }
  0xca   :  { %v456_v8 = vld [vmem:[#allocation5 + $0xaa0] sm:$0xff]  ;;  %3395 = vmatpush2.bf16.msra.mxu0 %v8788_v14  ;;  %v277_v3 = vld [vmem:[#allocation5 + $0x508] sm:$0xff] }
  0xcb   :  { %v580_v10 = vld [vmem:[#allocation5 + $0xe80] sm:$0xff]  ;;  %v8781_v16 = vcombine.high %v452_v7, %v456_v8  ;;  %3435 = vmatprep.subr.bf16.mxu1 %v8917_v11  ;;  %v8780_v22 = vcombine.low %v452_v7, %v456_v8  ;;  %v8479_v7 = vcombine.high %v149_v1, %v153_v2  ;;  %v8607_v8 = vcombine.high %v277_v3, %v281_v4  ;;  %v145_v11 = vld [vmem:[#allocation5 + $0xe8] sm:$0xff] }
  0xcc   :  { %v584_v12 = vld [vmem:[#allocation5 + $0xea0] sm:$0xff]  ;;  %3436 = vmatpush2.bf16.msra.mxu1 %v8916_v15  ;;  %v273_v14 = vld [vmem:[#allocation5 + $0x4e8] sm:$0xff]  ;;  %v8478_v15 = vcombine.low %v149_v1, %v153_v2 }
  0xcd   :  { %v444_v17 = vld [vmem:[#allocation5 + $0xa40] sm:$0xff]  ;;  %v8909_v20 = vcombine.high %v580_v10, %v584_v12  ;;  %3396 = vmatprep.subr.bf16.mxu0 %v8781_v16  ;;  %v8908_v24 = vcombine.low %v580_v10, %v584_v12  ;;  %v141_v10 = vld [vmem:[#allocation5 + $0xc8] sm:$0xff]  ;;  %v8606_v16 = vcombine.low %v277_v3, %v281_v4 }
  0xce   :  { %v448_v18 = vld [vmem:[#allocation5 + $0xa60] sm:$0xff]  ;;  %3397 = vmatpush2.bf16.msra.mxu0 %v8780_v22  ;;  %v269_v12 = vld [vmem:[#allocation5 + $0x4c8] sm:$0xff] }
  0xcf   :  { %v572_v19 = vld [vmem:[#allocation5 + $0xe40] sm:$0xff]  ;;  %v8773_v25 = vcombine.high %v444_v17, %v448_v18  ;;  %3437 = vmatprep.subr.bf16.mxu1 %v8909_v20  ;;  %v8772_v63 = vcombine.low %v444_v17, %v448_v18  ;;  %v8471_v17 = vcombine.high %v141_v10, %v145_v11  ;;  %v8599_v18 = vcombine.high %v269_v12, %v273_v14  ;;  %v137_v20 = vld [vmem:[#allocation5 + $0xa8] sm:$0xff] }
  0xd0   :  { %v576_v21 = vld [vmem:[#allocation5 + $0xe60] sm:$0xff]  ;;  %3438 = vmatpush2.bf16.msra.mxu1 %v8908_v24  ;;  %v265_v22 = vld [vmem:[#allocation5 + $0x4a8] sm:$0xff]  ;;  %v8470_v24 = vcombine.low %v141_v10, %v145_v11 }
  0xd1   :  { %v436_v26 = vld [vmem:[#allocation5 + $0xa00] sm:$0xff]  ;;  %v8901_v30 = vcombine.high %v572_v19, %v576_v21  ;;  %3398 = vmatprep.subr.bf16.mxu0 %v8773_v25  ;;  %v8900_v34 = vcombine.low %v572_v19, %v576_v21  ;;  %v133_v19 = vld [vmem:[#allocation5 + $0x88] sm:$0xff]  ;;  %v8598_v25 = vcombine.low %v269_v12, %v273_v14 }
  0xd2   :  { %v440_v27 = vld [vmem:[#allocation5 + $0xa20] sm:$0xff]  ;;  %3399 = vmatpush2.bf16.msra.mxu0 %v8772_v63  ;;  %v261_v21 = vld [vmem:[#allocation5 + $0x488] sm:$0xff] }
  0xd3   :  { %v564_v29 = vld [vmem:[#allocation5 + $0xe00] sm:$0xff]  ;;  %v8765_v35 = vcombine.high %v436_v26, %v440_v27  ;;  %3439 = vmatprep.subr.bf16.mxu1 %v8901_v30  ;;  %v8764_v41 = vcombine.low %v436_v26, %v440_v27  ;;  %v8463_v26 = vcombine.high %v133_v19, %v137_v20  ;;  %v8591_v27 = vcombine.high %v261_v21, %v265_v22  ;;  %v129_v30 = vld [vmem:[#allocation5 + $0x68] sm:$0xff] }
  0xd4   :  { %v568_v31 = vld [vmem:[#allocation5 + $0xe20] sm:$0xff]  ;;  %3440 = vmatpush2.bf16.msra.mxu1 %v8900_v34  ;;  %v257_v63 = vld [vmem:[#allocation5 + $0x468] sm:$0xff]  ;;  %v8462_v34 = vcombine.low %v133_v19, %v137_v20 }
  0xd5   :  { %v8893_v39 = vcombine.high %v564_v29, %v568_v31  ;;  %3400 = vmatprep.subr.bf16.mxu0 %v8765_v35  ;;  %v8892_v42 = vcombine.low %v564_v29, %v568_v31  ;;  %v125_v29 = vld [vmem:[#allocation5 + $0x48] sm:$0xff]  ;;  %v8590_v35 = vcombine.low %v261_v21, %v265_v22 }
  0xd6   :  { %3401 = vmatpush2.bf16.msra.mxu0 %v8764_v41  ;;  %v253_v31 = vld [vmem:[#allocation5 + $0x448] sm:$0xff]  ;;  %v8455_v36 = vcombine.high %v125_v29, %v129_v30 }
  0xd7   :  { %3441 = vmatprep.subr.bf16.mxu1 %v8893_v39  ;;  %3452 = vmatprep.subr.bf16.mxu0 %v8503_v44  ;;  %v8583_v37 = vcombine.high %v253_v31, %v257_v63  ;;  %v117_v38 = vld [vmem:[#allocation5 + $0x8] sm:$0xff]  ;;  %v8582_v44 = vcombine.low %v253_v31, %v257_v63 }
  0xd8   :  { %3442 = vmatpush2.bf16.msra.mxu1 %v8892_v42  ;;  %v121_v39 = vld [vmem:[#allocation5 + $0x28] sm:$0xff]  ;;  %v8454_v42 = vcombine.low %v125_v29, %v129_v30 }
  0xd9   :  { %3493 = vmatprep.subr.bf16.mxu1 %v8631_v48  ;;  %3403 = vmatmul.mubr.bf16.vlgmr.msra.gmra.mxu0 %v9970_v32  ;;  %v245_v40 = vld [vmem:[#allocation5 + $0x408] sm:$0xff]  ;;  %v8447_v45 = vcombine.high %v117_v38, %v121_v39 }
  0xda   :  { %3453 = vmatpush1.bf16.msra.mxu0 %v8502_v51  ;;  %3484 = vmatprep.mubr.bf16.mxu0 %v9957_v9  ;;  %v249_v41 = vld [vmem:[#allocation5 + $0x428] sm:$0xff] }
  0xdb   :  { %3444 = vmatmul.mubr.bf16.vlgmr.msra.gmra.mxu1 %v9995_v50  ;;  %3454 = vmatprep.subr.bf16.mxu0 %v8495_v54  ;;  %v8575_v46 = vcombine.high %v245_v40, %v249_v41  ;;  %v237_v47 = vld [vmem:[#allocation5 + $0x3c8] sm:$0xff]  ;;  %v8574_v54 = vcombine.low %v245_v40, %v249_v41 }
  0xdc   :  { %3494 = vmatpush1.bf16.msra.mxu1 %v8630_v52  ;;  %3525 = vmatprep.mubr.bf16.mxu1 %v9962_v13  ;;  %v241_v48 = vld [vmem:[#allocation5 + $0x3e8] sm:$0xff]  ;;  %v8446_v52 = vcombine.low %v117_v38, %v121_v39 }
  0xdd   :  { %3495 = vmatprep.subr.bf16.mxu1 %v8623_v55  ;;  %v365_v49 = vld [vmem:[#allocation5 + $0x7c8] sm:$0xff]  ;;  %v8567_v55 = vcombine.high %v237_v47, %v241_v48 }
  0xde   :  { %3455 = vmatpush1.bf16.msra.mxu0 %v8494_v60  ;;  %v369_v51 = vld [vmem:[#allocation5 + $0x7e8] sm:$0xff] }
  0xdf   :  { %3456 = vmatprep.subr.bf16.mxu0 %v8487_v62  ;;  %v8695_v56 = vcombine.high %v365_v49, %v369_v51  ;;  %v229_v57 = vld [vmem:[#allocation5 + $0x388] sm:$0xff]  ;;  %v8694_v62 = vcombine.low %v365_v49, %v369_v51 }
  0xe0   :  { %3496 = vmatpush1.bf16.msra.mxu1 %v8622_v61  ;;  %v233_v58 = vld [vmem:[#allocation5 + $0x3a8] sm:$0xff]  ;;  %v8566_v61 = vcombine.low %v237_v47, %v241_v48 }
  0xe1   :  { %3497 = vmatprep.subr.bf16.mxu1 %v8615_v0  ;;  %v357_v59 = vld [vmem:[#allocation5 + $0x788] sm:$0xff]  ;;  %v8559_v0 = vcombine.high %v229_v57, %v233_v58 }
  0xe2   :  { %3457 = vmatpush1.bf16.msra.mxu0 %v8486_v5  ;;  %v361_v60 = vld [vmem:[#allocation5 + $0x7a8] sm:$0xff] }
  0xe3   :  { %3458 = vmatprep.subr.bf16.mxu0 %v8479_v7  ;;  %v8687_v1 = vcombine.high %v357_v59, %v361_v60  ;;  %v221_v2 = vld [vmem:[#allocation5 + $0x348] sm:$0xff]  ;;  %v8686_v7 = vcombine.low %v357_v59, %v361_v60 }
  0xe4   :  { %3498 = vmatpush1.bf16.msra.mxu1 %v8614_v6  ;;  %v225_v3 = vld [vmem:[#allocation5 + $0x368] sm:$0xff]  ;;  %v8558_v6 = vcombine.low %v229_v57, %v233_v58 }
  0xe5   :  { %3499 = vmatprep.subr.bf16.mxu1 %v8607_v8  ;;  %v349_v4 = vld [vmem:[#allocation5 + $0x748] sm:$0xff]  ;;  %v8551_v8 = vcombine.high %v221_v2, %v225_v3 }
  0xe6   :  { %3459 = vmatpush1.bf16.msra.mxu0 %v8478_v15  ;;  %v353_v5 = vld [vmem:[#allocation5 + $0x768] sm:$0xff] }
  0xe7   :  { %3460 = vmatprep.subr.bf16.mxu0 %v8471_v17  ;;  %v8679_v10 = vcombine.high %v349_v4, %v353_v5  ;;  %v213_v11 = vld [vmem:[#allocation5 + $0x308] sm:$0xff]  ;;  %v8678_v17 = vcombine.low %v349_v4, %v353_v5 }
  0xe8   :  { %3500 = vmatpush1.bf16.msra.mxu1 %v8606_v16  ;;  %v217_v12 = vld [vmem:[#allocation5 + $0x328] sm:$0xff]  ;;  %v8550_v16 = vcombine.low %v221_v2, %v225_v3 }
  0xe9   :  { %3501 = vmatprep.subr.bf16.mxu1 %v8599_v18  ;;  %v341_v14 = vld [vmem:[#allocation5 + $0x708] sm:$0xff]  ;;  %v8543_v18 = vcombine.high %v213_v11, %v217_v12 }
  0xea   :  { %3461 = vmatpush1.bf16.msra.mxu0 %v8470_v24  ;;  %v345_v15 = vld [vmem:[#allocation5 + $0x728] sm:$0xff] }
  0xeb   :  { %3462 = vmatprep.subr.bf16.mxu0 %v8463_v26  ;;  %v8671_v19 = vcombine.high %v341_v14, %v345_v15  ;;  %v205_v20 = vld [vmem:[#allocation5 + $0x2c8] sm:$0xff]  ;;  %v8670_v26 = vcombine.low %v341_v14, %v345_v15 }
  0xec   :  { %3502 = vmatpush1.bf16.msra.mxu1 %v8598_v25  ;;  %v209_v21 = vld [vmem:[#allocation5 + $0x2e8] sm:$0xff]  ;;  %v8542_v25 = vcombine.low %v213_v11, %v217_v12 }
  0xed   :  { %3503 = vmatprep.subr.bf16.mxu1 %v8591_v27  ;;  %v333_v22 = vld [vmem:[#allocation5 + $0x6c8] sm:$0xff]  ;;  %v8535_v27 = vcombine.high %v205_v20, %v209_v21 }
  0xee   :  { %3463 = vmatpush1.bf16.msra.mxu0 %v8462_v34  ;;  %v337_v24 = vld [vmem:[#allocation5 + $0x6e8] sm:$0xff] }
  0xef   :  { %3464 = vmatprep.subr.bf16.mxu0 %v8455_v36  ;;  %v8663_v29 = vcombine.high %v333_v22, %v337_v24  ;;  %v197_v30 = vld [vmem:[#allocation5 + $0x288] sm:$0xff]  ;;  %v8662_v36 = vcombine.low %v333_v22, %v337_v24 }
  0xf0   :  { %3504 = vmatpush1.bf16.msra.mxu1 %v8590_v35  ;;  %v201_v31 = vld [vmem:[#allocation5 + $0x2a8] sm:$0xff]  ;;  %v8534_v35 = vcombine.low %v205_v20, %v209_v21 }
  0xf1   :  { %3505 = vmatprep.subr.bf16.mxu1 %v8583_v37  ;;  %v325_v63 = vld [vmem:[#allocation5 + $0x688] sm:$0xff]  ;;  %v8527_v37 = vcombine.high %v197_v30, %v201_v31 }
  0xf2   :  { %3465 = vmatpush1.bf16.msra.mxu0 %v8454_v42  ;;  %v329_v34 = vld [vmem:[#allocation5 + $0x6a8] sm:$0xff] }
  0xf3   :  { %3466 = vmatprep.subr.bf16.mxu0 %v8447_v45  ;;  %v8655_v38 = vcombine.high %v325_v63, %v329_v34  ;;  %v189_v39 = vld [vmem:[#allocation5 + $0x248] sm:$0xff]  ;;  %v8654_v45 = vcombine.low %v325_v63, %v329_v34 }
  0xf4   :  { %3506 = vmatpush1.bf16.msra.mxu1 %v8582_v44  ;;  %v193_v40 = vld [vmem:[#allocation5 + $0x268] sm:$0xff]  ;;  %v8526_v44 = vcombine.low %v197_v30, %v201_v31 }
  0xf5   :  { %3507 = vmatprep.subr.bf16.mxu1 %v8575_v46  ;;  %v317_v41 = vld [vmem:[#allocation5 + $0x648] sm:$0xff]  ;;  %v8519_v46 = vcombine.high %v189_v39, %v193_v40 }
  0xf6   :  { %3467 = vmatpush1.bf16.msra.mxu0 %v8446_v52  ;;  %v321_v42 = vld [vmem:[#allocation5 + $0x668] sm:$0xff] }
  0xf7   :  { %3468 = vmatprep.subr.bf16.mxu0 %v8567_v55  ;;  %v8647_v47 = vcombine.high %v317_v41, %v321_v42  ;;  %v181_v48 = vld [vmem:[#allocation5 + $0x208] sm:$0xff]  ;;  %v8646_v55 = vcombine.low %v317_v41, %v321_v42 }
  0xf8   :  { %3508 = vmatpush1.bf16.msra.mxu1 %v8574_v54  ;;  %v185_v49 = vld [vmem:[#allocation5 + $0x228] sm:$0xff]  ;;  %v8518_v54 = vcombine.low %v189_v39, %v193_v40 }
  0xf9   :  { %3509 = vmatprep.subr.bf16.mxu1 %v8695_v56  ;;  %v309_v51 = vld [vmem:[#allocation5 + $0x608] sm:$0xff]  ;;  %v8511_v56 = vcombine.high %v181_v48, %v185_v49 }
  0xfa   :  { %3469 = vmatpush2.bf16.msra.mxu0 %v8566_v61  ;;  %v313_v52 = vld [vmem:[#allocation5 + $0x628] sm:$0xff] }
  0xfb   :  { %3470 = vmatprep.subr.bf16.mxu0 %v8559_v0  ;;  %v8639_v57 = vcombine.high %v309_v51, %v313_v52  ;;  %v429_v58 = vld [vmem:[#allocation5 + $0x9c8] sm:$0xff]  ;;  %v8638_v0 = vcombine.low %v309_v51, %v313_v52 }
  0xfc   :  { %3510 = vmatpush2.bf16.msra.mxu1 %v8694_v62  ;;  %v433_v59 = vld [vmem:[#allocation5 + $0x9e8] sm:$0xff]  ;;  %v8510_v62 = vcombine.low %v181_v48, %v185_v49 }
  0xfd   :  { %3511 = vmatprep.subr.bf16.mxu1 %v8687_v1  ;;  %v557_v60 = vld [vmem:[#allocation5 + $0xdc8] sm:$0xff]  ;;  %v8759_v1 = vcombine.high %v429_v58, %v433_v59 }
  0xfe   :  { %3471 = vmatpush2.bf16.msra.mxu0 %v8558_v6  ;;  %v561_v61 = vld [vmem:[#allocation5 + $0xde8] sm:$0xff] }
  0xff   :  { %3472 = vmatprep.subr.bf16.mxu0 %v8551_v8  ;;  %v8887_v2 = vcombine.high %v557_v60, %v561_v61  ;;  %v421_v3 = vld [vmem:[#allocation5 + $0x988] sm:$0xff]  ;;  %v8886_v8 = vcombine.low %v557_v60, %v561_v61 }
 0x100   :  { %3512 = vmatpush2.bf16.msra.mxu1 %v8686_v7  ;;  %v425_v4 = vld [vmem:[#allocation5 + $0x9a8] sm:$0xff]  ;;  %v8758_v7 = vcombine.low %v429_v58, %v433_v59 }
 0x101   :  { %3513 = vmatprep.subr.bf16.mxu1 %v8679_v10  ;;  %v549_v5 = vld [vmem:[#allocation5 + $0xd88] sm:$0xff]  ;;  %v8751_v10 = vcombine.high %v421_v3, %v425_v4 }
 0x102   :  { %3473 = vmatpush2.bf16.msra.mxu0 %v8550_v16  ;;  %v553_v6 = vld [vmem:[#allocation5 + $0xda8] sm:$0xff] }
 0x103   :  { %3474 = vmatprep.subr.bf16.mxu0 %v8543_v18  ;;  %v8879_v11 = vcombine.high %v549_v5, %v553_v6  ;;  %v413_v12 = vld [vmem:[#allocation5 + $0x948] sm:$0xff]  ;;  %v8878_v18 = vcombine.low %v549_v5, %v553_v6 }
 0x104   :  { %3514 = vmatpush2.bf16.msra.mxu1 %v8678_v17  ;;  %v417_v14 = vld [vmem:[#allocation5 + $0x968] sm:$0xff]  ;;  %v8750_v17 = vcombine.low %v421_v3, %v425_v4 }
 0x105   :  { %3515 = vmatprep.subr.bf16.mxu1 %v8671_v19  ;;  %v541_v15 = vld [vmem:[#allocation5 + $0xd48] sm:$0xff]  ;;  %v8743_v19 = vcombine.high %v413_v12, %v417_v14 }
 0x106   :  { %3475 = vmatpush2.bf16.msra.mxu0 %v8542_v25  ;;  %v545_v16 = vld [vmem:[#allocation5 + $0xd68] sm:$0xff] }
 0x107   :  { %3476 = vmatprep.subr.bf16.mxu0 %v8535_v27  ;;  %v8871_v20 = vcombine.high %v541_v15, %v545_v16  ;;  %v405_v21 = vld [vmem:[#allocation5 + $0x908] sm:$0xff]  ;;  %v8870_v27 = vcombine.low %v541_v15, %v545_v16 }
 0x108   :  { %3516 = vmatpush2.bf16.msra.mxu1 %v8670_v26  ;;  %v409_v22 = vld [vmem:[#allocation5 + $0x928] sm:$0xff]  ;;  %v8742_v26 = vcombine.low %v413_v12, %v417_v14 }
 0x109   :  { %3517 = vmatprep.subr.bf16.mxu1 %v8663_v29  ;;  %v533_v24 = vld [vmem:[#allocation5 + $0xd08] sm:$0xff]  ;;  %v8735_v29 = vcombine.high %v405_v21, %v409_v22 }
 0x10a   :  { %3477 = vmatpush2.bf16.msra.mxu0 %v8534_v35  ;;  %v537_v25 = vld [vmem:[#allocation5 + $0xd28] sm:$0xff] }
 0x10b   :  { %3478 = vmatprep.subr.bf16.mxu0 %v8527_v37  ;;  %v8863_v30 = vcombine.high %v533_v24, %v537_v25  ;;  %v397_v31 = vld [vmem:[#allocation5 + $0x8c8] sm:$0xff]  ;;  %v8862_v37 = vcombine.low %v533_v24, %v537_v25 }
 0x10c   :  { %3518 = vmatpush2.bf16.msra.mxu1 %v8662_v36  ;;  %v401_v63 = vld [vmem:[#allocation5 + $0x8e8] sm:$0xff]  ;;  %v8734_v36 = vcombine.low %v405_v21, %v409_v22 }
 0x10d   :  { %3519 = vmatprep.subr.bf16.mxu1 %v8655_v38  ;;  %v525_v34 = vld [vmem:[#allocation5 + $0xcc8] sm:$0xff]  ;;  %v8727_v38 = vcombine.high %v397_v31, %v401_v63 }
 0x10e   :  { %3479 = vmatpush2.bf16.msra.mxu0 %v8526_v44  ;;  %v529_v35 = vld [vmem:[#allocation5 + $0xce8] sm:$0xff] }
 0x10f   :  { %3480 = vmatprep.subr.bf16.mxu0 %v8519_v46  ;;  %v8855_v39 = vcombine.high %v525_v34, %v529_v35  ;;  %v389_v40 = vld [vmem:[#allocation5 + $0x888] sm:$0xff]  ;;  %v8854_v46 = vcombine.low %v525_v34, %v529_v35 }
 0x110   :  { %3520 = vmatpush2.bf16.msra.mxu1 %v8654_v45  ;;  %v393_v41 = vld [vmem:[#allocation5 + $0x8a8] sm:$0xff]  ;;  %v8726_v45 = vcombine.low %v397_v31, %v401_v63 }
 0x111   :  { %3521 = vmatprep.subr.bf16.mxu1 %v8647_v47  ;;  %v517_v42 = vld [vmem:[#allocation5 + $0xc88] sm:$0xff]  ;;  %v8719_v47 = vcombine.high %v389_v40, %v393_v41 }
 0x112   :  { %3481 = vmatpush2.bf16.msra.mxu0 %v8518_v54  ;;  %v521_v44 = vld [vmem:[#allocation5 + $0xca8] sm:$0xff] }
 0x113   :  { %3482 = vmatprep.subr.bf16.mxu0 %v8511_v56  ;;  %v8847_v48 = vcombine.high %v517_v42, %v521_v44  ;;  %v381_v49 = vld [vmem:[#allocation5 + $0x848] sm:$0xff]  ;;  %v8846_v56 = vcombine.low %v517_v42, %v521_v44 }
 0x114   :  { %3522 = vmatpush2.bf16.msra.mxu1 %v8646_v55  ;;  %v385_v51 = vld [vmem:[#allocation5 + $0x868] sm:$0xff]  ;;  %v8718_v55 = vcombine.low %v389_v40, %v393_v41 }
 0x115   :  { %3523 = vmatprep.subr.bf16.mxu1 %v8639_v57  ;;  %v509_v52 = vld [vmem:[#allocation5 + $0xc48] sm:$0xff]  ;;  %v8711_v57 = vcombine.high %v381_v49, %v385_v51 }
 0x116   :  { %3483 = vmatpush2.bf16.msra.mxu0 %v8510_v62  ;;  %v513_v54 = vld [vmem:[#allocation5 + $0xc68] sm:$0xff] }
 0x117   :  { %3534 = vmatprep.subr.bf16.mxu0 %v8759_v1  ;;  %v8839_v58 = vcombine.high %v509_v52, %v513_v54  ;;  %v373_v59 = vld [vmem:[#allocation5 + $0x808] sm:$0xff]  ;;  %v8838_v1 = vcombine.low %v509_v52, %v513_v54 }
 0x118   :  { %3524 = vmatpush2.bf16.msra.mxu1 %v8638_v0  ;;  %v377_v60 = vld [vmem:[#allocation5 + $0x828] sm:$0xff]  ;;  %v8710_v0 = vcombine.low %v381_v49, %v385_v51 }
 0x119   :  { %3575 = vmatprep.subr.bf16.mxu1 %v8887_v2  ;;  %3485 = vmatmul.mubr.bf16.vlgmr.msra.gmra.mxu0 %v9976_v23  ;;  %v501_v61 = vld [vmem:[#allocation5 + $0xc08] sm:$0xff]  ;;  %v8703_v2 = vcombine.high %v373_v59, %v377_v60 }
 0x11a   :  { %3535 = vmatpush1.bf16.msra.mxu0 %v8758_v7  ;;  %3566 = vmatprep.mubr.bf16.mxu0 %v9979_v33  ;;  %v505_v62 = vld [vmem:[#allocation5 + $0xc28] sm:$0xff] }
 0x11b   :  { %3526 = vmatmul.mubr.bf16.vlgmr.msra.gmra.mxu1 %v9983_v28  ;;  %3536 = vmatprep.subr.bf16.mxu0 %v8751_v10  ;;  %v8831_v3 = vcombine.high %v501_v61, %v505_v62  ;;  %v493_v4 = vld [vmem:[#allocation5 + $0xbc8] sm:$0xff]  ;;  %v8830_v10 = vcombine.low %v501_v61, %v505_v62 }
 0x11c   :  { %3576 = vmatpush1.bf16.msra.mxu1 %v8886_v8  ;;  %3607 = vmatprep.mubr.bf16.mxu1 %v9988_v53  ;;  %v497_v5 = vld [vmem:[#allocation5 + $0xbe8] sm:$0xff]  ;;  %v8702_v8 = vcombine.low %v373_v59, %v377_v60 }
 0x11d   :  { %3577 = vmatprep.subr.bf16.mxu1 %v8879_v11  ;;  %v621_v6 = vld [vmem:[#allocation5 + $0xfc8] sm:$0xff]  ;;  %v8823_v11 = vcombine.high %v493_v4, %v497_v5 }
 0x11e   :  { %3537 = vmatpush1.bf16.msra.mxu0 %v8750_v17  ;;  %v625_v7 = vld [vmem:[#allocation5 + $0xfe8] sm:$0xff] }
 0x11f   :  { %3538 = vmatprep.subr.bf16.mxu0 %v8743_v19  ;;  %v8951_v12 = vcombine.high %v621_v6, %v625_v7  ;;  %v485_v14 = vld [vmem:[#allocation5 + $0xb88] sm:$0xff]  ;;  %v8950_v19 = vcombine.low %v621_v6, %v625_v7 }
 0x120   :  { %3578 = vmatpush1.bf16.msra.mxu1 %v8878_v18  ;;  %v489_v15 = vld [vmem:[#allocation5 + $0xba8] sm:$0xff]  ;;  %v8822_v18 = vcombine.low %v493_v4, %v497_v5 }
 0x121   :  { %3579 = vmatprep.subr.bf16.mxu1 %v8871_v20  ;;  %v613_v16 = vld [vmem:[#allocation5 + $0xf88] sm:$0xff]  ;;  %v8815_v20 = vcombine.high %v485_v14, %v489_v15 }
 0x122   :  { %3539 = vmatpush1.bf16.msra.mxu0 %v8742_v26  ;;  %v617_v17 = vld [vmem:[#allocation5 + $0xfa8] sm:$0xff] }
 0x123   :  { %3540 = vmatprep.subr.bf16.mxu0 %v8735_v29  ;;  %v8943_v21 = vcombine.high %v613_v16, %v617_v17  ;;  %v477_v22 = vld [vmem:[#allocation5 + $0xb48] sm:$0xff]  ;;  %v8942_v29 = vcombine.low %v613_v16, %v617_v17  ;;  %v178_v16 = vld [vmem:[#allocation5 + $0x1f0] sm:$0xff] }
 0x124   :  { %3580 = vmatpush1.bf16.msra.mxu1 %v8870_v27  ;;  %v481_v24 = vld [vmem:[#allocation5 + $0xb68] sm:$0xff]  ;;  %v8814_v27 = vcombine.low %v485_v14, %v489_v15  ;;  %v174_v15 = vld [vmem:[#allocation5 + $0x1d0] sm:$0xff] }
 0x125   :  { %3581 = vmatprep.subr.bf16.mxu1 %v8863_v30  ;;  %v605_v25 = vld [vmem:[#allocation5 + $0xf48] sm:$0xff]  ;;  %v8807_v30 = vcombine.high %v477_v22, %v481_v24  ;;  %v302_v17 = vld [vmem:[#allocation5 + $0x5d0] sm:$0xff] }
 0x126   :  { %3541 = vmatpush1.bf16.msra.mxu0 %v8734_v36  ;;  %v609_v26 = vld [vmem:[#allocation5 + $0xf68] sm:$0xff] }
 0x127   :  { %3542 = vmatprep.subr.bf16.mxu0 %v8727_v38  ;;  %v8935_v31 = vcombine.high %v605_v25, %v609_v26  ;;  %v469_v63 = vld [vmem:[#allocation5 + $0xb08] sm:$0xff]  ;;  %v8934_v38 = vcombine.low %v605_v25, %v609_v26  ;;  %v636_v26 = vsub.s32 1, %v9946_v43 }
 0x128   :  { %3582 = vmatpush1.bf16.msra.mxu1 %v8862_v37  ;;  %v473_v34 = vld [vmem:[#allocation5 + $0xb28] sm:$0xff]  ;;  %v8806_v37 = vcombine.low %v477_v22, %v481_v24  ;;  %v10006_v22 = vld [vmem:[#allocation7] sm:$0xff]  ;;  %v8505_v24 = vcombine.high %v174_v15, %v178_v16 }
 0x129   :  { %3583 = vmatprep.subr.bf16.mxu1 %v8855_v39  ;;  %v597_v35 = vld [vmem:[#allocation5 + $0xf08] sm:$0xff]  ;;  %v8799_v39 = vcombine.high %v469_v63, %v473_v34 }
 0x12a   :  { %3543 = vmatpush1.bf16.msra.mxu0 %v8726_v45  ;;  %v601_v36 = vld [vmem:[#allocation5 + $0xf28] sm:$0xff] }
 0x12b   :  { %3544 = vmatprep.subr.bf16.mxu0 %v8719_v47  ;;  %v8927_v40 = vcombine.high %v597_v35, %v601_v36  ;;  %v461_v41 = vld [vmem:[#allocation5 + $0xac8] sm:$0xff]  ;;  %v8926_v47 = vcombine.low %v597_v35, %v601_v36 }
 0x12c   :  { %3584 = vmatpush1.bf16.msra.mxu1 %v8854_v46  ;;  %v465_v42 = vld [vmem:[#allocation5 + $0xae8] sm:$0xff]  ;;  %v8798_v46 = vcombine.low %v469_v63, %v473_v34  ;;  %v8504_v34 = vcombine.low %v174_v15, %v178_v16 }
 0x12d   :  { %3585 = vmatprep.subr.bf16.mxu1 %v8847_v48  ;;  %v589_v44 = vld [vmem:[#allocation5 + $0xec8] sm:$0xff]  ;;  %v8791_v48 = vcombine.high %v461_v41, %v465_v42 }
 0x12e   :  { %3545 = vmatpush1.bf16.msra.mxu0 %v8718_v55  ;;  %v593_v45 = vld [vmem:[#allocation5 + $0xee8] sm:$0xff] }
 0x12f   :  { %3546 = vmatprep.subr.bf16.mxu0 %v8711_v57  ;;  %v8919_v49 = vcombine.high %v589_v44, %v593_v45  ;;  %v453_v51 = vld [vmem:[#allocation5 + $0xa88] sm:$0xff]  ;;  %v8918_v57 = vcombine.low %v589_v44, %v593_v45  ;;  %v290_v44 = vld [vmem:[#allocation5 + $0x570] sm:$0xff] }
 0x130   :  { %3586 = vmatpush1.bf16.msra.mxu1 %v8846_v56  ;;  %v457_v52 = vld [vmem:[#allocation5 + $0xaa8] sm:$0xff]  ;;  %v8790_v56 = vcombine.low %v461_v41, %v465_v42  ;;  %v286_v42 = vld [vmem:[#allocation5 + $0x550] sm:$0xff] }
 0x131   :  { %3587 = vmatprep.subr.bf16.mxu1 %v8839_v58  ;;  %v581_v54 = vld [vmem:[#allocation5 + $0xe88] sm:$0xff]  ;;  %v8783_v58 = vcombine.high %v453_v51, %v457_v52 }
 0x132   :  { %3547 = vmatpush1.bf16.msra.mxu0 %v8710_v0  ;;  %v585_v55 = vld [vmem:[#allocation5 + $0xea8] sm:$0xff] }
 0x133   :  { %3548 = vmatprep.subr.bf16.mxu0 %v8703_v2  ;;  %v8911_v59 = vcombine.high %v581_v54, %v585_v55  ;;  %v445_v60 = vld [vmem:[#allocation5 + $0xa48] sm:$0xff]  ;;  %v8910_v2 = vcombine.low %v581_v54, %v585_v55 }
 0x134   :  { %3588 = vmatpush1.bf16.msra.mxu1 %v8838_v1  ;;  %v449_v61 = vld [vmem:[#allocation5 + $0xa68] sm:$0xff]  ;;  %v8782_v1 = vcombine.low %v453_v51, %v457_v52 }
 0x135   :  { %3589 = vmatprep.subr.bf16.mxu1 %v8831_v3  ;;  %v573_v62 = vld [vmem:[#allocation5 + $0xe48] sm:$0xff]  ;;  %v8775_v3 = vcombine.high %v445_v60, %v449_v61 }
 0x136   :  { %3549 = vmatpush1.bf16.msra.mxu0 %v8702_v8  ;;  %v577_v0 = vld [vmem:[#allocation5 + $0xe68] sm:$0xff] }
 0x137   :  { %3550 = vmatprep.subr.bf16.mxu0 %v8823_v11  ;;  %v8903_v4 = vcombine.high %v573_v62, %v577_v0  ;;  %v437_v5 = vld [vmem:[#allocation5 + $0xa08] sm:$0xff]  ;;  %v8902_v11 = vcombine.low %v573_v62, %v577_v0 }
 0x138   :  { %3590 = vmatpush1.bf16.msra.mxu1 %v8830_v10  ;;  %v441_v6 = vld [vmem:[#allocation5 + $0xa28] sm:$0xff]  ;;  %v8774_v10 = vcombine.low %v445_v60, %v449_v61  ;;  %v278_v60 = vld [vmem:[#allocation5 + $0x510] sm:$0xff] }
 0x139   :  { %3591 = vmatprep.subr.bf16.mxu1 %v8951_v12  ;;  %v565_v7 = vld [vmem:[#allocation5 + $0xe08] sm:$0xff]  ;;  %v8767_v12 = vcombine.high %v437_v5, %v441_v6  ;;  %v282_v61 = vld [vmem:[#allocation5 + $0x530] sm:$0xff] }
 0x13a   :  { %3551 = vmatpush2.bf16.msra.mxu0 %v8822_v18  ;;  %v569_v8 = vld [vmem:[#allocation5 + $0xe28] sm:$0xff]  ;;  %v306_v18 = vld [vmem:[#allocation5 + $0x5f0] sm:$0xff] }
 0x13b   :  { %3552 = vmatprep.subr.bf16.mxu0 %v8815_v20  ;;  %v8895_v14 = vcombine.high %v565_v7, %v569_v8  ;;  %v632_v20 = vsub.s32 0, %v9946_v43  ;;  %v8633_v25 = vcombine.high %v302_v17, %v306_v18  ;;  %v8632_v35 = vcombine.low %v302_v17, %v306_v18  ;;  %v134_v17 = vld [vmem:[#allocation5 + $0x90] sm:$0xff] }
 0x13c   :  { %3592 = vmatpush2.bf16.msra.mxu1 %v8950_v19  ;;  %v8766_v19 = vcombine.low %v437_v5, %v441_v6  ;;  %v8609_v6 = vcombine.high %v278_v60, %v282_v61  ;;  %v138_v18 = vld [vmem:[#allocation5 + $0xb0] sm:$0xff] }
 0x13d   :  { %3593 = vmatprep.subr.bf16.mxu1 %v8943_v21  ;;  %v8894_v21 = vcombine.low %v565_v7, %v569_v8  ;;  %v633_v63 = vrot.slane %v10006_v22, %v632_v20  ;;  %v142_v7 = vld [vmem:[#allocation5 + $0xd0] sm:$0xff] }
 0x13e   :  { %3553 = vmatpush2.bf16.msra.mxu0 %v8814_v27  ;;  %v166_v27 = vld [vmem:[#allocation5 + $0x190] sm:$0xff] }
 0x13f   :  { %3554 = vmatprep.subr.bf16.mxu0 %v8807_v30  ;;  %v294_v30 = vld [vmem:[#allocation5 + $0x590] sm:$0xff] }
 0x140   :  { %3594 = vmatpush2.bf16.msra.mxu1 %v8942_v29  ;;  %v170_v29 = vld [vmem:[#allocation5 + $0x1b0] sm:$0xff] }
 0x141   :  { %3595 = vmatprep.subr.bf16.mxu1 %v8935_v31  ;;  %v298_v31 = vld [vmem:[#allocation5 + $0x5b0] sm:$0xff]  ;;  %v8497_v36 = vcombine.high %v166_v27, %v170_v29 }
 0x142   :  { %3555 = vmatpush2.bf16.msra.mxu0 %v8806_v37  ;;  %v637_v37 = vrot.slane %v10006_v22, %v636_v26  ;;  %v146_v8 = vld [vmem:[#allocation5 + $0xf0] sm:$0xff] }
 0x143   :  { %3556 = vmatprep.subr.bf16.mxu0 %v8799_v39  ;;  %v158_v39 = vld [vmem:[#allocation5 + $0x150] sm:$0xff]  ;;  %v8473_v15 = vcombine.high %v142_v7, %v146_v8 }
 0x144   :  { %3596 = vmatpush2.bf16.msra.mxu1 %v8934_v38  ;;  %v8625_v38 = vcombine.high %v294_v30, %v298_v31 }
 0x145   :  { %3597 = vmatprep.subr.bf16.mxu1 %v8927_v40  ;;  %v162_v40 = vld [vmem:[#allocation5 + $0x170] sm:$0xff] }
 0x146   :  { %3557 = vmatpush2.bf16.msra.mxu0 %v8798_v46  ;;  %v8489_v51 = vcombine.high %v158_v39, %v162_v40 }
 0x147   :  { %3558 = vmatprep.subr.bf16.mxu0 %v8791_v48 }
 0x148   :  { %3598 = vmatpush2.bf16.msra.mxu1 %v8926_v47  ;;  %v8496_v47 = vcombine.low %v166_v27, %v170_v29  ;;  %v8465_v27 = vcombine.high %v134_v17, %v138_v18 }
 0x149   :  { %3599 = vmatprep.subr.bf16.mxu1 %v8919_v49  ;;  %v8624_v49 = vcombine.low %v294_v30, %v298_v31  ;;  %v126_v30 = vld [vmem:[#allocation5 + $0x50] sm:$0xff] }
 0x14a   :  { %3559 = vmatpush2.bf16.msra.mxu0 %v8790_v56  ;;  %v8617_v56 = vcombine.high %v286_v42, %v290_v44  ;;  %v130_v31 = vld [vmem:[#allocation5 + $0x70] sm:$0xff] }
 0x14b   :  { %3560 = vmatprep.subr.bf16.mxu0 %v8783_v58  ;;  %v154_v58 = vld [vmem:[#allocation5 + $0x130] sm:$0xff] }
 0x14c   :  { %3600 = vmatpush2.bf16.msra.mxu1 %v8918_v57  ;;  %v150_v57 = vld [vmem:[#allocation5 + $0x110] sm:$0xff] }
 0x14d   :  { %3601 = vmatprep.subr.bf16.mxu1 %v8911_v59 }
 0x14e   :  { %3561 = vmatpush2.bf16.msra.mxu0 %v8782_v1  ;;  %v8488_v1 = vcombine.low %v158_v39, %v162_v40  ;;  %v118_v39 = vld [vmem:[#allocation5 + $0x10] sm:$0xff] }
 0x14f   :  { %3562 = vmatprep.subr.bf16.mxu0 %v8775_v3  ;;  %v8616_v3 = vcombine.low %v286_v42, %v290_v44  ;;  %v122_v40 = vld [vmem:[#allocation5 + $0x30] sm:$0xff]  ;;  %v8456_v44 = vcombine.low %v126_v30, %v130_v31 }
 0x150   :  { %3602 = vmatpush2.bf16.msra.mxu1 %v8910_v2  ;;  %v250_v42 = vld [vmem:[#allocation5 + $0x430] sm:$0xff] }
 0x151   :  { %3603 = vmatprep.subr.bf16.mxu1 %v8903_v4  ;;  %v8481_v4 = vcombine.high %v150_v57, %v154_v58 }
 0x152   :  { %3563 = vmatpush2.bf16.msra.mxu0 %v8774_v10  ;;  %v270_v10 = vld [vmem:[#allocation5 + $0x4d0] sm:$0xff] }
 0x153   :  { %3564 = vmatprep.subr.bf16.mxu0 %v8767_v12  ;;  %v8480_v12 = vcombine.low %v150_v57, %v154_v58 }
 0x154   :  { %3604 = vmatpush2.bf16.msra.mxu1 %v8902_v11  ;;  %v274_v11 = vld [vmem:[#allocation5 + $0x4f0] sm:$0xff] }
 0x155   :  { %3605 = vmatprep.subr.bf16.mxu1 %v8895_v14  ;;  %v8608_v14 = vcombine.low %v278_v60, %v282_v61  ;;  %v8601_v16 = vcombine.high %v270_v10, %v274_v11  ;;  %v234_v60 = vld [vmem:[#allocation5 + $0x3b0] sm:$0xff] }
 0x156   :  { %3565 = vmatpush2.bf16.msra.mxu0 %v8766_v19  ;;  %v262_v19 = vld [vmem:[#allocation5 + $0x490] sm:$0xff] }
 0x157   :  { %3616 = vmatprep.subr.bf16.mxu0 %v8505_v24  ;;  %v8472_v24 = vcombine.low %v142_v7, %v146_v8  ;;  %v358_v61 = vld [vmem:[#allocation5 + $0x790] sm:$0xff] }
 0x158   :  { %3606 = vmatpush2.bf16.msra.mxu1 %v8894_v21  ;;  %v266_v21 = vld [vmem:[#allocation5 + $0x4b0] sm:$0xff] }
 0x159   :  { %3657 = vmatprep.subr.bf16.mxu1 %v8633_v25  ;;  %v3322_v41 = vpop.f32.mrf.mxu0  ;;  %3567 = vmatmul.mubr.bf16.vlgmr.msra.gmra.mxu0 %v9970_v32  ;;  %v8600_v25 = vcombine.low %v270_v10, %v274_v11  ;;  %v8593_v29 = vcombine.high %v262_v19, %v266_v21  ;;  %v350_v7 = vld [vmem:[#allocation5 + $0x750] sm:$0xff] }
 0x15a   :  { %v3323_v45 = vadd.f32 %v3322_v41, %v633_v63  ;;  %3617 = vmatpush1.bf16.msra.mxu0 %v8504_v34  ;;  %3648 = vmatprep.mubr.bf16.mxu0 %v9957_v9  ;;  %v254_v63 = vld [vmem:[#allocation5 + $0x450] sm:$0xff] }
 0x15b   :  { %v3363_v46 = vpop.f32.mrf.mxu1  ;;  %3608 = vmatmul.mubr.bf16.vlgmr.msra.gmra.mxu1 %v9995_v50  ;;  %v3324_v48 = vpop.f32.mrf.mxu0  ;;  %3618 = vmatprep.subr.bf16.mxu0 %v8497_v36  ;;  %v258_v34 = vld [vmem:[#allocation5 + $0x470] sm:$0xff]  ;;  %v8592_v36 = vcombine.low %v262_v19, %v266_v21 }
 0x15c   :  { %3658 = vmatpush1.bf16.msra.mxu1 %v8632_v35  ;;  %v10017_v52 = vadd.f32 %v3363_v46, %v3323_v45  ;;  %v3325_v54 = vadd.f32 %v3324_v48, %v637_v37  ;;  %3689 = vmatprep.mubr.bf16.mxu1 %v9962_v13  ;;  %v8464_v35 = vcombine.low %v134_v17, %v138_v18  ;;  %v246_v41 = vld [vmem:[#allocation5 + $0x410] sm:$0xff] }
 0x15d   :  { %v3365_v55 = vpop.f32.mrf.mxu1  ;;  %3659 = vmatprep.subr.bf16.mxu1 %v8625_v38  ;;  %v3326_v59 = vpop.f32.mrf.mxu0  ;;  %v8457_v37 = vcombine.high %v126_v30, %v130_v31  ;;  %v8585_v38 = vcombine.high %v254_v63, %v258_v34  ;;  %v8584_v45 = vcombine.low %v254_v63, %v258_v34  ;;  %v8449_v46 = vcombine.high %v118_v39, %v122_v40  ;;  %v238_v48 = vld [vmem:[#allocation5 + $0x3d0] sm:$0xff] }
 0x15e   :  { %v10021_v62 = vadd.f32 %v3365_v55, %v3325_v54  ;;  %3619 = vmatpush1.bf16.msra.mxu0 %v8496_v47  ;;  %v8577_v47 = vcombine.high %v246_v41, %v250_v42  ;;  %v370_v54 = vld [vmem:[#allocation5 + $0x7f0] sm:$0xff]  ;;  %v8448_v55 = vcombine.low %v118_v39, %v122_v40 }
 0x15f   :  { %v3367_v0 = vpop.f32.mrf.mxu1  ;;  %v3327_v2 = vpop.f32.mrf.mxu0  ;;  %3620 = vmatprep.subr.bf16.mxu0 %v8489_v51  ;;  %v366_v51 = vld [vmem:[#allocation5 + $0x7d0] sm:$0xff] }
 0x160   :  { %3660 = vmatpush1.bf16.msra.mxu1 %v8624_v49  ;;  %v242_v49 = vld [vmem:[#allocation5 + $0x3f0] sm:$0xff]  ;;  %v8697_v58 = vcombine.high %v366_v51, %v370_v54  ;;  %v8696_v2 = vcombine.low %v366_v51, %v370_v54 }
 0x161   :  { %v3368_v5 = vpop.f32.mrf.mxu1  ;;  %3661 = vmatprep.subr.bf16.mxu1 %v8617_v56  ;;  %v8576_v56 = vcombine.low %v246_v41, %v250_v42  ;;  %v8569_v57 = vcombine.high %v238_v48, %v242_v49  ;;  %v230_v59 = vld [vmem:[#allocation5 + $0x390] sm:$0xff] }
 0x162   :  { %3621 = vmatpush1.bf16.msra.mxu0 %v8488_v1  ;;  %v362_v0 = vld [vmem:[#allocation5 + $0x7b0] sm:$0xff]  ;;  %v8568_v1 = vcombine.low %v238_v48, %v242_v49  ;;  %v8560_v10 = vcombine.low %v230_v59, %v234_v60 }
 0x163   :  { %3622 = vmatprep.subr.bf16.mxu0 %v8481_v4  ;;  %v8689_v4 = vcombine.high %v358_v61, %v362_v0  ;;  %v222_v5 = vld [vmem:[#allocation5 + $0x350] sm:$0xff]  ;;  %v8688_v11 = vcombine.low %v358_v61, %v362_v0 }
 0x164   :  { %3662 = vmatpush1.bf16.msra.mxu1 %v8616_v3  ;;  %v8561_v3 = vcombine.high %v230_v59, %v234_v60  ;;  %v354_v8 = vld [vmem:[#allocation5 + $0x770] sm:$0xff] }
 0x165   :  { %3663 = vmatprep.subr.bf16.mxu1 %v8609_v6  ;;  %v226_v6 = vld [vmem:[#allocation5 + $0x370] sm:$0xff]  ;;  %v8680_v21 = vcombine.low %v350_v7, %v354_v8 }
 0x166   :  { %3623 = vmatpush1.bf16.msra.mxu0 %v8480_v12  ;;  %v8553_v12 = vcombine.high %v222_v5, %v226_v6  ;;  %v342_v17 = vld [vmem:[#allocation5 + $0x710] sm:$0xff]  ;;  %v8552_v19 = vcombine.low %v222_v5, %v226_v6 }
 0x167   :  { %3624 = vmatprep.subr.bf16.mxu0 %v8473_v15  ;;  %v214_v15 = vld [vmem:[#allocation5 + $0x310] sm:$0xff] }
 0x168   :  { %3664 = vmatpush1.bf16.msra.mxu1 %v8608_v14  ;;  %v8681_v14 = vcombine.high %v350_v7, %v354_v8  ;;  %v346_v18 = vld [vmem:[#allocation5 + $0x730] sm:$0xff] }
 0x169   :  { %3665 = vmatprep.subr.bf16.mxu1 %v8601_v16  ;;  %v218_v16 = vld [vmem:[#allocation5 + $0x330] sm:$0xff]  ;;  %v8672_v34 = vcombine.low %v342_v17, %v346_v18 }
 0x16a   :  { %3625 = vmatpush1.bf16.msra.mxu0 %v8472_v24  ;;  %v8545_v24 = vcombine.high %v214_v15, %v218_v16  ;;  %v334_v30 = vld [vmem:[#allocation5 + $0x6d0] sm:$0xff]  ;;  %v8544_v63 = vcombine.low %v214_v15, %v218_v16 }
 0x16b   :  { %3626 = vmatprep.subr.bf16.mxu0 %v8465_v27  ;;  %v206_v27 = vld [vmem:[#allocation5 + $0x2d0] sm:$0xff] }
 0x16c   :  { %3666 = vmatpush1.bf16.msra.mxu1 %v8600_v25  ;;  %v8673_v25 = vcombine.high %v342_v17, %v346_v18  ;;  %v338_v31 = vld [vmem:[#allocation5 + $0x6f0] sm:$0xff] }
 0x16d   :  { %3667 = vmatprep.subr.bf16.mxu1 %v8593_v29  ;;  %v210_v29 = vld [vmem:[#allocation5 + $0x2f0] sm:$0xff]  ;;  %v8664_v42 = vcombine.low %v334_v30, %v338_v31 }
 0x16e   :  { %3627 = vmatpush1.bf16.msra.mxu0 %v8464_v35  ;;  %v8537_v35 = vcombine.high %v206_v27, %v210_v29  ;;  %v326_v39 = vld [vmem:[#allocation5 + $0x690] sm:$0xff]  ;;  %v8536_v41 = vcombine.low %v206_v27, %v210_v29 }
 0x16f   :  { %3628 = vmatprep.subr.bf16.mxu0 %v8457_v37  ;;  %v198_v37 = vld [vmem:[#allocation5 + $0x290] sm:$0xff] }
 0x170   :  { %3668 = vmatpush1.bf16.msra.mxu1 %v8592_v36  ;;  %v8665_v36 = vcombine.high %v334_v30, %v338_v31  ;;  %v330_v40 = vld [vmem:[#allocation5 + $0x6b0] sm:$0xff] }
 0x171   :  { %3669 = vmatprep.subr.bf16.mxu1 %v8585_v38  ;;  %v202_v38 = vld [vmem:[#allocation5 + $0x2b0] sm:$0xff]  ;;  %v8656_v54 = vcombine.low %v326_v39, %v330_v40 }
 0x172   :  { %3629 = vmatpush1.bf16.msra.mxu0 %v8456_v44  ;;  %v8529_v44 = vcombine.high %v198_v37, %v202_v38  ;;  %v318_v48 = vld [vmem:[#allocation5 + $0x650] sm:$0xff]  ;;  %v8528_v51 = vcombine.low %v198_v37, %v202_v38 }
 0x173   :  { %3630 = vmatprep.subr.bf16.mxu0 %v8449_v46  ;;  %v190_v46 = vld [vmem:[#allocation5 + $0x250] sm:$0xff] }
 0x174   :  { %3670 = vmatpush1.bf16.msra.mxu1 %v8584_v45  ;;  %v8657_v45 = vcombine.high %v326_v39, %v330_v40  ;;  %v322_v49 = vld [vmem:[#allocation5 + $0x670] sm:$0xff] }
 0x175   :  { %3671 = vmatprep.subr.bf16.mxu1 %v8577_v47  ;;  %v194_v47 = vld [vmem:[#allocation5 + $0x270] sm:$0xff]  ;;  %v8648_v0 = vcombine.low %v318_v48, %v322_v49 }
 0x176   :  { %3631 = vmatpush1.bf16.msra.mxu0 %v8448_v55  ;;  %v8521_v55 = vcombine.high %v190_v46, %v194_v47  ;;  %v310_v59 = vld [vmem:[#allocation5 + $0x610] sm:$0xff]  ;;  %v8520_v61 = vcombine.low %v190_v46, %v194_v47 }
 0x177   :  { %3632 = vmatprep.subr.bf16.mxu0 %v8569_v57  ;;  %v182_v57 = vld [vmem:[#allocation5 + $0x210] sm:$0xff] }
 0x178   :  { %3672 = vmatpush1.bf16.msra.mxu1 %v8576_v56  ;;  %v8649_v56 = vcombine.high %v318_v48, %v322_v49  ;;  %v314_v60 = vld [vmem:[#allocation5 + $0x630] sm:$0xff] }
 0x179   :  { %3673 = vmatprep.subr.bf16.mxu1 %v8697_v58  ;;  %v186_v58 = vld [vmem:[#allocation5 + $0x230] sm:$0xff]  ;;  %v8640_v8 = vcombine.low %v310_v59, %v314_v60 }
 0x17a   :  { %3633 = vmatpush2.bf16.msra.mxu0 %v8568_v1  ;;  %v8513_v1 = vcombine.high %v182_v57, %v186_v58  ;;  %v558_v5 = vld [vmem:[#allocation5 + $0xdd0] sm:$0xff]  ;;  %v8512_v7 = vcombine.low %v182_v57, %v186_v58 }
 0x17b   :  { %3634 = vmatprep.subr.bf16.mxu0 %v8561_v3  ;;  %v430_v3 = vld [vmem:[#allocation5 + $0x9d0] sm:$0xff] }
 0x17c   :  { %3674 = vmatpush2.bf16.msra.mxu1 %v8696_v2  ;;  %v8641_v2 = vcombine.high %v310_v59, %v314_v60  ;;  %v562_v6 = vld [vmem:[#allocation5 + $0xdf0] sm:$0xff] }
 0x17d   :  { %3675 = vmatprep.subr.bf16.mxu1 %v8689_v4  ;;  %v434_v4 = vld [vmem:[#allocation5 + $0x9f0] sm:$0xff]  ;;  %v8888_v18 = vcombine.low %v558_v5, %v562_v6 }
 0x17e   :  { %3635 = vmatpush2.bf16.msra.mxu0 %v8560_v10  ;;  %v8761_v10 = vcombine.high %v430_v3, %v434_v4  ;;  %v550_v15 = vld [vmem:[#allocation5 + $0xd90] sm:$0xff]  ;;  %v8760_v17 = vcombine.low %v430_v3, %v434_v4 }
 0x17f   :  { %3636 = vmatprep.subr.bf16.mxu0 %v8553_v12  ;;  %v422_v12 = vld [vmem:[#allocation5 + $0x990] sm:$0xff] }
 0x180   :  { %3676 = vmatpush2.bf16.msra.mxu1 %v8688_v11  ;;  %v8889_v11 = vcombine.high %v558_v5, %v562_v6  ;;  %v554_v16 = vld [vmem:[#allocation5 + $0xdb0] sm:$0xff] }
 0x181   :  { %3677 = vmatprep.subr.bf16.mxu1 %v8681_v14  ;;  %v426_v14 = vld [vmem:[#allocation5 + $0x9b0] sm:$0xff] }
 0x182   :  { %3637 = vmatpush2.bf16.msra.mxu0 %v8552_v19  ;;  %v8753_v19 = vcombine.high %v422_v12, %v426_v14  ;;  %v542_v29 = vld [vmem:[#allocation5 + $0xd50] sm:$0xff] }
 0x183   :  { %3638 = vmatprep.subr.bf16.mxu0 %v8545_v24  ;;  %v414_v24 = vld [vmem:[#allocation5 + $0x950] sm:$0xff] }
 0x184   :  { %3678 = vmatpush2.bf16.msra.mxu1 %v8680_v21  ;;  %v8881_v21 = vcombine.high %v550_v15, %v554_v16  ;;  %v546_v30 = vld [vmem:[#allocation5 + $0xd70] sm:$0xff] }
 0x185   :  { %3679 = vmatprep.subr.bf16.mxu1 %v8673_v25  ;;  %v418_v25 = vld [vmem:[#allocation5 + $0x970] sm:$0xff] }
 0x186   :  { %3639 = vmatpush2.bf16.msra.mxu0 %v8544_v63  ;;  %v8745_v37 = vcombine.high %v414_v24, %v418_v25  ;;  %v538_v46 = vld [vmem:[#allocation5 + $0xd30] sm:$0xff]  ;;  %v8744_v49 = vcombine.low %v414_v24, %v418_v25 }
 0x187   :  { %3640 = vmatprep.subr.bf16.mxu0 %v8537_v35  ;;  %v398_v57 = vld [vmem:[#allocation5 + $0x8d0] sm:$0xff] }
 0x188   :  { %3680 = vmatpush2.bf16.msra.mxu1 %v8672_v34  ;;  %v8752_v34 = vcombine.low %v422_v12, %v426_v14  ;;  %v402_v58 = vld [vmem:[#allocation5 + $0x8f0] sm:$0xff] }
 0x189   :  { %3681 = vmatprep.subr.bf16.mxu1 %v8665_v36  ;;  %v8880_v36 = vcombine.low %v550_v15, %v554_v16  ;;  %v526_v59 = vld [vmem:[#allocation5 + $0xcd0] sm:$0xff] }
 0x18a   :  { %3641 = vmatpush2.bf16.msra.mxu0 %v8536_v41  ;;  %v8873_v41 = vcombine.high %v542_v29, %v546_v30  ;;  %v530_v60 = vld [vmem:[#allocation5 + $0xcf0] sm:$0xff] }
 0x18b   :  { %3642 = vmatprep.subr.bf16.mxu0 %v8529_v44  ;;  %v410_v44 = vld [vmem:[#allocation5 + $0x930] sm:$0xff] }
 0x18c   :  { %3682 = vmatpush2.bf16.msra.mxu1 %v8664_v42  ;;  %v406_v42 = vld [vmem:[#allocation5 + $0x910] sm:$0xff] }
 0x18d   :  { %3683 = vmatprep.subr.bf16.mxu1 %v8657_v45  ;;  %v534_v45 = vld [vmem:[#allocation5 + $0xd10] sm:$0xff] }
 0x18e   :  { %3643 = vmatpush2.bf16.msra.mxu0 %v8528_v51  ;;  %v390_v3 = vld [vmem:[#allocation5 + $0x890] sm:$0xff] }
 0x18f   :  { %3644 = vmatprep.subr.bf16.mxu0 %v8521_v55  ;;  %v394_v4 = vld [vmem:[#allocation5 + $0x8b0] sm:$0xff] }
 0x190   :  { %3684 = vmatpush2.bf16.msra.mxu1 %v8656_v54  ;;  %v8737_v54 = vcombine.high %v406_v42, %v410_v44  ;;  %v518_v5 = vld [vmem:[#allocation5 + $0xc90] sm:$0xff] }
 0x191   :  { %3685 = vmatprep.subr.bf16.mxu1 %v8649_v56  ;;  %v8865_v56 = vcombine.high %v534_v45, %v538_v46  ;;  %v522_v6 = vld [vmem:[#allocation5 + $0xcb0] sm:$0xff] }
 0x192   :  { %3645 = vmatpush2.bf16.msra.mxu0 %v8520_v61  ;;  %v8736_v61 = vcombine.low %v406_v42, %v410_v44  ;;  %v382_v12 = vld [vmem:[#allocation5 + $0x850] sm:$0xff] }
 0x193   :  { %3646 = vmatprep.subr.bf16.mxu0 %v8513_v1  ;;  %v8729_v1 = vcombine.high %v398_v57, %v402_v58  ;;  %v386_v14 = vld [vmem:[#allocation5 + $0x870] sm:$0xff] }
 0x194   :  { %3686 = vmatpush2.bf16.msra.mxu1 %v8648_v0  ;;  %v8864_v0 = vcombine.low %v534_v45, %v538_v46  ;;  %v510_v15 = vld [vmem:[#allocation5 + $0xc50] sm:$0xff] }
 0x195   :  { %3687 = vmatprep.subr.bf16.mxu1 %v8641_v2  ;;  %v8857_v2 = vcombine.high %v526_v59, %v530_v60  ;;  %v514_v16 = vld [vmem:[#allocation5 + $0xc70] sm:$0xff] }
 0x196   :  { %3647 = vmatpush2.bf16.msra.mxu0 %v8512_v7  ;;  %v8728_v7 = vcombine.low %v398_v57, %v402_v58  ;;  %v374_v24 = vld [vmem:[#allocation5 + $0x810] sm:$0xff] }
 0x197   :  { %3698 = vmatprep.subr.bf16.mxu0 %v8761_v10  ;;  %v8721_v10 = vcombine.high %v390_v3, %v394_v4  ;;  %v378_v25 = vld [vmem:[#allocation5 + $0x830] sm:$0xff] }
 0x198   :  { %3688 = vmatpush2.bf16.msra.mxu1 %v8640_v8  ;;  %v8856_v8 = vcombine.low %v526_v59, %v530_v60  ;;  %v490_v45 = vld [vmem:[#allocation5 + $0xbb0] sm:$0xff] }
 0x199   :  { %3739 = vmatprep.subr.bf16.mxu1 %v8889_v11  ;;  %v3404_v27 = vpop.f32.mrf.mxu0  ;;  %3649 = vmatmul.mubr.bf16.vlgmr.msra.gmra.mxu0 %v9976_v23  ;;  %v8849_v11 = vcombine.high %v518_v5, %v522_v6  ;;  %v614_v46 = vld [vmem:[#allocation5 + $0xf90] sm:$0xff] }
 0x19a   :  { %v3405_v31 = vadd.f32 %v3404_v27, %v10017_v52  ;;  %3699 = vmatpush1.bf16.msra.mxu0 %v8760_v17  ;;  %3730 = vmatprep.mubr.bf16.mxu0 %v9979_v33  ;;  %v8720_v17 = vcombine.low %v390_v3, %v394_v4  ;;  %v502_v27 = vld [vmem:[#allocation5 + $0xc10] sm:$0xff] }
 0x19b   :  { %v3445_v63 = vpop.f32.mrf.mxu1  ;;  %3690 = vmatmul.mubr.bf16.vlgmr.msra.gmra.mxu1 %v9983_v28  ;;  %v3406_v35 = vpop.f32.mrf.mxu0  ;;  %3700 = vmatprep.subr.bf16.mxu0 %v8753_v19  ;;  %v8713_v19 = vcombine.high %v382_v12, %v386_v14  ;;  %v606_v57 = vld [vmem:[#allocation5 + $0xf50] sm:$0xff] }
 0x19c   :  { %3740 = vmatpush1.bf16.msra.mxu1 %v8888_v18  ;;  %v10026_v38 = vadd.f32 %v3445_v63, %v3405_v31  ;;  %v3407_v39 = vadd.f32 %v3406_v35, %v10021_v62  ;;  %3771 = vmatprep.mubr.bf16.mxu1 %v9988_v53  ;;  %v8872_v62 = vcombine.low %v542_v29, %v546_v30  ;;  %v506_v29 = vld [vmem:[#allocation5 + $0xc30] sm:$0xff] }
 0x19d   :  { %v3447_v40 = vpop.f32.mrf.mxu1  ;;  %3741 = vmatprep.subr.bf16.mxu1 %v8881_v21  ;;  %v3408_v52 = vpop.f32.mrf.mxu0  ;;  %v8848_v18 = vcombine.low %v518_v5, %v522_v6  ;;  %v8841_v21 = vcombine.high %v510_v15, %v514_v16  ;;  %v8712_v30 = vcombine.low %v382_v12, %v386_v14  ;;  %v8840_v31 = vcombine.low %v510_v15, %v514_v16  ;;  %v494_v35 = vld [vmem:[#allocation5 + $0xbd0] sm:$0xff] }
 0x19e   :  { %v10031_v47 = vadd.f32 %v3447_v40, %v3407_v39  ;;  %3701 = vmatpush1.bf16.msra.mxu0 %v8752_v34  ;;  %v8705_v63 = vcombine.high %v374_v24, %v378_v25  ;;  %v8833_v34 = vcombine.high %v502_v27, %v506_v29  ;;  %v626_v39 = vld [vmem:[#allocation5 + $0xff0] sm:$0xff]  ;;  %v8704_v40 = vcombine.low %v374_v24, %v378_v25 }
 0x19f   :  { %v3449_v48 = vpop.f32.mrf.mxu1  ;;  %v3409_v51 = vpop.f32.mrf.mxu0  ;;  %3702 = vmatprep.subr.bf16.mxu0 %v8745_v37  ;;  %v622_v37 = vld [vmem:[#allocation5 + $0xfd0] sm:$0xff] }
 0x1a0   :  { %3742 = vmatpush1.bf16.msra.mxu1 %v8880_v36  ;;  %v498_v36 = vld [vmem:[#allocation5 + $0xbf0] sm:$0xff]  ;;  %v8953_v44 = vcombine.high %v622_v37, %v626_v39  ;;  %v8952_v51 = vcombine.low %v622_v37, %v626_v39 }
 0x1a1   :  { %v3450_v55 = vpop.f32.mrf.mxu1  ;;  %3743 = vmatprep.subr.bf16.mxu1 %v8873_v41  ;;  %v8832_v41 = vcombine.low %v502_v27, %v506_v29  ;;  %v8825_v42 = vcombine.high %v494_v35, %v498_v36  ;;  %v486_v52 = vld [vmem:[#allocation5 + $0xb90] sm:$0xff] }
 0x1a2   :  { %3703 = vmatpush1.bf16.msra.mxu0 %v8744_v49  ;;  %v618_v48 = vld [vmem:[#allocation5 + $0xfb0] sm:$0xff]  ;;  %v8824_v49 = vcombine.low %v494_v35, %v498_v36  ;;  %v8816_v59 = vcombine.low %v486_v52, %v490_v45 }
 0x1a3   :  { %3704 = vmatprep.subr.bf16.mxu0 %v8737_v54  ;;  %v8945_v54 = vcombine.high %v614_v46, %v618_v48  ;;  %v478_v55 = vld [vmem:[#allocation5 + $0xb50] sm:$0xff]  ;;  %v8944_v60 = vcombine.low %v614_v46, %v618_v48 }
 0x1a4   :  { %3744 = vmatpush1.bf16.msra.mxu1 %v8872_v62  ;;  %v8817_v62 = vcombine.high %v486_v52, %v490_v45  ;;  %v610_v58 = vld [vmem:[#allocation5 + $0xf70] sm:$0xff] }
 0x1a5   :  { %3745 = vmatprep.subr.bf16.mxu1 %v8865_v56  ;;  %v482_v56 = vld [vmem:[#allocation5 + $0xb70] sm:$0xff]  ;;  %v8936_v6 = vcombine.low %v606_v57, %v610_v58 }
 0x1a6   :  { %3705 = vmatpush1.bf16.msra.mxu0 %v8736_v61  ;;  %v8809_v61 = vcombine.high %v478_v55, %v482_v56  ;;  %v598_v3 = vld [vmem:[#allocation5 + $0xf10] sm:$0xff]  ;;  %v8808_v5 = vcombine.low %v478_v55, %v482_v56  ;;  %v303_v55 = vld [vmem:[#allocation5 + $0x5d8] sm:$0xff] }
 0x1a7   :  { %3706 = vmatprep.subr.bf16.mxu0 %v8729_v1  ;;  %v470_v1 = vld [vmem:[#allocation5 + $0xb10] sm:$0xff]  ;;  %v307_v56 = vld [vmem:[#allocation5 + $0x5f8] sm:$0xff] }
 0x1a8   :  { %3746 = vmatpush1.bf16.msra.mxu1 %v8864_v0  ;;  %v8937_v0 = vcombine.high %v606_v57, %v610_v58  ;;  %v602_v4 = vld [vmem:[#allocation5 + $0xf30] sm:$0xff]  ;;  %v640_v58 = vsub.s32 2, %v9946_v43 }
 0x1a9   :  { %3747 = vmatprep.subr.bf16.mxu1 %v8857_v2  ;;  %v474_v2 = vld [vmem:[#allocation5 + $0xb30] sm:$0xff]  ;;  %v8928_v16 = vcombine.low %v598_v3, %v602_v4 }
 0x1aa   :  { %3707 = vmatpush1.bf16.msra.mxu0 %v8728_v7  ;;  %v8801_v7 = vcombine.high %v470_v1, %v474_v2  ;;  %v590_v12 = vld [vmem:[#allocation5 + $0xed0] sm:$0xff]  ;;  %v8800_v15 = vcombine.low %v470_v1, %v474_v2  ;;  %v167_v1 = vld [vmem:[#allocation5 + $0x198] sm:$0xff] }
 0x1ab   :  { %3708 = vmatprep.subr.bf16.mxu0 %v8721_v10  ;;  %v462_v10 = vld [vmem:[#allocation5 + $0xad0] sm:$0xff]  ;;  %v171_v2 = vld [vmem:[#allocation5 + $0x1b8] sm:$0xff] }
 0x1ac   :  { %3748 = vmatpush1.bf16.msra.mxu1 %v8856_v8  ;;  %v8929_v8 = vcombine.high %v598_v3, %v602_v4  ;;  %v594_v14 = vld [vmem:[#allocation5 + $0xef0] sm:$0xff]  ;;  %v295_v3 = vld [vmem:[#allocation5 + $0x598] sm:$0xff] }
 0x1ad   :  { %3749 = vmatprep.subr.bf16.mxu1 %v8849_v11  ;;  %v466_v11 = vld [vmem:[#allocation5 + $0xaf0] sm:$0xff]  ;;  %v8920_v29 = vcombine.low %v590_v12, %v594_v14  ;;  %v299_v4 = vld [vmem:[#allocation5 + $0x5b8] sm:$0xff] }
 0x1ae   :  { %3709 = vmatpush1.bf16.msra.mxu0 %v8720_v17  ;;  %v8793_v17 = vcombine.high %v462_v10, %v466_v11  ;;  %v582_v24 = vld [vmem:[#allocation5 + $0xe90] sm:$0xff]  ;;  %v8792_v27 = vcombine.low %v462_v10, %v466_v11  ;;  %v8627_v11 = vcombine.high %v295_v3, %v299_v4 }
 0x1af   :  { %3710 = vmatprep.subr.bf16.mxu0 %v8713_v19  ;;  %v454_v19 = vld [vmem:[#allocation5 + $0xa90] sm:$0xff] }
 0x1b0   :  { %3750 = vmatpush1.bf16.msra.mxu1 %v8848_v18  ;;  %v8921_v18 = vcombine.high %v590_v12, %v594_v14  ;;  %v586_v25 = vld [vmem:[#allocation5 + $0xeb0] sm:$0xff]  ;;  %v159_v12 = vld [vmem:[#allocation5 + $0x158] sm:$0xff] }
 0x1b1   :  { %3751 = vmatprep.subr.bf16.mxu1 %v8841_v21  ;;  %v458_v21 = vld [vmem:[#allocation5 + $0xab0] sm:$0xff]  ;;  %v8912_v39 = vcombine.low %v582_v24, %v586_v25  ;;  %v163_v14 = vld [vmem:[#allocation5 + $0x178] sm:$0xff] }
 0x1b2   :  { %3711 = vmatpush1.bf16.msra.mxu0 %v8712_v30  ;;  %v8785_v30 = vcombine.high %v454_v19, %v458_v21  ;;  %v574_v35 = vld [vmem:[#allocation5 + $0xe50] sm:$0xff]  ;;  %v8784_v37 = vcombine.low %v454_v19, %v458_v21  ;;  %v8498_v21 = vcombine.low %v167_v1, %v171_v2 }
 0x1b3   :  { %3712 = vmatprep.subr.bf16.mxu0 %v8705_v63  ;;  %v446_v63 = vld [vmem:[#allocation5 + $0xa50] sm:$0xff] }
 0x1b4   :  { %3752 = vmatpush1.bf16.msra.mxu1 %v8840_v31  ;;  %v8913_v31 = vcombine.high %v582_v24, %v586_v25  ;;  %v578_v36 = vld [vmem:[#allocation5 + $0xe70] sm:$0xff]  ;;  %v8626_v25 = vcombine.low %v295_v3, %v299_v4  ;;  %v127_v4 = vld [vmem:[#allocation5 + $0x58] sm:$0xff] }
 0x1b5   :  { %3753 = vmatprep.subr.bf16.mxu1 %v8833_v34  ;;  %v450_v34 = vld [vmem:[#allocation5 + $0xa70] sm:$0xff]  ;;  %v8904_v48 = vcombine.low %v574_v35, %v578_v36 }
 0x1b6   :  { %3713 = vmatpush1.bf16.msra.mxu0 %v8704_v40  ;;  %v8777_v40 = vcombine.high %v446_v63, %v450_v34  ;;  %v566_v52 = vld [vmem:[#allocation5 + $0xe10] sm:$0xff]  ;;  %v8776_v46 = vcombine.low %v446_v63, %v450_v34  ;;  %v151_v63 = vld [vmem:[#allocation5 + $0x118] sm:$0xff] }
 0x1b7   :  { %3714 = vmatprep.subr.bf16.mxu0 %v8825_v42  ;;  %v438_v42 = vld [vmem:[#allocation5 + $0xa10] sm:$0xff]  ;;  %v155_v34 = vld [vmem:[#allocation5 + $0x138] sm:$0xff] }
 0x1b8   :  { %3754 = vmatpush1.bf16.msra.mxu1 %v8832_v41  ;;  %v8905_v41 = vcombine.high %v574_v35, %v578_v36  ;;  %v570_v45 = vld [vmem:[#allocation5 + $0xe30] sm:$0xff]  ;;  %v279_v36 = vld [vmem:[#allocation5 + $0x518] sm:$0xff] }
 0x1b9   :  { %3755 = vmatprep.subr.bf16.mxu1 %v8953_v44  ;;  %v442_v44 = vld [vmem:[#allocation5 + $0xa30] sm:$0xff] }
 0x1ba   :  { %3715 = vmatpush2.bf16.msra.mxu0 %v8824_v49  ;;  %v8769_v49 = vcombine.high %v438_v42, %v442_v44  ;;  %v8768_v57 = vcombine.low %v438_v42, %v442_v44 }
 0x1bb   :  { %3716 = vmatprep.subr.bf16.mxu0 %v8817_v62  ;;  %v175_v62 = vld [vmem:[#allocation5 + $0x1d8] sm:$0xff] }
 0x1bc   :  { %3756 = vmatpush2.bf16.msra.mxu1 %v8952_v51  ;;  %v8897_v51 = vcombine.high %v566_v52, %v570_v45 }
 0x1bd   :  { %3757 = vmatprep.subr.bf16.mxu1 %v8945_v54  ;;  %v179_v54 = vld [vmem:[#allocation5 + $0x1f8] sm:$0xff] }
 0x1be   :  { %3717 = vmatpush2.bf16.msra.mxu0 %v8816_v59  ;;  %v8896_v59 = vcombine.low %v566_v52, %v570_v45  ;;  %v8483_v52 = vcombine.high %v151_v63, %v155_v34 }
 0x1bf   :  { %3718 = vmatprep.subr.bf16.mxu0 %v8809_v61  ;;  %v8635_v61 = vcombine.high %v303_v55, %v307_v56 }
 0x1c0   :  { %3758 = vmatpush2.bf16.msra.mxu1 %v8944_v60  ;;  %v8507_v60 = vcombine.high %v175_v62, %v179_v54 }
 0x1c1   :  { %3759 = vmatprep.subr.bf16.mxu1 %v8937_v0  ;;  %v644_v0 = vsub.s32 3, %v9946_v43 }
 0x1c2   :  { %3719 = vmatpush2.bf16.msra.mxu0 %v8808_v5  ;;  %v641_v5 = vrot.slane %v10006_v22, %v640_v58 }
 0x1c3   :  { %3720 = vmatprep.subr.bf16.mxu0 %v8801_v7  ;;  %v8634_v7 = vcombine.low %v303_v55, %v307_v56  ;;  %v645_v10 = vrot.slane %v10006_v22, %v644_v0  ;;  %v135_v56 = vld [vmem:[#allocation5 + $0x98] sm:$0xff] }
 0x1c4   :  { %3760 = vmatpush2.bf16.msra.mxu1 %v8936_v6  ;;  %v8506_v6 = vcombine.low %v175_v62, %v179_v54  ;;  %v8482_v62 = vcombine.low %v151_v63, %v155_v34 }
 0x1c5   :  { %3761 = vmatprep.subr.bf16.mxu1 %v8929_v8  ;;  %v8499_v8 = vcombine.high %v167_v1, %v171_v2 }
 0x1c6   :  { %3721 = vmatpush2.bf16.msra.mxu0 %v8800_v15 }
 0x1c7   :  { %3722 = vmatprep.subr.bf16.mxu0 %v8793_v17  ;;  %v291_v17 = vld [vmem:[#allocation5 + $0x578] sm:$0xff] }
 0x1c8   :  { %3762 = vmatpush2.bf16.msra.mxu1 %v8928_v16  ;;  %v287_v16 = vld [vmem:[#allocation5 + $0x558] sm:$0xff] }
 0x1c9   :  { %3763 = vmatprep.subr.bf16.mxu1 %v8921_v18  ;;  %v8618_v44 = vcombine.low %v287_v16, %v291_v17 }
 0x1ca   :  { %3723 = vmatpush2.bf16.msra.mxu0 %v8792_v27  ;;  %v8491_v27 = vcombine.high %v159_v12, %v163_v14 }
 0x1cb   :  { %3724 = vmatprep.subr.bf16.mxu0 %v8785_v30 }
 0x1cc   :  { %3764 = vmatpush2.bf16.msra.mxu1 %v8920_v29 }
 0x1cd   :  { %3765 = vmatprep.subr.bf16.mxu1 %v8913_v31  ;;  %v8619_v31 = vcombine.high %v287_v16, %v291_v17  ;;  %v247_v16 = vld [vmem:[#allocation5 + $0x418] sm:$0xff] }
 0x1ce   :  { %3725 = vmatpush2.bf16.msra.mxu0 %v8784_v37  ;;  %v283_v37 = vld [vmem:[#allocation5 + $0x538] sm:$0xff] }
 0x1cf   :  { %3726 = vmatprep.subr.bf16.mxu0 %v8777_v40  ;;  %v251_v17 = vld [vmem:[#allocation5 + $0x438] sm:$0xff] }
 0x1d0   :  { %3766 = vmatpush2.bf16.msra.mxu1 %v8912_v39  ;;  %v8578_v63 = vcombine.low %v247_v16, %v251_v17 }
 0x1d1   :  { %3767 = vmatprep.subr.bf16.mxu1 %v8905_v41  ;;  %v8490_v41 = vcombine.low %v159_v12, %v163_v14  ;;  %v119_v14 = vld [vmem:[#allocation5 + $0x18] sm:$0xff] }
 0x1d2   :  { %3727 = vmatpush2.bf16.msra.mxu0 %v8776_v46  ;;  %v8611_v46 = vcombine.high %v279_v36, %v283_v37 }
 0x1d3   :  { %3728 = vmatprep.subr.bf16.mxu0 %v8769_v49  ;;  %v271_v49 = vld [vmem:[#allocation5 + $0x4d8] sm:$0xff] }
 0x1d4   :  { %3768 = vmatpush2.bf16.msra.mxu1 %v8904_v48  ;;  %v143_v48 = vld [vmem:[#allocation5 + $0xd8] sm:$0xff] }
 0x1d5   :  { %3769 = vmatprep.subr.bf16.mxu1 %v8897_v51  ;;  %v275_v51 = vld [vmem:[#allocation5 + $0x4f8] sm:$0xff] }
 0x1d6   :  { %3729 = vmatpush2.bf16.msra.mxu0 %v8768_v57  ;;  %v8603_v55 = vcombine.high %v271_v49, %v275_v51  ;;  %v139_v57 = vld [vmem:[#allocation5 + $0xb8] sm:$0xff]  ;;  %v8602_v1 = vcombine.low %v271_v49, %v275_v51 }
 0x1d7   :  { %3780 = vmatprep.subr.bf16.mxu0 %v8507_v60  ;;  %v267_v60 = vld [vmem:[#allocation5 + $0x4b8] sm:$0xff]  ;;  %v8467_v2 = vcombine.high %v135_v56, %v139_v57 }
 0x1d8   :  { %3770 = vmatpush2.bf16.msra.mxu1 %v8896_v59  ;;  %v263_v59 = vld [vmem:[#allocation5 + $0x498] sm:$0xff] }
 0x1d9   :  { %3821 = vmatprep.subr.bf16.mxu1 %v8635_v61  ;;  %v3486_v15 = vpop.f32.mrf.mxu0  ;;  %3731 = vmatmul.mubr.bf16.vlgmr.msra.gmra.mxu0 %v9970_v32  ;;  %v8595_v3 = vcombine.high %v263_v59, %v267_v60  ;;  %v355_v49 = vld [vmem:[#allocation5 + $0x778] sm:$0xff] }
 0x1da   :  { %v3487_v18 = vadd.f32 %v3486_v15, %v641_v5  ;;  %3781 = vmatpush1.bf16.msra.mxu0 %v8506_v6  ;;  %3812 = vmatprep.mubr.bf16.mxu0 %v9957_v9  ;;  %v147_v9 = vld [vmem:[#allocation5 + $0xf8] sm:$0xff] }
 0x1db   :  { %v3527_v19 = vpop.f32.mrf.mxu1  ;;  %3772 = vmatmul.mubr.bf16.vlgmr.msra.gmra.mxu1 %v9995_v50  ;;  %v3488_v24 = vpop.f32.mrf.mxu0  ;;  %3782 = vmatprep.subr.bf16.mxu0 %v8499_v8  ;;  %v8475_v54 = vcombine.high %v143_v48, %v147_v9  ;;  %v8474_v61 = vcombine.low %v143_v48, %v147_v9  ;;  %v131_v5 = vld [vmem:[#allocation5 + $0x78] sm:$0xff]  ;;  %v8466_v8 = vcombine.low %v135_v56, %v139_v57 }
 0x1dc   :  { %3822 = vmatpush1.bf16.msra.mxu1 %v8634_v7  ;;  %v10043_v22 = vadd.f32 %v3527_v19, %v3487_v18  ;;  %v3489_v29 = vadd.f32 %v3488_v24, %v645_v10  ;;  %3853 = vmatprep.mubr.bf16.mxu1 %v9962_v13  ;;  %v8610_v13 = vcombine.low %v279_v36, %v283_v37  ;;  %v255_v6 = vld [vmem:[#allocation5 + $0x458] sm:$0xff] }
 0x1dd   :  { %v3529_v30 = vpop.f32.mrf.mxu1  ;;  %3823 = vmatprep.subr.bf16.mxu1 %v8627_v11  ;;  %v3490_v35 = vpop.f32.mrf.mxu0  ;;  %v259_v7 = vld [vmem:[#allocation5 + $0x478] sm:$0xff]  ;;  %v8594_v10 = vcombine.low %v263_v59, %v267_v60  ;;  %v8459_v11 = vcombine.high %v127_v4, %v131_v5  ;;  %v8458_v18 = vcombine.low %v127_v4, %v131_v5  ;;  %v8579_v24 = vcombine.high %v247_v16, %v251_v17 }
 0x1de   :  { %v10047_v39 = vadd.f32 %v3529_v30, %v3489_v29  ;;  %3783 = vmatpush1.bf16.msra.mxu0 %v8498_v21  ;;  %v8587_v12 = vcombine.high %v255_v6, %v259_v7  ;;  %v123_v15 = vld [vmem:[#allocation5 + $0x38] sm:$0xff]  ;;  %v8586_v19 = vcombine.low %v255_v6, %v259_v7 }
 0x1df   :  { %v3531_v40 = vpop.f32.mrf.mxu1  ;;  %v3491_v42 = vpop.f32.mrf.mxu0  ;;  %3784 = vmatprep.subr.bf16.mxu0 %v8491_v27  ;;  %v8451_v21 = vcombine.high %v119_v14, %v123_v15  ;;  %v243_v27 = vld [vmem:[#allocation5 + $0x3f8] sm:$0xff] }
 0x1e0   :  { %3824 = vmatpush1.bf16.msra.mxu1 %v8626_v25  ;;  %v239_v25 = vld [vmem:[#allocation5 + $0x3d8] sm:$0xff] }
 0x1e1   :  { %v3532_v45 = vpop.f32.mrf.mxu1  ;;  %3825 = vmatprep.subr.bf16.mxu1 %v8619_v31  ;;  %v367_v29 = vld [vmem:[#allocation5 + $0x7d8] sm:$0xff]  ;;  %v8450_v31 = vcombine.low %v119_v14, %v123_v15  ;;  %v8571_v34 = vcombine.high %v239_v25, %v243_v27  ;;  %v8570_v42 = vcombine.low %v239_v25, %v243_v27 }
 0x1e2   :  { %3785 = vmatpush1.bf16.msra.mxu0 %v8490_v41  ;;  %v371_v30 = vld [vmem:[#allocation5 + $0x7f8] sm:$0xff] }
 0x1e3   :  { %3786 = vmatprep.subr.bf16.mxu0 %v8483_v52  ;;  %v8699_v35 = vcombine.high %v367_v29, %v371_v30  ;;  %v231_v36 = vld [vmem:[#allocation5 + $0x398] sm:$0xff] }
 0x1e4   :  { %3826 = vmatpush1.bf16.msra.mxu1 %v8618_v44  ;;  %v235_v37 = vld [vmem:[#allocation5 + $0x3b8] sm:$0xff]  ;;  %v8698_v44 = vcombine.low %v367_v29, %v371_v30 }
 0x1e5   :  { %3827 = vmatprep.subr.bf16.mxu1 %v8611_v46  ;;  %v359_v40 = vld [vmem:[#allocation5 + $0x798] sm:$0xff]  ;;  %v8563_v52 = vcombine.high %v231_v36, %v235_v37  ;;  %v8562_v51 = vcombine.low %v231_v36, %v235_v37 }
 0x1e6   :  { %3787 = vmatpush1.bf16.msra.mxu0 %v8482_v62  ;;  %v363_v41 = vld [vmem:[#allocation5 + $0x7b8] sm:$0xff] }
 0x1e7   :  { %3788 = vmatprep.subr.bf16.mxu0 %v8475_v54  ;;  %v8691_v45 = vcombine.high %v359_v40, %v363_v41  ;;  %v223_v46 = vld [vmem:[#allocation5 + $0x358] sm:$0xff]  ;;  %v8690_v62 = vcombine.low %v359_v40, %v363_v41 }
 0x1e8   :  { %3828 = vmatpush1.bf16.msra.mxu1 %v8610_v13  ;;  %v227_v48 = vld [vmem:[#allocation5 + $0x378] sm:$0xff] }
 0x1e9   :  { %3829 = vmatprep.subr.bf16.mxu1 %v8603_v55  ;;  %v351_v9 = vld [vmem:[#allocation5 + $0x758] sm:$0xff]  ;;  %v8555_v13 = vcombine.high %v223_v46, %v227_v48  ;;  %v8554_v60 = vcombine.low %v223_v46, %v227_v48 }
 0x1ea   :  { %3789 = vmatpush1.bf16.msra.mxu0 %v8474_v61  ;;  %v8683_v54 = vcombine.high %v351_v9, %v355_v49  ;;  %v215_v55 = vld [vmem:[#allocation5 + $0x318] sm:$0xff]  ;;  %v8682_v61 = vcombine.low %v351_v9, %v355_v49 }
 0x1eb   :  { %3790 = vmatprep.subr.bf16.mxu0 %v8467_v2  ;;  %v219_v56 = vld [vmem:[#allocation5 + $0x338] sm:$0xff] }
 0x1ec   :  { %3830 = vmatpush1.bf16.msra.mxu1 %v8602_v1  ;;  %v343_v57 = vld [vmem:[#allocation5 + $0x718] sm:$0xff]  ;;  %v8547_v1 = vcombine.high %v215_v55, %v219_v56  ;;  %v8546_v7 = vcombine.low %v215_v55, %v219_v56 }
 0x1ed   :  { %3831 = vmatprep.subr.bf16.mxu1 %v8595_v3  ;;  %v347_v59 = vld [vmem:[#allocation5 + $0x738] sm:$0xff] }
 0x1ee   :  { %3791 = vmatpush1.bf16.msra.mxu0 %v8466_v8  ;;  %v8675_v2 = vcombine.high %v343_v57, %v347_v59  ;;  %v207_v3 = vld [vmem:[#allocation5 + $0x2d8] sm:$0xff]  ;;  %v8674_v8 = vcombine.low %v343_v57, %v347_v59 }
 0x1ef   :  { %3792 = vmatprep.subr.bf16.mxu0 %v8459_v11  ;;  %v211_v4 = vld [vmem:[#allocation5 + $0x2f8] sm:$0xff] }
 0x1f0   :  { %3832 = vmatpush1.bf16.msra.mxu1 %v8594_v10  ;;  %v335_v5 = vld [vmem:[#allocation5 + $0x6d8] sm:$0xff]  ;;  %v8539_v10 = vcombine.high %v207_v3, %v211_v4  ;;  %v8538_v17 = vcombine.low %v207_v3, %v211_v4 }
 0x1f1   :  { %3833 = vmatprep.subr.bf16.mxu1 %v8587_v12  ;;  %v339_v6 = vld [vmem:[#allocation5 + $0x6f8] sm:$0xff] }
 0x1f2   :  { %3793 = vmatpush1.bf16.msra.mxu0 %v8458_v18  ;;  %v8667_v11 = vcombine.high %v335_v5, %v339_v6  ;;  %v199_v12 = vld [vmem:[#allocation5 + $0x298] sm:$0xff]  ;;  %v8666_v18 = vcombine.low %v335_v5, %v339_v6 }
 0x1f3   :  { %3794 = vmatprep.subr.bf16.mxu0 %v8451_v21  ;;  %v203_v14 = vld [vmem:[#allocation5 + $0x2b8] sm:$0xff] }
 0x1f4   :  { %3834 = vmatpush1.bf16.msra.mxu1 %v8586_v19  ;;  %v327_v15 = vld [vmem:[#allocation5 + $0x698] sm:$0xff]  ;;  %v8531_v19 = vcombine.high %v199_v12, %v203_v14  ;;  %v8530_v30 = vcombine.low %v199_v12, %v203_v14 }
 0x1f5   :  { %3835 = vmatprep.subr.bf16.mxu1 %v8579_v24  ;;  %v331_v16 = vld [vmem:[#allocation5 + $0x6b8] sm:$0xff] }
 0x1f6   :  { %3795 = vmatpush1.bf16.msra.mxu0 %v8450_v31  ;;  %v8659_v21 = vcombine.high %v327_v15, %v331_v16  ;;  %v191_v24 = vld [vmem:[#allocation5 + $0x258] sm:$0xff]  ;;  %v8658_v31 = vcombine.low %v327_v15, %v331_v16 }
 0x1f7   :  { %3796 = vmatprep.subr.bf16.mxu0 %v8571_v34  ;;  %v195_v25 = vld [vmem:[#allocation5 + $0x278] sm:$0xff] }
 0x1f8   :  { %3836 = vmatpush1.bf16.msra.mxu1 %v8578_v63  ;;  %v319_v27 = vld [vmem:[#allocation5 + $0x658] sm:$0xff]  ;;  %v8523_v63 = vcombine.high %v191_v24, %v195_v25  ;;  %v8522_v41 = vcombine.low %v191_v24, %v195_v25 }
 0x1f9   :  { %3837 = vmatprep.subr.bf16.mxu1 %v8699_v35  ;;  %v323_v29 = vld [vmem:[#allocation5 + $0x678] sm:$0xff] }
 0x1fa   :  { %3797 = vmatpush2.bf16.msra.mxu0 %v8570_v42  ;;  %v8651_v34 = vcombine.high %v319_v27, %v323_v29  ;;  %v183_v35 = vld [vmem:[#allocation5 + $0x218] sm:$0xff]  ;;  %v8650_v42 = vcombine.low %v319_v27, %v323_v29 }
 0x1fb   :  { %3798 = vmatprep.subr.bf16.mxu0 %v8563_v52  ;;  %v187_v36 = vld [vmem:[#allocation5 + $0x238] sm:$0xff] }
 0x1fc   :  { %3838 = vmatpush2.bf16.msra.mxu1 %v8698_v44  ;;  %v311_v37 = vld [vmem:[#allocation5 + $0x618] sm:$0xff]  ;;  %v8515_v44 = vcombine.high %v183_v35, %v187_v36  ;;  %v8514_v49 = vcombine.low %v183_v35, %v187_v36 }
 0x1fd   :  { %3839 = vmatprep.subr.bf16.mxu1 %v8691_v45  ;;  %v315_v40 = vld [vmem:[#allocation5 + $0x638] sm:$0xff] }
 0x1fe   :  { %3799 = vmatpush2.bf16.msra.mxu0 %v8562_v51  ;;  %v8643_v52 = vcombine.high %v311_v37, %v315_v40  ;;  %v431_v45 = vld [vmem:[#allocation5 + $0x9d8] sm:$0xff]  ;;  %v8642_v51 = vcombine.low %v311_v37, %v315_v40 }
 0x1ff   :  { %3800 = vmatprep.subr.bf16.mxu0 %v8555_v13  ;;  %v435_v46 = vld [vmem:[#allocation5 + $0x9f8] sm:$0xff] }
 0x200   :  { %3840 = vmatpush2.bf16.msra.mxu1 %v8690_v62  ;;  %v559_v48 = vld [vmem:[#allocation5 + $0xdd8] sm:$0xff]  ;;  %v8763_v62 = vcombine.high %v431_v45, %v435_v46  ;;  %v8762_v59 = vcombine.low %v431_v45, %v435_v46 }
 0x201   :  { %3841 = vmatprep.subr.bf16.mxu1 %v8683_v54  ;;  %v563_v9 = vld [vmem:[#allocation5 + $0xdf8] sm:$0xff] }
 0x202   :  { %3801 = vmatpush2.bf16.msra.mxu0 %v8554_v60  ;;  %v8891_v13 = vcombine.high %v559_v48, %v563_v9  ;;  %v423_v54 = vld [vmem:[#allocation5 + $0x998] sm:$0xff]  ;;  %v8890_v60 = vcombine.low %v559_v48, %v563_v9 }
 0x203   :  { %3802 = vmatprep.subr.bf16.mxu0 %v8547_v1  ;;  %v427_v55 = vld [vmem:[#allocation5 + $0x9b8] sm:$0xff] }
 0x204   :  { %3842 = vmatpush2.bf16.msra.mxu1 %v8682_v61  ;;  %v551_v56 = vld [vmem:[#allocation5 + $0xd98] sm:$0xff]  ;;  %v8755_v61 = vcombine.high %v423_v54, %v427_v55 }
 0x205   :  { %3843 = vmatprep.subr.bf16.mxu1 %v8675_v2  ;;  %v555_v57 = vld [vmem:[#allocation5 + $0xdb8] sm:$0xff] }
 0x206   :  { %3803 = vmatpush2.bf16.msra.mxu0 %v8546_v7  ;;  %v8883_v1 = vcombine.high %v551_v56, %v555_v57  ;;  %v415_v2 = vld [vmem:[#allocation5 + $0x958] sm:$0xff]  ;;  %v8882_v12 = vcombine.low %v551_v56, %v555_v57 }
 0x207   :  { %3804 = vmatprep.subr.bf16.mxu0 %v8539_v10  ;;  %v419_v3 = vld [vmem:[#allocation5 + $0x978] sm:$0xff]  ;;  %v8754_v10 = vcombine.low %v423_v54, %v427_v55 }
 0x208   :  { %3844 = vmatpush2.bf16.msra.mxu1 %v8674_v8  ;;  %v543_v5 = vld [vmem:[#allocation5 + $0xd58] sm:$0xff]  ;;  %v8747_v14 = vcombine.high %v415_v2, %v419_v3  ;;  %v8746_v24 = vcombine.low %v415_v2, %v419_v3 }
 0x209   :  { %3845 = vmatprep.subr.bf16.mxu1 %v8667_v11  ;;  %v547_v6 = vld [vmem:[#allocation5 + $0xd78] sm:$0xff] }
 0x20a   :  { %3805 = vmatpush2.bf16.msra.mxu0 %v8538_v17  ;;  %v407_v17 = vld [vmem:[#allocation5 + $0x918] sm:$0xff]  ;;  %v8874_v27 = vcombine.low %v543_v5, %v547_v6 }
 0x20b   :  { %3806 = vmatprep.subr.bf16.mxu0 %v8531_v19  ;;  %v539_v19 = vld [vmem:[#allocation5 + $0xd38] sm:$0xff] }
 0x20c   :  { %3846 = vmatpush2.bf16.msra.mxu1 %v8666_v18  ;;  %v411_v18 = vld [vmem:[#allocation5 + $0x938] sm:$0xff] }
 0x20d   :  { %3847 = vmatprep.subr.bf16.mxu1 %v8659_v21  ;;  %v8739_v29 = vcombine.high %v407_v17, %v411_v18  ;;  %v527_v35 = vld [vmem:[#allocation5 + $0xcd8] sm:$0xff]  ;;  %v8738_v36 = vcombine.low %v407_v17, %v411_v18 }
 0x20e   :  { %3807 = vmatpush2.bf16.msra.mxu0 %v8530_v30  ;;  %v487_v18 = vld [vmem:[#allocation5 + $0xb98] sm:$0xff] }
 0x20f   :  { %3808 = vmatprep.subr.bf16.mxu0 %v8523_v63  ;;  %v399_v63 = vld [vmem:[#allocation5 + $0x8d8] sm:$0xff] }
 0x210   :  { %3848 = vmatpush2.bf16.msra.mxu1 %v8658_v31 }
 0x211   :  { %3849 = vmatprep.subr.bf16.mxu1 %v8651_v34  ;;  %v403_v34 = vld [vmem:[#allocation5 + $0x8f8] sm:$0xff] }
 0x212   :  { %3809 = vmatpush2.bf16.msra.mxu0 %v8522_v41  ;;  %v8731_v37 = vcombine.high %v399_v63, %v403_v34  ;;  %v391_v41 = vld [vmem:[#allocation5 + $0x898] sm:$0xff]  ;;  %v8730_v45 = vcombine.low %v399_v63, %v403_v34 }
 0x213   :  { %3810 = vmatprep.subr.bf16.mxu0 %v8515_v44  ;;  %v519_v44 = vld [vmem:[#allocation5 + $0xc98] sm:$0xff] }
 0x214   :  { %3850 = vmatpush2.bf16.msra.mxu1 %v8650_v42  ;;  %v395_v42 = vld [vmem:[#allocation5 + $0x8b8] sm:$0xff] }
 0x215   :  { %3851 = vmatprep.subr.bf16.mxu1 %v8643_v52  ;;  %v523_v52 = vld [vmem:[#allocation5 + $0xcb8] sm:$0xff]  ;;  %v8723_v48 = vcombine.high %v391_v41, %v395_v42  ;;  %v8722_v54 = vcombine.low %v391_v41, %v395_v42 }
 0x216   :  { %3811 = vmatpush2.bf16.msra.mxu0 %v8514_v49  ;;  %v8851_v9 = vcombine.high %v519_v44, %v523_v52  ;;  %v383_v49 = vld [vmem:[#allocation5 + $0x858] sm:$0xff]  ;;  %v8850_v55 = vcombine.low %v519_v44, %v523_v52 }
 0x217   :  { %3862 = vmatprep.subr.bf16.mxu0 %v8763_v62  ;;  %v511_v62 = vld [vmem:[#allocation5 + $0xc58] sm:$0xff] }
 0x218   :  { %3852 = vmatpush2.bf16.msra.mxu1 %v8642_v51  ;;  %v387_v51 = vld [vmem:[#allocation5 + $0x878] sm:$0xff] }
 0x219   :  { %3903 = vmatprep.subr.bf16.mxu1 %v8891_v13  ;;  %v3568_v4 = vpop.f32.mrf.mxu0  ;;  %3813 = vmatmul.mubr.bf16.vlgmr.msra.gmra.mxu0 %v9976_v23  ;;  %v8875_v23 = vcombine.high %v543_v5, %v547_v6  ;;  %v515_v13 = vld [vmem:[#allocation5 + $0xc78] sm:$0xff]  ;;  %v8715_v56 = vcombine.high %v383_v49, %v387_v51  ;;  %v8714_v2 = vcombine.low %v383_v49, %v387_v51 }
 0x21a   :  { %v3569_v7 = vadd.f32 %v3568_v4, %v10043_v22  ;;  %3863 = vmatpush1.bf16.msra.mxu0 %v8762_v59  ;;  %3894 = vmatprep.mubr.bf16.mxu0 %v9979_v33  ;;  %v531_v33 = vld [vmem:[#allocation5 + $0xcf8] sm:$0xff]  ;;  %v8843_v57 = vcombine.high %v511_v62, %v515_v13  ;;  %v8842_v3 = vcombine.low %v511_v62, %v515_v13 }
 0x21b   :  { %v3609_v8 = vpop.f32.mrf.mxu1  ;;  %3854 = vmatmul.mubr.bf16.vlgmr.msra.gmra.mxu1 %v9983_v28  ;;  %v10052_v11 = vpop.f32.mrf.mxu0  ;;  %3864 = vmatprep.subr.bf16.mxu0 %v8755_v61  ;;  %v535_v28 = vld [vmem:[#allocation5 + $0xd18] sm:$0xff]  ;;  %v8859_v40 = vcombine.high %v527_v35, %v531_v33  ;;  %v8858_v46 = vcombine.low %v527_v35, %v531_v33 }
 0x21c   :  { %3904 = vmatpush1.bf16.msra.mxu1 %v8890_v60  ;;  %v10054_v15 = vadd.f32 %v3609_v8, %v3569_v7  ;;  %3935 = vmatprep.mubr.bf16.mxu1 %v9988_v53  ;;  %v8867_v31 = vcombine.high %v535_v28, %v539_v19  ;;  %v8866_v53 = vcombine.low %v535_v28, %v539_v19  ;;  %v375_v59 = vld [vmem:[#allocation5 + $0x818] sm:$0xff] }
 0x21d   :  { %v10056_v16 = vpop.f32.mrf.mxu1  ;;  %3905 = vmatprep.subr.bf16.mxu1 %v8883_v1  ;;  %v3572_v22 = vpop.f32.mrf.mxu0  ;;  %v379_v60 = vld [vmem:[#allocation5 + $0x838] sm:$0xff] }
 0x21e   :  { %3865 = vmatpush1.bf16.msra.mxu0 %v8754_v10  ;;  %v503_v61 = vld [vmem:[#allocation5 + $0xc18] sm:$0xff]  ;;  %v8707_v4 = vcombine.high %v375_v59, %v379_v60 }
 0x21f   :  { %v3613_v21 = vpop.f32.mrf.mxu1  ;;  %v3573_v25 = vpop.f32.mrf.mxu0  ;;  %3866 = vmatprep.subr.bf16.mxu0 %v8747_v14  ;;  %v507_v1 = vld [vmem:[#allocation5 + $0xc38] sm:$0xff] }
 0x220   :  { %3906 = vmatpush1.bf16.msra.mxu1 %v8882_v12  ;;  %v8835_v5 = vcombine.high %v503_v61, %v507_v1  ;;  %v495_v6 = vld [vmem:[#allocation5 + $0xbd8] sm:$0xff]  ;;  %v8706_v12 = vcombine.low %v375_v59, %v379_v60  ;;  %v8834_v14 = vcombine.low %v503_v61, %v507_v1 }
 0x221   :  { %v3614_v30 = vpop.f32.mrf.mxu1  ;;  %3907 = vmatprep.subr.bf16.mxu1 %v8875_v23  ;;  %v499_v7 = vld [vmem:[#allocation5 + $0xbf8] sm:$0xff] }
 0x222   :  { %3867 = vmatpush1.bf16.msra.mxu0 %v8746_v24  ;;  %v623_v8 = vld [vmem:[#allocation5 + $0xfd8] sm:$0xff]  ;;  %v8827_v23 = vcombine.high %v495_v6, %v499_v7  ;;  %v8826_v21 = vcombine.low %v495_v6, %v499_v7 }
 0x223   :  { %3868 = vmatprep.subr.bf16.mxu0 %v8739_v29  ;;  %v627_v10 = vld [vmem:[#allocation5 + $0xff8] sm:$0xff] }
 0x224   :  { %3908 = vmatpush1.bf16.msra.mxu1 %v8874_v27  ;;  %v8955_v17 = vcombine.high %v623_v8, %v627_v10  ;;  %v491_v22 = vld [vmem:[#allocation5 + $0xbb8] sm:$0xff]  ;;  %v8954_v24 = vcombine.low %v623_v8, %v627_v10 }
 0x225   :  { %3909 = vmatprep.subr.bf16.mxu1 %v8867_v31  ;;  %v615_v28 = vld [vmem:[#allocation5 + $0xf98] sm:$0xff]  ;;  %v8819_v25 = vcombine.high %v487_v18, %v491_v22  ;;  %v8818_v34 = vcombine.low %v487_v18, %v491_v22  ;;  %v3571_v22 = vadd.f32 %v10052_v11, %v10047_v39 }
 0x226   :  { %3869 = vmatpush1.bf16.msra.mxu0 %v8738_v36  ;;  %v619_v19 = vld [vmem:[#allocation5 + $0xfb8] sm:$0xff] }
 0x227   :  { %3870 = vmatprep.subr.bf16.mxu0 %v8731_v37  ;;  %v8947_v27 = vcombine.high %v615_v28, %v619_v19  ;;  %v479_v29 = vld [vmem:[#allocation5 + $0xb58] sm:$0xff]  ;;  %v8946_v35 = vcombine.low %v615_v28, %v619_v19 }
 0x228   :  { %3910 = vmatpush1.bf16.msra.mxu1 %v8866_v53  ;;  %v483_v30 = vld [vmem:[#allocation5 + $0xb78] sm:$0xff] }
 0x229   :  { %3911 = vmatprep.subr.bf16.mxu1 %v8859_v40  ;;  %v607_v31 = vld [vmem:[#allocation5 + $0xf58] sm:$0xff]  ;;  %v8811_v33 = vcombine.high %v479_v29, %v483_v30  ;;  %v8810_v42 = vcombine.low %v479_v29, %v483_v30  ;;  %v4144_v29 = vld [vmem:[#allocation8 + $0x5c0] sm:$0xff] }
 0x22a   :  { %3871 = vmatpush1.bf16.msra.mxu0 %v8730_v45  ;;  %v611_v63 = vld [vmem:[#allocation5 + $0xf78] sm:$0xff]  ;;  %v4148_v30 = vld [vmem:[#allocation8 + $0x5e0] sm:$0xff] }
 0x22b   :  { %3872 = vmatprep.subr.bf16.mxu0 %v8723_v48  ;;  %v8939_v36 = vcombine.high %v607_v31, %v611_v63  ;;  %v471_v53 = vld [vmem:[#allocation5 + $0xb18] sm:$0xff]  ;;  %v8938_v44 = vcombine.low %v607_v31, %v611_v63  ;;  %v3612_v31 = vadd.f32 %v10056_v16, %v3571_v22  ;;  %v4112_v22 = vld [vmem:[#allocation8 + $0x4c0] sm:$0xff] }
 0x22c   :  { %3912 = vmatpush1.bf16.msra.mxu1 %v8858_v46  ;;  %v475_v37 = vld [vmem:[#allocation5 + $0xb38] sm:$0xff] }
 0x22d   :  { %3913 = vmatprep.subr.bf16.mxu1 %v8851_v9  ;;  %v599_v40 = vld [vmem:[#allocation5 + $0xf18] sm:$0xff]  ;;  %v8803_v52 = vcombine.high %v471_v53, %v475_v37  ;;  %v8802_v51 = vcombine.low %v471_v53, %v475_v37  ;;  %v4012_v53 = vld [vmem:[#allocation8 + $0x1a0] sm:$0xff]  ;;  %v3947_v37 = vmax.f32 %v3612_v31, 0.0 }
 0x22e   :  { %3873 = vmatpush1.bf16.msra.mxu0 %v8722_v54  ;;  %v603_v41 = vld [vmem:[#allocation5 + $0xf38] sm:$0xff]  ;;  %v4108_v31 = vld [vmem:[#allocation8 + $0x4a0] sm:$0xff] }
 0x22f   :  { %3874 = vmatprep.subr.bf16.mxu0 %v8715_v56  ;;  %v8931_v45 = vcombine.high %v599_v40, %v603_v41  ;;  %v463_v46 = vld [vmem:[#allocation5 + $0xad8] sm:$0xff]  ;;  %v8930_v62 = vcombine.low %v599_v40, %v603_v41  ;;  %v10065_v40 = vld [vmem:[#allocation7] sm:$0xff] }
 0x230   :  { %3914 = vmatpush1.bf16.msra.mxu1 %v8850_v55  ;;  %v467_v48 = vld [vmem:[#allocation5 + $0xaf8] sm:$0xff] }
 0x231   :  { %3915 = vmatprep.subr.bf16.mxu1 %v8843_v57  ;;  %v591_v9 = vld [vmem:[#allocation5 + $0xed8] sm:$0xff]  ;;  %v8795_v13 = vcombine.high %v463_v46, %v467_v48  ;;  %v8794_v60 = vcombine.low %v463_v46, %v467_v48  ;;  %v4000_v46 = vld [vmem:[#allocation8 + $0x140] sm:$0xff] }
 0x232   :  { %3875 = vmatpush1.bf16.msra.mxu0 %v8714_v2  ;;  %v595_v49 = vld [vmem:[#allocation5 + $0xef8] sm:$0xff] }
 0x233   :  { %3876 = vmatprep.subr.bf16.mxu0 %v8707_v4  ;;  %v8923_v54 = vcombine.high %v591_v9, %v595_v49  ;;  %v455_v55 = vld [vmem:[#allocation5 + $0xa98] sm:$0xff]  ;;  %v8922_v61 = vcombine.low %v591_v9, %v595_v49 }
 0x234   :  { %3916 = vmatpush1.bf16.msra.mxu1 %v8842_v3  ;;  %v459_v56 = vld [vmem:[#allocation5 + $0xab8] sm:$0xff] }
 0x235   :  { %3917 = vmatprep.subr.bf16.mxu1 %v8835_v5  ;;  %v583_v57 = vld [vmem:[#allocation5 + $0xe98] sm:$0xff]  ;;  %v8787_v1 = vcombine.high %v455_v55, %v459_v56  ;;  %v8786_v7 = vcombine.low %v455_v55, %v459_v56 }
 0x236   :  { %3877 = vmatpush1.bf16.msra.mxu0 %v8706_v12  ;;  %v587_v59 = vld [vmem:[#allocation5 + $0xeb8] sm:$0xff] }
 0x237   :  { %3878 = vmatprep.subr.bf16.mxu0 %v8827_v23  ;;  %v8915_v2 = vcombine.high %v583_v57, %v587_v59  ;;  %v447_v3 = vld [vmem:[#allocation5 + $0xa58] sm:$0xff]  ;;  %v8914_v8 = vcombine.low %v583_v57, %v587_v59 }
 0x238   :  { %3918 = vmatpush1.bf16.msra.mxu1 %v8834_v14  ;;  %v451_v4 = vld [vmem:[#allocation5 + $0xa78] sm:$0xff] }
 0x239   :  { %3919 = vmatprep.subr.bf16.mxu1 %v8955_v17  ;;  %v575_v5 = vld [vmem:[#allocation5 + $0xe58] sm:$0xff]  ;;  %v8779_v10 = vcombine.high %v447_v3, %v451_v4  ;;  %v8778_v28 = vcombine.low %v447_v3, %v451_v4  ;;  %v3996_v3 = vld [vmem:[#allocation8 + $0x120] sm:$0xff] }
 0x23a   :  { %3879 = vmatpush2.bf16.msra.mxu0 %v8826_v21  ;;  %v579_v6 = vld [vmem:[#allocation5 + $0xe78] sm:$0xff]  ;;  %v4120_v4 = vld [vmem:[#allocation8 + $0x500] sm:$0xff] }
 0x23b   :  { %3880 = vmatprep.subr.bf16.mxu0 %v8819_v25  ;;  %v8907_v12 = vcombine.high %v575_v5, %v579_v6  ;;  %v439_v14 = vld [vmem:[#allocation5 + $0xa18] sm:$0xff]  ;;  %v8906_v19 = vcombine.low %v575_v5, %v579_v6  ;;  %v4016_v25 = vld [vmem:[#allocation8 + $0x1c0] sm:$0xff] }
 0x23c   :  { %3920 = vmatpush2.bf16.msra.mxu1 %v8954_v24  ;;  %v443_v23 = vld [vmem:[#allocation5 + $0xa38] sm:$0xff]  ;;  %v4124_v5 = vld [vmem:[#allocation8 + $0x520] sm:$0xff] }
 0x23d   :  { %3921 = vmatprep.subr.bf16.mxu1 %v8947_v27  ;;  %v567_v17 = vld [vmem:[#allocation5 + $0xe18] sm:$0xff]  ;;  %v8771_v21 = vcombine.high %v439_v14, %v443_v23  ;;  %v4020_v27 = vld [vmem:[#allocation8 + $0x1e0] sm:$0xff]  ;;  %v8770_v63 = vcombine.low %v439_v14, %v443_v23  ;;  %v9117_v23 = vcombine.high %v4120_v4, %v4124_v5 }
 0x23e   :  { %3881 = vmatpush2.bf16.msra.mxu0 %v8818_v34  ;;  %v571_v18 = vld [vmem:[#allocation5 + $0xe38] sm:$0xff]  ;;  %v648_v34 = vsub.s32 4, %v9946_v43  ;;  %v9013_v11 = vcombine.high %v4016_v25, %v4020_v27  ;;  %v9012_v41 = vcombine.low %v4016_v25, %v4020_v27  ;;  %v3976_v27 = vld [vmem:[#allocation8 + $0x80] sm:$0xff] }
 0x23f   :  { %3882 = vmatprep.subr.bf16.mxu0 %v8811_v33  ;;  %v8899_v24 = vcombine.high %v567_v17, %v571_v18  ;;  %v8898_v39 = vcombine.low %v567_v17, %v571_v18  ;;  %v3945_v33 = vmax.f32 %v10031_v47, 0.0  ;;  %v4004_v47 = vld [vmem:[#allocation8 + $0x160] sm:$0xff] }
 0x240   :  { %3922 = vmatpush2.bf16.msra.mxu1 %v8946_v35  ;;  %v9141_v35 = vcombine.high %v4144_v29, %v4148_v30  ;;  %v649_v16 = vrot.slane %v10065_v40, %v648_v34  ;;  %v3984_v17 = vld [vmem:[#allocation8 + $0xc0] sm:$0xff] }
 0x241   :  { %3923 = vmatprep.subr.bf16.mxu1 %v8939_v36  ;;  %v4008_v36 = vld [vmem:[#allocation8 + $0x180] sm:$0xff]  ;;  %v10070_v48 = vpack.c.bf16 %v3945_v33, %v3945_v33 }
 0x242   :  { %3883 = vmatpush2.bf16.msra.mxu0 %v8810_v42  ;;  %v4136_v42 = vld [vmem:[#allocation8 + $0x580] sm:$0xff]  ;;  %v9004_v56 = vcombine.low %v4008_v36, %v4012_v53 }
 0x243   :  { %3884 = vmatprep.subr.bf16.mxu0 %v8803_v52  ;;  %v9140_v52 = vcombine.low %v4144_v29, %v4148_v30  ;;  %v3988_v18 = vld [vmem:[#allocation8 + $0xe0] sm:$0xff] }
 0x244   :  { %3924 = vmatpush2.bf16.msra.mxu1 %v8938_v44  ;;  %v4140_v44 = vld [vmem:[#allocation8 + $0x5a0] sm:$0xff] }
 0x245   :  { %3925 = vmatprep.subr.bf16.mxu1 %v8931_v45  ;;  %v9005_v45 = vcombine.high %v4008_v36, %v4012_v53  ;;  %v9133_v49 = vcombine.high %v4136_v42, %v4140_v44  ;;  %v9132_v59 = vcombine.low %v4136_v42, %v4140_v44  ;;  %v3980_v29 = vld [vmem:[#allocation8 + $0xa0] sm:$0xff] }
 0x246   :  { %3885 = vmatpush2.bf16.msra.mxu0 %v8802_v51  ;;  %v4128_v51 = vld [vmem:[#allocation8 + $0x540] sm:$0xff] }
 0x247   :  { %3886 = vmatprep.subr.bf16.mxu0 %v8795_v13  ;;  %v10073_v13 = vpack.c.bf16 %v3947_v37, %v3947_v37  ;;  %v4104_v30 = vld [vmem:[#allocation8 + $0x480] sm:$0xff] }
 0x248   :  { %3926 = vmatpush2.bf16.msra.mxu1 %v8930_v62  ;;  %v4132_v62 = vld [vmem:[#allocation8 + $0x560] sm:$0xff] }
 0x249   :  { %3927 = vmatprep.subr.bf16.mxu1 %v8923_v54  ;;  %v3968_v33 = vld [vmem:[#allocation8 + $0x40] sm:$0xff] }
 0x24a   :  { %3887 = vmatpush2.bf16.msra.mxu0 %v8794_v60  ;;  %v8997_v60 = vcombine.high %v4000_v46, %v4004_v47  ;;  %v3972_v36 = vld [vmem:[#allocation8 + $0x60] sm:$0xff] }
 0x24b   :  { %3888 = vmatprep.subr.bf16.mxu0 %v8787_v1  ;;  %v9125_v1 = vcombine.high %v4128_v51, %v4132_v62  ;;  %v4096_v53 = vld [vmem:[#allocation8 + $0x440] sm:$0xff]  ;;  %v8965_v42 = vcombine.high %v3968_v33, %v3972_v36 }
 0x24c   :  { %3928 = vmatpush2.bf16.msra.mxu1 %v8922_v61  ;;  %v4100_v37 = vld [vmem:[#allocation8 + $0x460] sm:$0xff] }
 0x24d   :  { %3929 = vmatprep.subr.bf16.mxu1 %v8915_v2  ;;  %v3992_v2 = vld [vmem:[#allocation8 + $0x100] sm:$0xff]  ;;  %v9093_v44 = vcombine.high %v4096_v53, %v4100_v37 }
 0x24e   :  { %3889 = vmatpush2.bf16.msra.mxu0 %v8786_v7  ;;  %v8996_v7 = vcombine.low %v4000_v46, %v4004_v47  ;;  %v4088_v46 = vld [vmem:[#allocation8 + $0x400] sm:$0xff] }
 0x24f   :  { %3890 = vmatprep.subr.bf16.mxu0 %v8779_v10  ;;  %v9124_v10 = vcombine.low %v4128_v51, %v4132_v62  ;;  %v4092_v47 = vld [vmem:[#allocation8 + $0x420] sm:$0xff] }
 0x250   :  { %3930 = vmatpush2.bf16.msra.mxu1 %v8914_v8  ;;  %v9085_v62 = vcombine.high %v4088_v46, %v4092_v47 }
 0x251   :  { %3931 = vmatprep.subr.bf16.mxu1 %v8907_v12  ;;  %v8989_v12 = vcombine.high %v3992_v2, %v3996_v3 }
 0x252   :  { %3891 = vmatpush2.bf16.msra.mxu0 %v8778_v28  ;;  %v4116_v28 = vld [vmem:[#allocation8 + $0x4e0] sm:$0xff] }
 0x253   :  { %3892 = vmatprep.subr.bf16.mxu0 %v8771_v21  ;;  %v9116_v21 = vcombine.low %v4120_v4, %v4124_v5  ;;  %v9109_v25 = vcombine.high %v4112_v22, %v4116_v28  ;;  %v4076_v4 = vld [vmem:[#allocation8 + $0x3a0] sm:$0xff] }
 0x254   :  { %3932 = vmatpush2.bf16.msra.mxu1 %v8906_v19  ;;  %v8988_v19 = vcombine.low %v3992_v2, %v3996_v3  ;;  %v4200_v5 = vld [vmem:[#allocation8 + $0x780] sm:$0xff] }
 0x255   :  { %3933 = vmatprep.subr.bf16.mxu1 %v8899_v24  ;;  %v8981_v24 = vcombine.high %v3984_v17, %v3988_v18 }
 0x256   :  { %3893 = vmatpush2.bf16.msra.mxu0 %v8770_v63  ;;  %v8980_v63 = vcombine.low %v3984_v17, %v3988_v18  ;;  %v4192_v17 = vld [vmem:[#allocation8 + $0x740] sm:$0xff] }
 0x257   :  { %7074 = vmatprep.subr.bf16.mxu0 %v9013_v11  ;;  %v8973_v11 = vcombine.high %v3976_v27, %v3980_v29  ;;  %v4196_v18 = vld [vmem:[#allocation8 + $0x760] sm:$0xff] }
 0x258   :  { %3934 = vmatpush2.bf16.msra.mxu1 %v8898_v39  ;;  %v9108_v39 = vcombine.low %v4112_v22, %v4116_v28 }
 0x259   :  { %7115 = vmatprep.subr.bf16.mxu1 %v9141_v35  ;;  %v3650_v9 = vpop.f32.mrf.mxu0  ;;  %3895 = vmatmul.mubr.bf16.vlgmr.msra.gmra.mxu0 %v9970_v32  ;;  %v9101_v35 = vcombine.high %v4104_v30, %v4108_v31 }
 0x25a   :  { %v3651_v54 = vadd.f32 %v3650_v9, %v649_v16  ;;  %7075 = vmatpush1.bf16.msra.mxu0 %v9012_v41  ;;  %7106 = vmatprep.mubr.bf16.mxu0 %v10070_v48  ;;  %v8972_v16 = vcombine.low %v3976_v27, %v3980_v29  ;;  %v9100_v41 = vcombine.low %v4104_v30, %v4108_v31  ;;  %v4184_v27 = vld [vmem:[#allocation8 + $0x700] sm:$0xff] }
 0x25b   :  { %v3691_v55 = vpop.f32.mrf.mxu1  ;;  %3936 = vmatmul.mubr.bf16.vlgmr.msra.gmra.mxu1 %v9995_v50  ;;  %v10077_v57 = vpop.f32.mrf.mxu0  ;;  %7076 = vmatprep.subr.bf16.mxu0 %v9005_v45  ;;  %v3964_v45 = vld [vmem:[#allocation8 + $0x20] sm:$0xff]  ;;  %v8964_v9 = vcombine.low %v3968_v33, %v3972_v36  ;;  %v9188_v31 = vcombine.low %v4192_v17, %v4196_v18 }
 0x25c   :  { %7116 = vmatpush1.bf16.msra.mxu1 %v9140_v52  ;;  %v10079_v61 = vadd.f32 %v3691_v55, %v3651_v54  ;;  %7147 = vmatprep.mubr.bf16.mxu1 %v10073_v13  ;;  %v3960_v52 = vld [vmem:[#allocation8] sm:$0xff] }
 0x25d   :  { %v10082_v32 = vpop.f32.mrf.mxu1  ;;  %v3654_v50 = vpop.f32.mrf.mxu0  ;;  %7117 = vmatprep.subr.bf16.mxu1 %v9133_v49  ;;  %v9092_v49 = vcombine.low %v4096_v53, %v4100_v37  ;;  %v8957_v51 = vcombine.high %v3960_v52, %v3964_v45  ;;  %v4080_v54 = vld [vmem:[#allocation8 + $0x3c0] sm:$0xff] }
 0x25e   :  { %7077 = vmatpush1.bf16.msra.mxu0 %v9004_v56  ;;  %v4084_v55 = vld [vmem:[#allocation8 + $0x3e0] sm:$0xff] }
 0x25f   :  { %v3695_v6 = vpop.f32.mrf.mxu1  ;;  %v3655_v8 = vpop.f32.mrf.mxu0  ;;  %7078 = vmatprep.subr.bf16.mxu0 %v8997_v60  ;;  %v4208_v56 = vld [vmem:[#allocation8 + $0x7c0] sm:$0xff]  ;;  %v8956_v60 = vcombine.low %v3960_v52, %v3964_v45  ;;  %v9077_v2 = vcombine.high %v4080_v54, %v4084_v55 }
 0x260   :  { %7118 = vmatpush1.bf16.msra.mxu1 %v9132_v59  ;;  %v4212_v59 = vld [vmem:[#allocation8 + $0x7e0] sm:$0xff] }
 0x261   :  { %v3696_v14 = vpop.f32.mrf.mxu1  ;;  %7119 = vmatprep.subr.bf16.mxu1 %v9125_v1  ;;  %v9084_v1 = vcombine.low %v4088_v46, %v4092_v47  ;;  %v9205_v3 = vcombine.high %v4208_v56, %v4212_v59  ;;  %v4072_v50 = vld [vmem:[#allocation8 + $0x380] sm:$0xff]  ;;  %v9204_v8 = vcombine.low %v4208_v56, %v4212_v59 }
 0x262   :  { %7079 = vmatpush1.bf16.msra.mxu0 %v8996_v7  ;;  %v4204_v6 = vld [vmem:[#allocation8 + $0x7a0] sm:$0xff]  ;;  %v9076_v7 = vcombine.low %v4080_v54, %v4084_v55  ;;  %v9068_v22 = vcombine.low %v4072_v50, %v4076_v4 }
 0x263   :  { %7080 = vmatprep.subr.bf16.mxu0 %v8989_v12  ;;  %v9197_v12 = vcombine.high %v4200_v5, %v4204_v6  ;;  %v4064_v14 = vld [vmem:[#allocation8 + $0x340] sm:$0xff]  ;;  %v9196_v28 = vcombine.low %v4200_v5, %v4204_v6  ;;  %v652_v5 = vsub.s32 5, %v9946_v43 }
 0x264   :  { %7120 = vmatpush1.bf16.msra.mxu1 %v9124_v10  ;;  %v9069_v10 = vcombine.high %v4072_v50, %v4076_v4  ;;  %v4188_v29 = vld [vmem:[#allocation8 + $0x720] sm:$0xff] }
 0x265   :  { %7121 = vmatprep.subr.bf16.mxu1 %v9117_v23  ;;  %v4068_v23 = vld [vmem:[#allocation8 + $0x360] sm:$0xff]  ;;  %v9180_v37 = vcombine.low %v4184_v27, %v4188_v29 }
 0x266   :  { %7081 = vmatpush1.bf16.msra.mxu0 %v8988_v19  ;;  %v9061_v19 = vcombine.high %v4064_v14, %v4068_v23  ;;  %v9060_v30 = vcombine.low %v4064_v14, %v4068_v23  ;;  %v4176_v33 = vld [vmem:[#allocation8 + $0x6c0] sm:$0xff] }
 0x267   :  { %7082 = vmatprep.subr.bf16.mxu0 %v8981_v24  ;;  %v4056_v24 = vld [vmem:[#allocation8 + $0x300] sm:$0xff] }
 0x268   :  { %7122 = vmatpush1.bf16.msra.mxu1 %v9116_v21  ;;  %v9189_v21 = vcombine.high %v4192_v17, %v4196_v18  ;;  %v4180_v36 = vld [vmem:[#allocation8 + $0x6e0] sm:$0xff]  ;;  %v653_v18 = vrot.slane %v10065_v40, %v652_v5 }
 0x269   :  { %7123 = vmatprep.subr.bf16.mxu1 %v9109_v25  ;;  %v4060_v25 = vld [vmem:[#allocation8 + $0x320] sm:$0xff]  ;;  %v9172_v47 = vcombine.low %v4176_v33, %v4180_v36 }
 0x26a   :  { %7083 = vmatpush1.bf16.msra.mxu0 %v8980_v63  ;;  %v9053_v63 = vcombine.high %v4056_v24, %v4060_v25  ;;  %v9052_v53 = vcombine.low %v4056_v24, %v4060_v25  ;;  %v4168_v52 = vld [vmem:[#allocation8 + $0x680] sm:$0xff]  ;;  %v3946_v24 = vmax.f32 %v10054_v15, 0.0 }
 0x26b   :  { %7084 = vmatprep.subr.bf16.mxu0 %v8973_v11  ;;  %v4048_v11 = vld [vmem:[#allocation8 + $0x2c0] sm:$0xff] }
 0x26c   :  { %7124 = vmatpush1.bf16.msra.mxu1 %v9108_v39  ;;  %v9181_v39 = vcombine.high %v4184_v27, %v4188_v29  ;;  %v4172_v45 = vld [vmem:[#allocation8 + $0x6a0] sm:$0xff] }
 0x26d   :  { %7125 = vmatprep.subr.bf16.mxu1 %v9101_v35  ;;  %v4052_v35 = vld [vmem:[#allocation8 + $0x2e0] sm:$0xff]  ;;  %v9164_v59 = vcombine.low %v4168_v52, %v4172_v45 }
 0x26e   :  { %7085 = vmatpush1.bf16.msra.mxu0 %v8972_v16  ;;  %v9045_v16 = vcombine.high %v4048_v11, %v4052_v35  ;;  %v9044_v46 = vcombine.low %v4048_v11, %v4052_v35  ;;  %v4160_v54 = vld [vmem:[#allocation8 + $0x640] sm:$0xff]  ;;  %v10093_v35 = vpack.c.bf16 %v3946_v24, %v3946_v24 }
 0x26f   :  { %7086 = vmatprep.subr.bf16.mxu0 %v8965_v42  ;;  %v4040_v42 = vld [vmem:[#allocation8 + $0x280] sm:$0xff] }
 0x270   :  { %7126 = vmatpush1.bf16.msra.mxu1 %v9100_v41  ;;  %v9173_v41 = vcombine.high %v4176_v33, %v4180_v36  ;;  %v4164_v55 = vld [vmem:[#allocation8 + $0x660] sm:$0xff] }
 0x271   :  { %7127 = vmatprep.subr.bf16.mxu1 %v9093_v44  ;;  %v4044_v44 = vld [vmem:[#allocation8 + $0x2a0] sm:$0xff] }
 0x272   :  { %7087 = vmatpush1.bf16.msra.mxu0 %v8964_v9  ;;  %v9037_v9 = vcombine.high %v4040_v42, %v4044_v44  ;;  %v9036_v56 = vcombine.low %v4040_v42, %v4044_v44  ;;  %v4152_v50 = vld [vmem:[#allocation8 + $0x600] sm:$0xff] }
 0x273   :  { %7088 = vmatprep.subr.bf16.mxu0 %v8957_v51  ;;  %v4032_v51 = vld [vmem:[#allocation8 + $0x240] sm:$0xff] }
 0x274   :  { %7128 = vmatpush1.bf16.msra.mxu1 %v9092_v49  ;;  %v9165_v49 = vcombine.high %v4168_v52, %v4172_v45  ;;  %v4156_v4 = vld [vmem:[#allocation8 + $0x620] sm:$0xff] }
 0x275   :  { %7129 = vmatprep.subr.bf16.mxu1 %v9085_v62  ;;  %v4036_v62 = vld [vmem:[#allocation8 + $0x260] sm:$0xff] }
 0x276   :  { %7089 = vmatpush1.bf16.msra.mxu0 %v8956_v60  ;;  %v9029_v60 = vcombine.high %v4032_v51, %v4036_v62  ;;  %v9028_v6 = vcombine.low %v4032_v51, %v4036_v62  ;;  %v4276_v14 = vld [vmem:[#allocation8 + $0x9e0] sm:$0xff] }
 0x277   :  { %7090 = vmatprep.subr.bf16.mxu0 %v9077_v2  ;;  %v4024_v2 = vld [vmem:[#allocation8 + $0x200] sm:$0xff] }
 0x278   :  { %7130 = vmatpush1.bf16.msra.mxu1 %v9084_v1  ;;  %v9157_v1 = vcombine.high %v4160_v54, %v4164_v55  ;;  %v4400_v23 = vld [vmem:[#allocation8 + $0xdc0] sm:$0xff] }
 0x279   :  { %7131 = vmatprep.subr.bf16.mxu1 %v9205_v3  ;;  %v4028_v3 = vld [vmem:[#allocation8 + $0x220] sm:$0xff] }
 0x27a   :  { %7091 = vmatpush2.bf16.msra.mxu0 %v9076_v7  ;;  %v9156_v7 = vcombine.low %v4160_v54, %v4164_v55  ;;  %v4404_v17 = vld [vmem:[#allocation8 + $0xde0] sm:$0xff] }
 0x27b   :  { %7092 = vmatprep.subr.bf16.mxu0 %v9069_v10  ;;  %v9149_v10 = vcombine.high %v4152_v50, %v4156_v4  ;;  %v4264_v25 = vld [vmem:[#allocation8 + $0x980] sm:$0xff]  ;;  %v9397_v29 = vcombine.high %v4400_v23, %v4404_v17  ;;  %v9396_v11 = vcombine.low %v4400_v23, %v4404_v17 }
 0x27c   :  { %7132 = vmatpush2.bf16.msra.mxu1 %v9204_v8  ;;  %v9021_v8 = vcombine.high %v4024_v2, %v4028_v3  ;;  %v4268_v27 = vld [vmem:[#allocation8 + $0x9a0] sm:$0xff] }
 0x27d   :  { %7133 = vmatprep.subr.bf16.mxu1 %v9197_v12  ;;  %v4272_v12 = vld [vmem:[#allocation8 + $0x9c0] sm:$0xff]  ;;  %v9260_v42 = vcombine.low %v4264_v25, %v4268_v27 }
 0x27e   :  { %7093 = vmatpush2.bf16.msra.mxu0 %v9068_v22  ;;  %v9020_v22 = vcombine.low %v4024_v2, %v4028_v3  ;;  %v9268_v40 = vcombine.low %v4272_v12, %v4276_v14  ;;  %v4256_v33 = vld [vmem:[#allocation8 + $0x940] sm:$0xff] }
 0x27f   :  { %7094 = vmatprep.subr.bf16.mxu0 %v9061_v19  ;;  %v9148_v19 = vcombine.low %v4152_v50, %v4156_v4  ;;  %v4260_v15 = vld [vmem:[#allocation8 + $0x960] sm:$0xff] }
 0x280   :  { %7134 = vmatpush2.bf16.msra.mxu1 %v9196_v28  ;;  %v3944_v28 = vmax.f32 %v10026_v38, 0.0  ;;  %v9261_v38 = vcombine.high %v4264_v25, %v4268_v27  ;;  %v9253_v52 = vcombine.high %v4256_v33, %v4260_v15  ;;  %v4376_v54 = vld [vmem:[#allocation8 + $0xd00] sm:$0xff] }
 0x281   :  { %7135 = vmatprep.subr.bf16.mxu1 %v9189_v21  ;;  %v9269_v21 = vcombine.high %v4272_v12, %v4276_v14  ;;  %v4240_v4 = vld [vmem:[#allocation8 + $0x8c0] sm:$0xff] }
 0x282   :  { %7095 = vmatpush2.bf16.msra.mxu0 %v9060_v30  ;;  %v4392_v30 = vld [vmem:[#allocation8 + $0xd80] sm:$0xff] }
 0x283   :  { %7096 = vmatprep.subr.bf16.mxu0 %v9053_v63  ;;  %v3653_v63 = vadd.f32 %v10077_v57, %v653_v18  ;;  %v4388_v57 = vld [vmem:[#allocation8 + $0xd60] sm:$0xff]  ;;  %v10104_v18 = vld [vmem:[#allocation8 + $0x5c8] sm:$0xff] }
 0x284   :  { %7136 = vmatpush2.bf16.msra.mxu1 %v9188_v31  ;;  %v4396_v31 = vld [vmem:[#allocation8 + $0xda0] sm:$0xff] }
 0x285   :  { %7137 = vmatprep.subr.bf16.mxu1 %v9181_v39  ;;  %v10091_v39 = vpack.c.bf16 %v3944_v28, %v3944_v28  ;;  %v9389_v36 = vcombine.high %v4392_v30, %v4396_v31  ;;  %v9388_v45 = vcombine.low %v4392_v30, %v4396_v31  ;;  %v4232_v28 = vld [vmem:[#allocation8 + $0x880] sm:$0xff] }
 0x286   :  { %7097 = vmatpush2.bf16.msra.mxu0 %v9052_v53  ;;  %v4360_v25 = vld [vmem:[#allocation8 + $0xc80] sm:$0xff] }
 0x287   :  { %7098 = vmatprep.subr.bf16.mxu0 %v9045_v16  ;;  %v3694_v16 = vadd.f32 %v10082_v32, %v3653_v63  ;;  %v4380_v32 = vld [vmem:[#allocation8 + $0xd20] sm:$0xff] }
 0x288   :  { %7138 = vmatpush2.bf16.msra.mxu1 %v9180_v37  ;;  %v4384_v37 = vld [vmem:[#allocation8 + $0xd40] sm:$0xff]  ;;  %v9372_v17 = vcombine.low %v4376_v54, %v4380_v32 }
 0x289   :  { %7139 = vmatprep.subr.bf16.mxu1 %v9173_v41  ;;  %v9381_v51 = vcombine.high %v4384_v37, %v4388_v57  ;;  %v9380_v2 = vcombine.low %v4384_v37, %v4388_v57  ;;  %v4364_v27 = vld [vmem:[#allocation8 + $0xca0] sm:$0xff] }
 0x28a   :  { %7099 = vmatpush2.bf16.msra.mxu0 %v9044_v46  ;;  %v4224_v63 = vld [vmem:[#allocation8 + $0x840] sm:$0xff]  ;;  %v9356_v37 = vcombine.low %v4360_v25, %v4364_v27 }
 0x28b   :  { %7100 = vmatprep.subr.bf16.mxu0 %v9037_v9  ;;  %v4248_v9 = vld [vmem:[#allocation8 + $0x900] sm:$0xff] }
 0x28c   :  { %7140 = vmatpush2.bf16.msra.mxu1 %v9172_v47  ;;  %v4216_v57 = vld [vmem:[#allocation8 + $0x800] sm:$0xff] }
 0x28d   :  { %7141 = vmatprep.subr.bf16.mxu1 %v9165_v49  ;;  %v4252_v49 = vld [vmem:[#allocation8 + $0x920] sm:$0xff] }
 0x28e   :  { %7101 = vmatpush2.bf16.msra.mxu0 %v9036_v56  ;;  %v9244_v14 = vcombine.low %v4248_v9, %v4252_v49 }
 0x28f   :  { %7102 = vmatprep.subr.bf16.mxu0 %v9029_v60 }
 0x290   :  { %7142 = vmatpush2.bf16.msra.mxu1 %v9164_v59  ;;  %v9252_v59 = vcombine.low %v4256_v33, %v4260_v15  ;;  %v4356_v33 = vld [vmem:[#allocation8 + $0xc60] sm:$0xff] }
 0x291   :  { %7143 = vmatprep.subr.bf16.mxu1 %v9157_v1  ;;  %v9245_v1 = vcombine.high %v4248_v9, %v4252_v49  ;;  %v4336_v9 = vld [vmem:[#allocation8 + $0xbc0] sm:$0xff] }
 0x292   :  { %7103 = vmatpush2.bf16.msra.mxu0 %v9028_v6  ;;  %v4244_v6 = vld [vmem:[#allocation8 + $0x8e0] sm:$0xff] }
 0x293   :  { %7104 = vmatprep.subr.bf16.mxu0 %v9021_v8  ;;  %v4368_v8 = vld [vmem:[#allocation8 + $0xcc0] sm:$0xff]  ;;  %v9237_v23 = vcombine.high %v4240_v4, %v4244_v6 }
 0x294   :  { %7144 = vmatpush2.bf16.msra.mxu1 %v9156_v7  ;;  %v9373_v7 = vcombine.high %v4376_v54, %v4380_v32  ;;  %v4340_v49 = vld [vmem:[#allocation8 + $0xbe0] sm:$0xff] }
 0x295   :  { %7145 = vmatprep.subr.bf16.mxu1 %v9149_v10  ;;  %v4372_v10 = vld [vmem:[#allocation8 + $0xce0] sm:$0xff] }
 0x296   :  { %7105 = vmatpush2.bf16.msra.mxu0 %v9020_v22  ;;  %v10106_v22 = vld [vmem:[#allocation8 + $0x5e8] sm:$0xff]  ;;  %v9364_v31 = vcombine.low %v4368_v8, %v4372_v10  ;;  %v4468_v54 = vld [vmem:[#allocation8 + $0xfe0] sm:$0xff] }
 0x297   :  { %7156 = vmatprep.subr.bf16.mxu0 %v9269_v21  ;;  %v9365_v21 = vcombine.high %v4368_v8, %v4372_v10  ;;  %v9142_v24 = vcombine.low %v10104_v18, %v10106_v22  ;;  %v4324_v8 = vld [vmem:[#allocation8 + $0xb60] sm:$0xff] }
 0x298   :  { %7146 = vmatpush2.bf16.msra.mxu1 %v9148_v19  ;;  %v4236_v19 = vld [vmem:[#allocation8 + $0x8a0] sm:$0xff] }
 0x299   :  { %7197 = vmatprep.subr.bf16.mxu1 %v9397_v29  ;;  %v10095_v53 = vpop.f32.mrf.mxu0  ;;  %7107 = vmatmul.mubr.bf16.vlgmr.msra.gmra.mxu0 %v10091_v39  ;;  %v9236_v29 = vcombine.low %v4240_v4, %v4244_v6  ;;  %v9229_v30 = vcombine.high %v4232_v28, %v4236_v19  ;;  %v9228_v15 = vcombine.low %v4232_v28, %v4236_v19 }
 0x29a   :  { %7157 = vmatpush1.bf16.msra.mxu0 %v9268_v40  ;;  %v4228_v40 = vld [vmem:[#allocation8 + $0x860] sm:$0xff] }
 0x29b   :  { %v10099_v41 = vpop.f32.mrf.mxu1  ;;  %7148 = vmatmul.mubr.bf16.vlgmr.msra.gmra.mxu1 %v10093_v35  ;;  %v3734_v44 = vpop.f32.mrf.mxu0  ;;  %7158 = vmatprep.subr.bf16.mxu0 %v9261_v38  ;;  %v9357_v38 = vcombine.high %v4360_v25, %v4364_v27  ;;  %v4316_v25 = vld [vmem:[#allocation8 + $0xb20] sm:$0xff] }
 0x29c   :  { %7198 = vmatpush1.bf16.msra.mxu1 %v9396_v11  ;;  %v3735_v46 = vadd.f32 %v3734_v44, %v3694_v16  ;;  %v4352_v11 = vld [vmem:[#allocation8 + $0xc40] sm:$0xff] }
 0x29d   :  { %v3775_v47 = vpop.f32.mrf.mxu1  ;;  %7199 = vmatprep.subr.bf16.mxu1 %v9389_v36  ;;  %v3736_v62 = vpop.f32.mrf.mxu0  ;;  %v9221_v36 = vcombine.high %v4224_v63, %v4228_v40  ;;  %v4220_v16 = vld [vmem:[#allocation8 + $0x820] sm:$0xff] }
 0x29e   :  { %v3776_v55 = vadd.f32 %v3775_v47, %v3735_v46  ;;  %7159 = vmatpush1.bf16.msra.mxu0 %v9260_v42  ;;  %v9349_v42 = vcombine.high %v4352_v11, %v4356_v33  ;;  %v4344_v44 = vld [vmem:[#allocation8 + $0xc00] sm:$0xff]  ;;  %v9213_v46 = vcombine.high %v4216_v57, %v4220_v16  ;;  %v9348_v47 = vcombine.low %v4352_v11, %v4356_v33 }
 0x29f   :  { %v3777_v56 = vpop.f32.mrf.mxu1  ;;  %v3737_v60 = vpop.f32.mrf.mxu0  ;;  %7160 = vmatprep.subr.bf16.mxu0 %v9253_v52  ;;  %v4348_v52 = vld [vmem:[#allocation8 + $0xc20] sm:$0xff]  ;;  %v9212_v32 = vcombine.low %v4216_v57, %v4220_v16 }
 0x2a0   :  { %7200 = vmatpush1.bf16.msra.mxu1 %v9388_v45  ;;  %v3949_v3 = vmax.f32 %v3776_v55, 0.0  ;;  %v9220_v45 = vcombine.low %v4224_v63, %v4228_v40  ;;  %v4464_v62 = vld [vmem:[#allocation8 + $0xfc0] sm:$0xff]  ;;  %v9333_v55 = vcombine.high %v4336_v9, %v4340_v49  ;;  %v9340_v56 = vcombine.low %v4344_v44, %v4348_v52 }
 0x2a1   :  { %v3778_v50 = vpop.f32.mrf.mxu1  ;;  %7201 = vmatprep.subr.bf16.mxu1 %v9381_v51  ;;  %v9341_v51 = vcombine.high %v4344_v44, %v4348_v52  ;;  %v4332_v60 = vld [vmem:[#allocation8 + $0xba0] sm:$0xff]  ;;  %v9460_v6 = vcombine.low %v4464_v62, %v4468_v54 }
 0x2a2   :  { %v10102_v12 = vpack.c.bf16 %v3949_v3, %v3949_v3  ;;  %7161 = vmatpush1.bf16.msra.mxu0 %v9252_v59  ;;  %v4328_v59 = vld [vmem:[#allocation8 + $0xb80] sm:$0xff]  ;;  %v9332_v50 = vcombine.low %v4336_v9, %v4340_v49 }
 0x2a3   :  { %7162 = vmatprep.subr.bf16.mxu0 %v9245_v1  ;;  %v9461_v1 = vcombine.high %v4464_v62, %v4468_v54  ;;  %v4460_v3 = vld [vmem:[#allocation8 + $0xfa0] sm:$0xff]  ;;  %v9325_v4 = vcombine.high %v4328_v59, %v4332_v60 }
 0x2a4   :  { %7202 = vmatpush1.bf16.msra.mxu1 %v9380_v2  ;;  %7188 = vmatprep.mubr.bf16.mxu0 %v10102_v12  ;;  %v4456_v2 = vld [vmem:[#allocation8 + $0xf80] sm:$0xff] }
 0x2a5   :  { %7203 = vmatprep.subr.bf16.mxu1 %v9373_v7  ;;  %v4320_v7 = vld [vmem:[#allocation8 + $0xb40] sm:$0xff]  ;;  %v9453_v10 = vcombine.high %v4456_v2, %v4460_v3  ;;  %v9452_v19 = vcombine.low %v4456_v2, %v4460_v3 }
 0x2a6   :  { %7163 = vmatpush1.bf16.msra.mxu0 %v9244_v14  ;;  %v4448_v14 = vld [vmem:[#allocation8 + $0xf40] sm:$0xff]  ;;  %v9317_v28 = vcombine.high %v4320_v7, %v4324_v8 }
 0x2a7   :  { %7164 = vmatprep.subr.bf16.mxu0 %v9237_v23  ;;  %v4452_v23 = vld [vmem:[#allocation8 + $0xf60] sm:$0xff] }
 0x2a8   :  { %7204 = vmatpush1.bf16.msra.mxu1 %v9372_v17  ;;  %v9324_v17 = vcombine.low %v4328_v59, %v4332_v60  ;;  %v9445_v27 = vcombine.high %v4448_v14, %v4452_v23  ;;  %v9444_v40 = vcombine.low %v4448_v14, %v4452_v23  ;;  %v4308_v11 = vld [vmem:[#allocation8 + $0xae0] sm:$0xff]  ;;  %v3733_v59 = vadd.f32 %v10095_v53, %v10079_v61  ;;  %v4017_v23 = vld [vmem:[#allocation8 + $0x1c8] sm:$0xff] }
 0x2a9   :  { %7205 = vmatprep.subr.bf16.mxu1 %v9365_v21  ;;  %v4312_v21 = vld [vmem:[#allocation8 + $0xb00] sm:$0xff]  ;;  %v4021_v61 = vld [vmem:[#allocation8 + $0x1e8] sm:$0xff] }
 0x2aa   :  { %7165 = vmatpush1.bf16.msra.mxu0 %v9236_v29  ;;  %v4440_v29 = vld [vmem:[#allocation8 + $0xf00] sm:$0xff]  ;;  %v9309_v63 = vcombine.high %v4312_v21, %v4316_v25 }
 0x2ab   :  { %7166 = vmatprep.subr.bf16.mxu0 %v9229_v30  ;;  %v4444_v30 = vld [vmem:[#allocation8 + $0xf20] sm:$0xff] }
 0x2ac   :  { %7206 = vmatpush1.bf16.msra.mxu1 %v9364_v31  ;;  %v9316_v31 = vcombine.low %v4320_v7, %v4324_v8  ;;  %v9437_v33 = vcombine.high %v4440_v29, %v4444_v30  ;;  %v9436_v16 = vcombine.low %v4440_v29, %v4444_v30  ;;  %v4300_v44 = vld [vmem:[#allocation8 + $0xaa0] sm:$0xff]  ;;  %v3774_v8 = vadd.f32 %v10099_v41, %v3733_v59  ;;  %v3969_v59 = vld [vmem:[#allocation8 + $0x48] sm:$0xff] }
 0x2ad   :  { %7207 = vmatprep.subr.bf16.mxu1 %v9357_v38  ;;  %v4304_v38 = vld [vmem:[#allocation8 + $0xac0] sm:$0xff]  ;;  %v9143_v41 = vcombine.high %v10104_v18, %v10106_v22  ;;  %v9014_v29 = vcombine.low %v4017_v23, %v4021_v61 }
 0x2ae   :  { %7167 = vmatpush1.bf16.msra.mxu0 %v9228_v15  ;;  %v4432_v15 = vld [vmem:[#allocation8 + $0xec0] sm:$0xff]  ;;  %v9301_v57 = vcombine.high %v4304_v38, %v4308_v11 }
 0x2af   :  { %7168 = vmatprep.subr.bf16.mxu0 %v9221_v36  ;;  %v4436_v36 = vld [vmem:[#allocation8 + $0xee0] sm:$0xff] }
 0x2b0   :  { %7208 = vmatpush1.bf16.msra.mxu1 %v9356_v37  ;;  %v9308_v37 = vcombine.low %v4312_v21, %v4316_v25  ;;  %v9429_v52 = vcombine.high %v4432_v15, %v4436_v36  ;;  %v9428_v49 = vcombine.low %v4432_v15, %v4436_v36  ;;  %v4292_v62 = vld [vmem:[#allocation8 + $0xa60] sm:$0xff]  ;;  %v4009_v25 = vld [vmem:[#allocation8 + $0x188] sm:$0xff] }
 0x2b1   :  { %7209 = vmatprep.subr.bf16.mxu1 %v9349_v42  ;;  %v4296_v42 = vld [vmem:[#allocation8 + $0xa80] sm:$0xff] }
 0x2b2   :  { %7169 = vmatpush1.bf16.msra.mxu0 %v9220_v45  ;;  %v4424_v45 = vld [vmem:[#allocation8 + $0xe80] sm:$0xff]  ;;  %v9293_v9 = vcombine.high %v4296_v42, %v4300_v44 }
 0x2b3   :  { %7170 = vmatprep.subr.bf16.mxu0 %v9213_v46  ;;  %v4428_v46 = vld [vmem:[#allocation8 + $0xea0] sm:$0xff] }
 0x2b4   :  { %7210 = vmatpush1.bf16.msra.mxu1 %v9348_v47  ;;  %v9300_v47 = vcombine.low %v4304_v38, %v4308_v11  ;;  %v9421_v54 = vcombine.high %v4424_v45, %v4428_v46  ;;  %v4280_v2 = vld [vmem:[#allocation8 + $0xa00] sm:$0xff] }
 0x2b5   :  { %7211 = vmatprep.subr.bf16.mxu1 %v9341_v51  ;;  %v4288_v51 = vld [vmem:[#allocation8 + $0xa40] sm:$0xff] }
 0x2b6   :  { %7171 = vmatpush1.bf16.msra.mxu0 %v9212_v32  ;;  %v4416_v32 = vld [vmem:[#allocation8 + $0xe40] sm:$0xff]  ;;  %v9285_v60 = vcombine.high %v4288_v51, %v4292_v62  ;;  %v9284_v7 = vcombine.low %v4288_v51, %v4292_v62 }
 0x2b7   :  { %7172 = vmatprep.subr.bf16.mxu0 %v9333_v55  ;;  %v4420_v55 = vld [vmem:[#allocation8 + $0xe60] sm:$0xff] }
 0x2b8   :  { %7212 = vmatpush1.bf16.msra.mxu1 %v9340_v56  ;;  %v9292_v56 = vcombine.low %v4296_v42, %v4300_v44  ;;  %v4284_v3 = vld [vmem:[#allocation8 + $0xa20] sm:$0xff]  ;;  %v9412_v14 = vcombine.low %v4416_v32, %v4420_v55 }
 0x2b9   :  { %7213 = vmatprep.subr.bf16.mxu1 %v9461_v1  ;;  %v9420_v1 = vcombine.low %v4424_v45, %v4428_v46 }
 0x2ba   :  { %7173 = vmatpush2.bf16.msra.mxu0 %v9332_v50  ;;  %v9413_v50 = vcombine.high %v4416_v32, %v4420_v55  ;;  %v3981_v32 = vld [vmem:[#allocation8 + $0xa8] sm:$0xff] }
 0x2bb   :  { %7174 = vmatprep.subr.bf16.mxu0 %v9325_v4  ;;  %v4408_v4 = vld [vmem:[#allocation8 + $0xe00] sm:$0xff] }
 0x2bc   :  { %7214 = vmatpush2.bf16.msra.mxu1 %v9460_v6  ;;  %v4412_v6 = vld [vmem:[#allocation8 + $0xe20] sm:$0xff] }
 0x2bd   :  { %7215 = vmatprep.subr.bf16.mxu1 %v9453_v10  ;;  %v9277_v10 = vcombine.high %v4280_v2, %v4284_v3  ;;  %v9405_v53 = vcombine.high %v4408_v4, %v4412_v6  ;;  %v9404_v21 = vcombine.low %v4408_v4, %v4412_v6 }
 0x2be   :  { %7175 = vmatpush2.bf16.msra.mxu0 %v9324_v17  ;;  %v9276_v17 = vcombine.low %v4280_v2, %v4284_v3  ;;  %v3961_v3 = vld [vmem:[#allocation8 + $0x8] sm:$0xff] }
 0x2bf   :  { %7176 = vmatprep.subr.bf16.mxu0 %v9317_v28  ;;  %v3948_v28 = vmax.f32 %v3774_v8, 0.0  ;;  %v4085_v8 = vld [vmem:[#allocation8 + $0x3e8] sm:$0xff] }
 0x2c0   :  { %7216 = vmatpush2.bf16.msra.mxu1 %v9452_v19  ;;  %v9015_v19 = vcombine.high %v4017_v23, %v4021_v61  ;;  %v4073_v23 = vld [vmem:[#allocation8 + $0x388] sm:$0xff] }
 0x2c1   :  { %7217 = vmatprep.subr.bf16.mxu1 %v9445_v27  ;;  %v4013_v27 = vld [vmem:[#allocation8 + $0x1a8] sm:$0xff]  ;;  %v10116_v30 = vpack.c.bf16 %v3948_v28, %v3948_v28 }
 0x2c2   :  { %7177 = vmatpush2.bf16.msra.mxu0 %v9316_v31  ;;  %v9007_v31 = vcombine.high %v4009_v25, %v4013_v27  ;;  %v4077_v61 = vld [vmem:[#allocation8 + $0x3a8] sm:$0xff] }
 0x2c3   :  { %7178 = vmatprep.subr.bf16.mxu0 %v9309_v63  ;;  %v4001_v63 = vld [vmem:[#allocation8 + $0x148] sm:$0xff] }
 0x2c4   :  { %7218 = vmatpush2.bf16.msra.mxu1 %v9444_v40  ;;  %v4005_v40 = vld [vmem:[#allocation8 + $0x168] sm:$0xff] }
 0x2c5   :  { %7219 = vmatprep.subr.bf16.mxu1 %v9437_v33  ;;  %v9006_v33 = vcombine.low %v4009_v25, %v4013_v27  ;;  %v8999_v36 = vcombine.high %v4001_v63, %v4005_v40  ;;  %v4065_v28 = vld [vmem:[#allocation8 + $0x348] sm:$0xff] }
 0x2c6   :  { %7179 = vmatpush2.bf16.msra.mxu0 %v9308_v37  ;;  %v4057_v27 = vld [vmem:[#allocation8 + $0x308] sm:$0xff] }
 0x2c7   :  { %7180 = vmatprep.subr.bf16.mxu0 %v9301_v57  ;;  %v3993_v57 = vld [vmem:[#allocation8 + $0x108] sm:$0xff] }
 0x2c8   :  { %7220 = vmatpush2.bf16.msra.mxu1 %v9436_v16  ;;  %v3997_v16 = vld [vmem:[#allocation8 + $0x128] sm:$0xff] }
 0x2c9   :  { %7221 = vmatprep.subr.bf16.mxu1 %v9429_v52  ;;  %v8998_v52 = vcombine.low %v4001_v63, %v4005_v40  ;;  %v8991_v46 = vcombine.high %v3993_v57, %v3997_v16  ;;  %v8990_v51 = vcombine.low %v3993_v57, %v3997_v16  ;;  %v4049_v63 = vld [vmem:[#allocation8 + $0x2c8] sm:$0xff] }
 0x2ca   :  { %7181 = vmatpush2.bf16.msra.mxu0 %v9300_v47  ;;  %v4053_v40 = vld [vmem:[#allocation8 + $0x2e8] sm:$0xff] }
 0x2cb   :  { %7182 = vmatprep.subr.bf16.mxu0 %v9293_v9  ;;  %v3985_v9 = vld [vmem:[#allocation8 + $0xc8] sm:$0xff] }
 0x2cc   :  { %7222 = vmatpush2.bf16.msra.mxu1 %v9428_v49  ;;  %v3989_v49 = vld [vmem:[#allocation8 + $0xe8] sm:$0xff] }
 0x2cd   :  { %7223 = vmatprep.subr.bf16.mxu1 %v9421_v54  ;;  %v8983_v62 = vcombine.high %v3985_v9, %v3989_v49  ;;  %v3977_v54 = vld [vmem:[#allocation8 + $0x88] sm:$0xff]  ;;  %v8982_v55 = vcombine.low %v3985_v9, %v3989_v49  ;;  %v656_v9 = vsub.s32 6, %v9946_v43 }
 0x2ce   :  { %7183 = vmatpush2.bf16.msra.mxu0 %v9292_v56  ;;  %v8975_v56 = vcombine.high %v3977_v54, %v3981_v32  ;;  %v4041_v57 = vld [vmem:[#allocation8 + $0x288] sm:$0xff] }
 0x2cf   :  { %7184 = vmatprep.subr.bf16.mxu0 %v9285_v60  ;;  %v3973_v60 = vld [vmem:[#allocation8 + $0x68] sm:$0xff] }
 0x2d0   :  { %7224 = vmatpush2.bf16.msra.mxu1 %v9420_v1  ;;  %v8974_v1 = vcombine.low %v3977_v54, %v3981_v32  ;;  %v8967_v2 = vcombine.high %v3969_v59, %v3973_v60  ;;  %v8966_v4 = vcombine.low %v3969_v59, %v3973_v60  ;;  %v4045_v16 = vld [vmem:[#allocation8 + $0x2a8] sm:$0xff] }
 0x2d1   :  { %7225 = vmatprep.subr.bf16.mxu1 %v9413_v50  ;;  %v3965_v50 = vld [vmem:[#allocation8 + $0x28] sm:$0xff] }
 0x2d2   :  { %7185 = vmatpush2.bf16.msra.mxu0 %v9284_v7  ;;  %v8959_v6 = vcombine.high %v3961_v3, %v3965_v50  ;;  %v4081_v7 = vld [vmem:[#allocation8 + $0x3c8] sm:$0xff] }
 0x2d3   :  { %7186 = vmatprep.subr.bf16.mxu0 %v9277_v10  ;;  %v8958_v10 = vcombine.low %v3961_v3, %v3965_v50  ;;  %v4025_v49 = vld [vmem:[#allocation8 + $0x208] sm:$0xff] }
 0x2d4   :  { %7226 = vmatpush2.bf16.msra.mxu1 %v9412_v14  ;;  %v9079_v14 = vcombine.high %v4081_v7, %v4085_v8  ;;  %v4273_v59 = vld [vmem:[#allocation8 + $0x9c8] sm:$0xff] }
 0x2d5   :  { %7227 = vmatprep.subr.bf16.mxu1 %v9405_v53  ;;  %v9078_v53 = vcombine.low %v4081_v7, %v4085_v8  ;;  %v4277_v60 = vld [vmem:[#allocation8 + $0x9e8] sm:$0xff] }
 0x2d6   :  { %7187 = vmatpush2.bf16.msra.mxu0 %v9276_v17  ;;  %v9071_v17 = vcombine.high %v4073_v23, %v4077_v61  ;;  %v9271_v3 = vcombine.high %v4273_v59, %v4277_v60  ;;  %v9270_v8 = vcombine.low %v4273_v59, %v4277_v60  ;;  %v4233_v59 = vld [vmem:[#allocation8 + $0x888] sm:$0xff] }
 0x2d7   :  { %7238 = vmatprep.subr.bf16.mxu0 %v9015_v19  ;;  %v4069_v19 = vld [vmem:[#allocation8 + $0x368] sm:$0xff] }
 0x2d8   :  { %7228 = vmatpush2.bf16.msra.mxu1 %v9404_v21  ;;  %v9070_v21 = vcombine.low %v4073_v23, %v4077_v61  ;;  %v9063_v25 = vcombine.high %v4065_v28, %v4069_v19  ;;  %v4257_v23 = vld [vmem:[#allocation8 + $0x948] sm:$0xff] }
 0x2d9   :  { %7279 = vmatprep.subr.bf16.mxu1 %v9143_v41  ;;  %v10118_v38 = vpop.f32.mrf.mxu0  ;;  %7189 = vmatmul.mubr.bf16.vlgmr.msra.gmra.mxu0 %v10116_v30  ;;  %v4061_v41 = vld [vmem:[#allocation8 + $0x328] sm:$0xff] }
 0x2da   :  { %7239 = vmatpush1.bf16.msra.mxu0 %v9014_v29  ;;  %7270 = vmatprep.mubr.bf16.mxu0 %v10070_v48  ;;  %v9062_v29 = vcombine.low %v4065_v28, %v4069_v19  ;;  %v4261_v61 = vld [vmem:[#allocation8 + $0x968] sm:$0xff] }
 0x2db   :  { %v10121_v11 = vpop.f32.mrf.mxu1  ;;  %v10124_v15 = vpop.f32.mrf.mxu0  ;;  %7240 = vmatprep.subr.bf16.mxu0 %v9007_v31  ;;  %v9055_v31 = vcombine.high %v4057_v27, %v4061_v41  ;;  %v4237_v60 = vld [vmem:[#allocation8 + $0x8a8] sm:$0xff] }
 0x2dd   :  { %v10126_v37 = vpop.f32.mrf.mxu1  ;;  %v3818_v42 = vpop.f32.mrf.mxu0 }
 0x2de   :  { %7241 = vmatpush1.bf16.msra.mxu0 %v9006_v33  ;;  %v9054_v33 = vcombine.low %v4057_v27, %v4061_v41  ;;  %v9046_v42 = vcombine.low %v4049_v63, %v4053_v40 }
 0x2df   :  { %v3859_v44 = vpop.f32.mrf.mxu1  ;;  %v3819_v45 = vpop.f32.mrf.mxu0  ;;  %7242 = vmatprep.subr.bf16.mxu0 %v8999_v36  ;;  %v9047_v36 = vcombine.high %v4049_v63, %v4053_v40 }
 0x2e0   :  { %v9039_v44 = vcombine.high %v4041_v57, %v4045_v16  ;;  %v4037_v45 = vld [vmem:[#allocation8 + $0x268] sm:$0xff] }
 0x2e1   :  { %v3860_v47 = vpop.f32.mrf.mxu1 }
 0x2e2   :  { %7243 = vmatpush1.bf16.msra.mxu0 %v8998_v52  ;;  %v4033_v52 = vld [vmem:[#allocation8 + $0x248] sm:$0xff] }
 0x2e3   :  { %7244 = vmatprep.subr.bf16.mxu0 %v8991_v46  ;;  %v9038_v46 = vcombine.low %v4041_v57, %v4045_v16  ;;  %v9031_v47 = vcombine.high %v4033_v52, %v4037_v45  ;;  %v9030_v54 = vcombine.low %v4033_v52, %v4037_v45  ;;  %v4141_v52 = vld [vmem:[#allocation8 + $0x5a8] sm:$0xff] }
 0x2e4   :  { %v4241_v45 = vld [vmem:[#allocation8 + $0x8c8] sm:$0xff] }
 0x2e6   :  { %7245 = vmatpush1.bf16.msra.mxu0 %v8990_v51  ;;  %v4029_v51 = vld [vmem:[#allocation8 + $0x228] sm:$0xff] }
 0x2e7   :  { %7246 = vmatprep.subr.bf16.mxu0 %v8983_v62  ;;  %v660_v62 = vsub.s32 7, %v9946_v43  ;;  %v9023_v32 = vcombine.high %v4025_v49, %v4029_v51 }
 0x2ea   :  { %7247 = vmatpush1.bf16.msra.mxu0 %v8982_v55  ;;  %v9700_v55 = vld [vmem:[#allocation7] sm:$0xff] }
 0x2eb   :  { %7248 = vmatprep.subr.bf16.mxu0 %v8975_v56  ;;  %v657_v56 = vrot.slane %v9700_v55, %v656_v9 }
 0x2ed   :  { %v3815_v50 = vadd.f32 %v10118_v38, %v657_v56  ;;  %v4133_v56 = vld [vmem:[#allocation8 + $0x568] sm:$0xff] }
 0x2ee   :  { %7249 = vmatpush1.bf16.msra.mxu0 %v8974_v1  ;;  %v661_v1 = vrot.slane %v9700_v55, %v660_v62  ;;  %v4129_v55 = vld [vmem:[#allocation8 + $0x548] sm:$0xff] }
 0x2ef   :  { %7250 = vmatprep.subr.bf16.mxu0 %v8967_v2  ;;  %v9022_v2 = vcombine.low %v4025_v49, %v4029_v51 }
 0x2f0   :  { %v3817_v7 = vadd.f32 %v10124_v15, %v661_v1 }
 0x2f2   :  { %7251 = vmatpush1.bf16.msra.mxu0 %v8966_v4  ;;  %v4265_v4 = vld [vmem:[#allocation8 + $0x988] sm:$0xff] }
 0x2f3   :  { %7252 = vmatprep.subr.bf16.mxu0 %v8959_v6  ;;  %v4269_v6 = vld [vmem:[#allocation8 + $0x9a8] sm:$0xff] }
 0x2f4   :  { %v9262_v38 = vcombine.low %v4265_v4, %v4269_v6 }
 0x2f6   :  { %7253 = vmatpush1.bf16.msra.mxu0 %v8958_v10  ;;  %v9263_v10 = vcombine.high %v4265_v4, %v4269_v6  ;;  %v4121_v4 = vld [vmem:[#allocation8 + $0x508] sm:$0xff] }
 0x2f7   :  { %7254 = vmatprep.subr.bf16.mxu0 %v9079_v14  ;;  %v3856_v14 = vadd.f32 %v10121_v11, %v3815_v50  ;;  %v4249_v11 = vld [vmem:[#allocation8 + $0x908] sm:$0xff]  ;;  %v9231_v50 = vcombine.high %v4233_v59, %v4237_v60 }
 0x2f8   :  { %v4125_v6 = vld [vmem:[#allocation8 + $0x528] sm:$0xff] }
 0x2f9   :  { %v9119_v18 = vcombine.high %v4121_v4, %v4125_v6 }
 0x2fa   :  { %7255 = vmatpush2.bf16.msra.mxu0 %v9078_v53 }
 0x2fb   :  { %7256 = vmatprep.subr.bf16.mxu0 %v9071_v17  ;;  %v3858_v17 = vadd.f32 %v10126_v37, %v3817_v7  ;;  %v4225_v7 = vld [vmem:[#allocation8 + $0x848] sm:$0xff] }
 0x2fe   :  { %7257 = vmatpush2.bf16.msra.mxu0 %v9070_v21  ;;  %v9255_v21 = vcombine.high %v4257_v23, %v4261_v61 }
 0x2ff   :  { %7258 = vmatprep.subr.bf16.mxu0 %v9063_v25 }
 0x302   :  { %7259 = vmatpush2.bf16.msra.mxu0 %v9062_v29  ;;  %v4253_v29 = vld [vmem:[#allocation8 + $0x928] sm:$0xff] }
 0x303   :  { %7260 = vmatprep.subr.bf16.mxu0 %v9055_v31  ;;  %v9247_v57 = vcombine.high %v4249_v11, %v4253_v29  ;;  %v9246_v51 = vcombine.low %v4249_v11, %v4253_v29 }
 0x306   :  { %7261 = vmatpush2.bf16.msra.mxu0 %v9054_v33  ;;  %v9254_v33 = vcombine.low %v4257_v23, %v4261_v61  ;;  %v4117_v23 = vld [vmem:[#allocation8 + $0x4e8] sm:$0xff] }
 0x307   :  { %7262 = vmatprep.subr.bf16.mxu0 %v9047_v36  ;;  %v4217_v61 = vld [vmem:[#allocation8 + $0x808] sm:$0xff] }
 0x30a   :  { %7263 = vmatpush2.bf16.msra.mxu0 %v9046_v42 }
 0x30b   :  { %7264 = vmatprep.subr.bf16.mxu0 %v9039_v44  ;;  %v4137_v44 = vld [vmem:[#allocation8 + $0x588] sm:$0xff] }
 0x30c   :  { %v9134_v1 = vcombine.low %v4137_v44, %v4141_v52 }
 0x30e   :  { %7265 = vmatpush2.bf16.msra.mxu0 %v9038_v46  ;;  %v4245_v46 = vld [vmem:[#allocation8 + $0x8e8] sm:$0xff] }
 0x30f   :  { %7266 = vmatprep.subr.bf16.mxu0 %v9031_v47 }
 0x312   :  { %7267 = vmatpush2.bf16.msra.mxu0 %v9030_v54  ;;  %v9135_v54 = vcombine.high %v4137_v44, %v4141_v52  ;;  %v4089_v44 = vld [vmem:[#allocation8 + $0x408] sm:$0xff] }
 0x313   :  { %7268 = vmatprep.subr.bf16.mxu0 %v9023_v32  ;;  %v9239_v32 = vcombine.high %v4241_v45, %v4245_v46  ;;  %v4093_v52 = vld [vmem:[#allocation8 + $0x428] sm:$0xff] }
 0x316   :  { %7269 = vmatpush2.bf16.msra.mxu0 %v9022_v2  ;;  %v9238_v2 = vcombine.low %v4241_v45, %v4245_v46  ;;  %v4321_v45 = vld [vmem:[#allocation8 + $0xb48] sm:$0xff] }
 0x317   :  { %7320 = vmatprep.subr.bf16.mxu0 %v9271_v3  ;;  %v9127_v3 = vcombine.high %v4129_v55, %v4133_v56  ;;  %v4325_v46 = vld [vmem:[#allocation8 + $0xb68] sm:$0xff] }
 0x319   :  { %v3896_v53 = vpop.f32.mrf.mxu0  ;;  %7271 = vmatmul.mubr.bf16.vlgmr.msra.gmra.mxu0 %v10091_v39 }
 0x31a   :  { %v3897_v28 = vadd.f32 %v3896_v53, %v3856_v14  ;;  %7321 = vmatpush1.bf16.msra.mxu0 %v9270_v8  ;;  %7352 = vmatprep.mubr.bf16.mxu0 %v10102_v12  ;;  %v4229_v8 = vld [vmem:[#allocation8 + $0x868] sm:$0xff]  ;;  %v9230_v14 = vcombine.low %v4233_v59, %v4237_v60 }
 0x31b   :  { %v3937_v19 = vpop.f32.mrf.mxu1  ;;  %v3898_v15 = vpop.f32.mrf.mxu0  ;;  %7322 = vmatprep.subr.bf16.mxu0 %v9263_v10  ;;  %v9126_v10 = vcombine.low %v4129_v55, %v4133_v56  ;;  %v9223_v22 = vcombine.high %v4225_v7, %v4229_v8  ;;  %v4221_v53 = vld [vmem:[#allocation8 + $0x828] sm:$0xff]  ;;  %v9319_v55 = vcombine.high %v4321_v45, %v4325_v46 }
 0x31c   :  { %v3938_v25 = vadd.f32 %v3937_v19, %v3897_v28  ;;  %v3899_v27 = vadd.f32 %v3898_v15, %v3858_v17  ;;  %v9118_v17 = vcombine.low %v4121_v4, %v4125_v6  ;;  %v9222_v28 = vcombine.low %v4225_v7, %v4229_v8  ;;  %v4105_v15 = vld [vmem:[#allocation8 + $0x488] sm:$0xff] }
 0x31d   :  { %v3939_v41 = vpop.f32.mrf.mxu1  ;;  %v3900_v31 = vpop.f32.mrf.mxu0  ;;  %v9214_v11 = vcombine.low %v4217_v61, %v4221_v53  ;;  %v4209_v56 = vld [vmem:[#allocation8 + $0x7c8] sm:$0xff] }
 0x31e   :  { %v3940_v63 = vadd.f32 %v3939_v41, %v3899_v27  ;;  %7323 = vmatpush1.bf16.msra.mxu0 %v9262_v38  ;;  %v3950_v37 = vmax.f32 %v3938_v25, 0.0  ;;  %v9215_v38 = vcombine.high %v4217_v61, %v4221_v53  ;;  %v4337_v25 = vld [vmem:[#allocation8 + $0xbc8] sm:$0xff] }
 0x31f   :  { %v3941_v40 = vpop.f32.mrf.mxu1  ;;  %v3901_v36 = vpop.f32.mrf.mxu0  ;;  %7324 = vmatprep.subr.bf16.mxu0 %v9255_v21  ;;  %v4109_v21 = vld [vmem:[#allocation8 + $0x4a8] sm:$0xff] }
 0x320   :  { %v3951_v16 = vmax.f32 %v3940_v63, 0.0  ;;  %v10142_v49 = vpack.c.bf16 %v3950_v37, %v3950_v37  ;;  %v4341_v27 = vld [vmem:[#allocation8 + $0xbe8] sm:$0xff]  ;;  %v9103_v29 = vcombine.high %v4105_v15, %v4109_v21  ;;  %v9102_v36 = vcombine.low %v4105_v15, %v4109_v21 }
 0x321   :  { %v3942_v42 = vpop.f32.mrf.mxu1  ;;  %v9335_v31 = vcombine.high %v4337_v25, %v4341_v27  ;;  %v4097_v63 = vld [vmem:[#allocation8 + $0x448] sm:$0xff] }
 0x322   :  { %v10140_v47 = vpack.c.bf16 %v3951_v16, %v3951_v16  ;;  %7325 = vmatpush1.bf16.msra.mxu0 %v9254_v33  ;;  %v4101_v40 = vld [vmem:[#allocation8 + $0x468] sm:$0xff] }
 0x323   :  { %7326 = vmatprep.subr.bf16.mxu0 %v9247_v57  ;;  %v4329_v33 = vld [vmem:[#allocation8 + $0xb88] sm:$0xff]  ;;  %v9334_v57 = vcombine.low %v4337_v25, %v4341_v27  ;;  %v9095_v16 = vcombine.high %v4097_v63, %v4101_v40 }
 0x324   :  { %7229 = vmatprep.mubr.bf16.mxu1 %v10140_v47  ;;  %v4333_v37 = vld [vmem:[#allocation8 + $0xba8] sm:$0xff] }
 0x325   :  { %7230 = vmatmul.mubr.bf16.vlgmr.msra.gmra.mxu1 %v10142_v49  ;;  %v9327_v42 = vcombine.high %v4329_v33, %v4333_v37  ;;  %v4213_v59 = vld [vmem:[#allocation8 + $0x7e8] sm:$0xff] }
 0x326   :  { %7280 = vmatpush1.bf16.msra.mxu1 %v9142_v24  ;;  %7311 = vmatprep.mubr.bf16.mxu1 %v10073_v13  ;;  %v4113_v24 = vld [vmem:[#allocation8 + $0x4c8] sm:$0xff] }
 0x327   :  { %7327 = vmatpush1.bf16.msra.mxu0 %v9246_v51  ;;  %7281 = vmatprep.subr.bf16.mxu1 %v9135_v54  ;;  %v9111_v19 = vcombine.high %v4113_v24, %v4117_v23  ;;  %v9110_v41 = vcombine.low %v4113_v24, %v4117_v23  ;;  %v9094_v51 = vcombine.low %v4097_v63, %v4101_v40  ;;  %v4313_v60 = vld [vmem:[#allocation8 + $0xb08] sm:$0xff] }
 0x328   :  { %7328 = vmatprep.subr.bf16.mxu0 %v9239_v32  ;;  %v9326_v54 = vcombine.low %v4329_v33, %v4333_v37  ;;  %v9087_v32 = vcombine.high %v4089_v44, %v4093_v52  ;;  %v4201_v6 = vld [vmem:[#allocation8 + $0x788] sm:$0xff] }
 0x329   :  { %v4205_v7 = vld [vmem:[#allocation8 + $0x7a8] sm:$0xff] }
 0x32a   :  { %7282 = vmatpush1.bf16.msra.mxu1 %v9134_v1  ;;  %v4317_v1 = vld [vmem:[#allocation8 + $0xb28] sm:$0xff] }
 0x32b   :  { %7329 = vmatpush1.bf16.msra.mxu0 %v9238_v2  ;;  %7283 = vmatprep.subr.bf16.mxu1 %v9127_v3  ;;  %v9086_v2 = vcombine.low %v4089_v44, %v4093_v52  ;;  %v9318_v3 = vcombine.low %v4321_v45, %v4325_v46  ;;  %v9311_v4 = vcombine.high %v4313_v60, %v4317_v1  ;;  %v4305_v8 = vld [vmem:[#allocation8 + $0xac8] sm:$0xff]  ;;  %v4018_v46 = vld [vmem:[#allocation8 + $0x1d0] sm:$0xff] }
 0x32c   :  { %7330 = vmatprep.subr.bf16.mxu0 %v9231_v50  ;;  %v9207_v50 = vcombine.high %v4209_v56, %v4213_v59  ;;  %v4193_v23 = vld [vmem:[#allocation8 + $0x748] sm:$0xff] }
 0x32d   :  { %v4197_v61 = vld [vmem:[#allocation8 + $0x768] sm:$0xff] }
 0x32e   :  { %7284 = vmatpush1.bf16.msra.mxu1 %v9126_v10  ;;  %v4309_v10 = vld [vmem:[#allocation8 + $0xae8] sm:$0xff] }
 0x32f   :  { %7331 = vmatpush1.bf16.msra.mxu0 %v9230_v14  ;;  %7285 = vmatprep.subr.bf16.mxu1 %v9119_v18  ;;  %v9206_v14 = vcombine.low %v4209_v56, %v4213_v59  ;;  %v9310_v18 = vcombine.low %v4313_v60, %v4317_v1  ;;  %v9303_v24 = vcombine.high %v4305_v8, %v4309_v10  ;;  %v4297_v53 = vld [vmem:[#allocation8 + $0xa88] sm:$0xff]  ;;  %v4472_v56 = vld [vmem:[#allocation10] sm:$0xff] }
 0x330   :  { %7332 = vmatprep.subr.bf16.mxu0 %v9223_v22  ;;  %v9199_v22 = vcombine.high %v4201_v6, %v4205_v7  ;;  %v4185_v21 = vld [vmem:[#allocation8 + $0x708] sm:$0xff] }
 0x331   :  { %v4189_v25 = vld [vmem:[#allocation8 + $0x728] sm:$0xff] }
 0x332   :  { %7286 = vmatpush1.bf16.msra.mxu1 %v9118_v17  ;;  %v4301_v17 = vld [vmem:[#allocation8 + $0xaa8] sm:$0xff] }
 0x333   :  { %7333 = vmatpush1.bf16.msra.mxu0 %v9222_v28  ;;  %7287 = vmatprep.subr.bf16.mxu1 %v9111_v19  ;;  %v9198_v28 = vcombine.low %v4201_v6, %v4205_v7  ;;  %v9302_v19 = vcombine.low %v4305_v8, %v4309_v10  ;;  %v9295_v15 = vcombine.high %v4297_v53, %v4301_v17  ;;  %v4289_v27 = vld [vmem:[#allocation8 + $0xa48] sm:$0xff] }
 0x334   :  { %7334 = vmatprep.subr.bf16.mxu0 %v9215_v38  ;;  %v9191_v38 = vcombine.high %v4193_v23, %v4197_v61  ;;  %v4177_v40 = vld [vmem:[#allocation8 + $0x6c8] sm:$0xff]  ;;  %v4481_v7 = vrot.slane %v4472_v56, %v636_v26 }
 0x335   :  { %v4181_v33 = vld [vmem:[#allocation8 + $0x6e8] sm:$0xff] }
 0x336   :  { %7288 = vmatpush1.bf16.msra.mxu1 %v9110_v41  ;;  %v4293_v41 = vld [vmem:[#allocation8 + $0xa68] sm:$0xff] }
 0x337   :  { %7335 = vmatpush1.bf16.msra.mxu0 %v9214_v11  ;;  %7289 = vmatprep.subr.bf16.mxu1 %v9103_v29  ;;  %v9190_v11 = vcombine.low %v4193_v23, %v4197_v61  ;;  %v9294_v29 = vcombine.low %v4297_v53, %v4301_v17  ;;  %v9287_v63 = vcombine.high %v4289_v27, %v4293_v41  ;;  %v4281_v37 = vld [vmem:[#allocation8 + $0xa08] sm:$0xff]  ;;  %v4006_v23 = vld [vmem:[#allocation8 + $0x170] sm:$0xff] }
 0x338   :  { %7336 = vmatprep.subr.bf16.mxu0 %v9335_v31  ;;  %v9183_v31 = vcombine.high %v4185_v21, %v4189_v25  ;;  %v4169_v52 = vld [vmem:[#allocation8 + $0x688] sm:$0xff] }
 0x339   :  { %v4173_v45 = vld [vmem:[#allocation8 + $0x6a8] sm:$0xff] }
 0x33a   :  { %7290 = vmatpush1.bf16.msra.mxu1 %v9102_v36  ;;  %v4285_v36 = vld [vmem:[#allocation8 + $0xa28] sm:$0xff] }
 0x33b   :  { %7337 = vmatpush2.bf16.msra.mxu0 %v9334_v57  ;;  %7291 = vmatprep.subr.bf16.mxu1 %v9095_v16  ;;  %v9182_v57 = vcombine.low %v4185_v21, %v4189_v25  ;;  %v9286_v16 = vcombine.low %v4289_v27, %v4293_v41  ;;  %v9279_v44 = vcombine.high %v4281_v37, %v4285_v36  ;;  %v4161_v60 = vld [vmem:[#allocation8 + $0x648] sm:$0xff] }
 0x33c   :  { %7338 = vmatprep.subr.bf16.mxu0 %v9327_v42  ;;  %v9175_v42 = vcombine.high %v4177_v40, %v4181_v33  ;;  %v4165_v1 = vld [vmem:[#allocation8 + $0x668] sm:$0xff] }
 0x33d   :  { %v9159_v8 = vcombine.high %v4161_v60, %v4165_v1  ;;  %v4401_v25 = vld [vmem:[#allocation8 + $0xdc8] sm:$0xff] }
 0x33e   :  { %7292 = vmatpush1.bf16.msra.mxu1 %v9094_v51  ;;  %v4022_v51 = vld [vmem:[#allocation8 + $0x1f0] sm:$0xff]  ;;  %v4405_v27 = vld [vmem:[#allocation8 + $0xde8] sm:$0xff] }
 0x33f   :  { %7339 = vmatpush2.bf16.msra.mxu0 %v9326_v54  ;;  %7293 = vmatprep.subr.bf16.mxu1 %v9087_v32  ;;  %v9174_v54 = vcombine.low %v4177_v40, %v4181_v33  ;;  %v9278_v32 = vcombine.low %v4281_v37, %v4285_v36  ;;  %v9017_v59 = vcombine.high %v4018_v46, %v4022_v51 }
 0x340   :  { %7340 = vmatprep.subr.bf16.mxu0 %v9319_v55  ;;  %v9167_v55 = vcombine.high %v4169_v52, %v4173_v45  ;;  %v9016_v6 = vcombine.low %v4018_v46, %v4022_v51  ;;  %v9399_v36 = vcombine.high %v4401_v25, %v4405_v27  ;;  %v9398_v46 = vcombine.low %v4401_v25, %v4405_v27  ;;  %v4086_v25 = vld [vmem:[#allocation8 + $0x3f0] sm:$0xff] }
 0x342   :  { %7294 = vmatpush1.bf16.msra.mxu1 %v9086_v2  ;;  %v4010_v2 = vld [vmem:[#allocation8 + $0x190] sm:$0xff] }
 0x343   :  { %7341 = vmatpush2.bf16.msra.mxu0 %v9318_v3  ;;  %7295 = vmatprep.subr.bf16.mxu1 %v9207_v50  ;;  %v4014_v3 = vld [vmem:[#allocation8 + $0x1b0] sm:$0xff]  ;;  %v9166_v50 = vcombine.low %v4169_v52, %v4173_v45 }
 0x344   :  { %7342 = vmatprep.subr.bf16.mxu0 %v9311_v4  ;;  %v4477_v4 = vrot.slane %v4472_v56, %v632_v20  ;;  %v9009_v10 = vcombine.high %v4010_v2, %v4014_v3  ;;  %v9158_v20 = vcombine.low %v4161_v60, %v4165_v1  ;;  %v3986_v52 = vld [vmem:[#allocation8 + $0xd0] sm:$0xff]  ;;  %v4389_v56 = vld [vmem:[#allocation8 + $0xd68] sm:$0xff] }
 0x345   :  { %v3990_v45 = vld [vmem:[#allocation8 + $0xf0] sm:$0xff] }
 0x346   :  { %7296 = vmatpush2.bf16.msra.mxu1 %v9206_v14  ;;  %v4153_v14 = vld [vmem:[#allocation8 + $0x608] sm:$0xff]  ;;  %v3982_v60 = vld [vmem:[#allocation8 + $0xb0] sm:$0xff] }
 0x347   :  { %7343 = vmatpush2.bf16.msra.mxu0 %v9310_v18  ;;  %7297 = vmatprep.subr.bf16.mxu1 %v9199_v22  ;;  %v4157_v18 = vld [vmem:[#allocation8 + $0x628] sm:$0xff] }
 0x348   :  { %7344 = vmatprep.subr.bf16.mxu0 %v9303_v24  ;;  %v4002_v24 = vld [vmem:[#allocation8 + $0x150] sm:$0xff]  ;;  %v9150_v40 = vcombine.low %v4153_v14, %v4157_v18 }
 0x349   :  { %v9001_v21 = vcombine.high %v4002_v24, %v4006_v23  ;;  %v9000_v37 = vcombine.low %v4002_v24, %v4006_v23  ;;  %v4369_v24 = vld [vmem:[#allocation8 + $0xcc8] sm:$0xff] }
 0x34a   :  { %7298 = vmatpush2.bf16.msra.mxu1 %v9198_v28  ;;  %v9008_v28 = vcombine.low %v4010_v2, %v4014_v3  ;;  %v8984_v2 = vcombine.low %v3986_v52, %v3990_v45  ;;  %v4373_v23 = vld [vmem:[#allocation8 + $0xce8] sm:$0xff] }
 0x34b   :  { %7345 = vmatpush2.bf16.msra.mxu0 %v9302_v19  ;;  %7299 = vmatprep.subr.bf16.mxu1 %v9191_v38  ;;  %v9151_v19 = vcombine.high %v4153_v14, %v4157_v18  ;;  %v9366_v27 = vcombine.low %v4369_v24, %v4373_v23 }
 0x34c   :  { %7346 = vmatprep.subr.bf16.mxu0 %v9295_v15 }
 0x34e   :  { %7300 = vmatpush2.bf16.msra.mxu1 %v9190_v11  ;;  %v3994_v11 = vld [vmem:[#allocation8 + $0x110] sm:$0xff] }
 0x34f   :  { %7347 = vmatpush2.bf16.msra.mxu0 %v9294_v29  ;;  %7301 = vmatprep.subr.bf16.mxu1 %v9183_v31  ;;  %v3998_v29 = vld [vmem:[#allocation8 + $0x130] sm:$0xff] }
 0x350   :  { %7348 = vmatprep.subr.bf16.mxu0 %v9287_v63  ;;  %v8992_v51 = vcombine.low %v3994_v11, %v3998_v29 }
 0x352   :  { %7302 = vmatpush2.bf16.msra.mxu1 %v9182_v57 }
 0x353   :  { %7349 = vmatpush2.bf16.msra.mxu0 %v9286_v16  ;;  %7303 = vmatprep.subr.bf16.mxu1 %v9175_v42  ;;  %v8993_v16 = vcombine.high %v3994_v11, %v3998_v29  ;;  %v4393_v42 = vld [vmem:[#allocation8 + $0xd88] sm:$0xff] }
 0x354   :  { %7350 = vmatprep.subr.bf16.mxu0 %v9279_v44  ;;  %v4397_v44 = vld [vmem:[#allocation8 + $0xda8] sm:$0xff] }
 0x355   :  { %v9390_v1 = vcombine.low %v4393_v42, %v4397_v44 }
 0x356   :  { %7304 = vmatpush2.bf16.msra.mxu1 %v9174_v54  ;;  %v9391_v54 = vcombine.high %v4393_v42, %v4397_v44  ;;  %v4345_v44 = vld [vmem:[#allocation8 + $0xc08] sm:$0xff] }
 0x357   :  { %7351 = vmatpush2.bf16.msra.mxu0 %v9278_v32  ;;  %7305 = vmatprep.subr.bf16.mxu1 %v9167_v55  ;;  %v8985_v32 = vcombine.high %v3986_v52, %v3990_v45  ;;  %v4385_v55 = vld [vmem:[#allocation8 + $0xd48] sm:$0xff]  ;;  %v4066_v45 = vld [vmem:[#allocation8 + $0x350] sm:$0xff] }
 0x358   :  { %7402 = vmatprep.subr.bf16.mxu0 %v9017_v59  ;;  %v3978_v59 = vld [vmem:[#allocation8 + $0x90] sm:$0xff]  ;;  %v9383_v3 = vcombine.high %v4385_v55, %v4389_v56  ;;  %v4349_v52 = vld [vmem:[#allocation8 + $0xc28] sm:$0xff] }
 0x359   :  { %v7108_v22 = vpop.f32.mrf.mxu0  ;;  %v8976_v14 = vcombine.low %v3978_v59, %v3982_v60 }
 0x35a   :  { %v7109_v61 = vadd.f32 %v7108_v22, %v4477_v4  ;;  %7306 = vmatpush2.bf16.msra.mxu1 %v9166_v50  ;;  %7353 = vmatmul.mubr.bf16.vlgmr.msra.gmra.mxu0 %v10116_v30  ;;  %v8977_v50 = vcombine.high %v3978_v59, %v3982_v60  ;;  %v4377_v4 = vld [vmem:[#allocation8 + $0xd08] sm:$0xff]  ;;  %v4058_v60 = vld [vmem:[#allocation8 + $0x310] sm:$0xff] }
 0x35b   :  { %v7149_v53 = vpop.f32.mrf.mxu1  ;;  %7403 = vmatpush1.bf16.msra.mxu0 %v9016_v6  ;;  %7434 = vmatprep.mubr.bf16.mxu0 %v10070_v48  ;;  %v7110_v17 = vpop.f32.mrf.mxu0  ;;  %v4381_v6 = vld [vmem:[#allocation8 + $0xd28] sm:$0xff] }
 0x35c   :  { %v10156_v26 = vadd.f32 %v7149_v53, %v7109_v61  ;;  %v7111_v38 = vadd.f32 %v7110_v17, %v4481_v7  ;;  %7307 = vmatprep.subr.bf16.mxu1 %v9159_v8  ;;  %7404 = vmatprep.subr.bf16.mxu0 %v9009_v10  ;;  %v3970_v7 = vld [vmem:[#allocation8 + $0x50] sm:$0xff]  ;;  %v9382_v10 = vcombine.low %v4385_v55, %v4389_v56  ;;  %v4465_v56 = vld [vmem:[#allocation8 + $0xfc8] sm:$0xff] }
 0x35d   :  { %v7151_v15 = vpop.f32.mrf.mxu1  ;;  %v7112_v41 = vpop.f32.mrf.mxu0  ;;  %v3974_v8 = vld [vmem:[#allocation8 + $0x70] sm:$0xff]  ;;  %v9375_v18 = vcombine.high %v4377_v4, %v4381_v6  ;;  %v4469_v59 = vld [vmem:[#allocation8 + $0xfe8] sm:$0xff] }
 0x35e   :  { %v10158_v31 = vadd.f32 %v7151_v15, %v7111_v38  ;;  %7308 = vmatpush2.bf16.msra.mxu1 %v9158_v20  ;;  %v8969_v22 = vcombine.high %v3970_v7, %v3974_v8  ;;  %v3962_v61 = vld [vmem:[#allocation8 + $0x10] sm:$0xff]  ;;  %v9374_v20 = vcombine.low %v4377_v4, %v4381_v6  ;;  %v8968_v17 = vcombine.low %v3970_v7, %v3974_v8  ;;  %v4361_v38 = vld [vmem:[#allocation8 + $0xc88] sm:$0xff] }
 0x35f   :  { %v7153_v63 = vpop.f32.mrf.mxu1  ;;  %7405 = vmatpush1.bf16.msra.mxu0 %v9008_v28  ;;  %v7113_v33 = vpop.f32.mrf.mxu0  ;;  %7309 = vmatprep.subr.bf16.mxu1 %v9151_v19  ;;  %v3966_v53 = vld [vmem:[#allocation8 + $0x30] sm:$0xff]  ;;  %v9367_v28 = vcombine.high %v4369_v24, %v4373_v23  ;;  %v4365_v15 = vld [vmem:[#allocation8 + $0xca8] sm:$0xff] }
 0x360   :  { %7406 = vmatprep.subr.bf16.mxu0 %v9001_v21  ;;  %v8961_v19 = vcombine.high %v3962_v61, %v3966_v53  ;;  %v4082_v21 = vld [vmem:[#allocation8 + $0x3d0] sm:$0xff]  ;;  %v8960_v41 = vcombine.low %v3962_v61, %v3966_v53  ;;  %v9359_v11 = vcombine.high %v4361_v38, %v4365_v15  ;;  %v4353_v63 = vld [vmem:[#allocation8 + $0xc48] sm:$0xff] }
 0x361   :  { %v7154_v57 = vpop.f32.mrf.mxu1  ;;  %v9081_v29 = vcombine.high %v4082_v21, %v4086_v25  ;;  %v4074_v33 = vld [vmem:[#allocation8 + $0x390] sm:$0xff]  ;;  %v4457_v6 = vld [vmem:[#allocation8 + $0xf88] sm:$0xff] }
 0x362   :  { %7310 = vmatpush2.bf16.msra.mxu1 %v9150_v40  ;;  %v4357_v40 = vld [vmem:[#allocation8 + $0xc68] sm:$0xff]  ;;  %v9080_v57 = vcombine.low %v4082_v21, %v4086_v25  ;;  %v4050_v8 = vld [vmem:[#allocation8 + $0x2d0] sm:$0xff] }
 0x363   :  { %7407 = vmatpush1.bf16.msra.mxu0 %v9000_v37  ;;  %7361 = vmatprep.subr.bf16.mxu1 %v9399_v36  ;;  %v4078_v37 = vld [vmem:[#allocation8 + $0x3b0] sm:$0xff]  ;;  %v9358_v36 = vcombine.low %v4361_v38, %v4365_v15  ;;  %v4461_v7 = vld [vmem:[#allocation8 + $0xfa8] sm:$0xff] }
 0x364   :  { %7408 = vmatprep.subr.bf16.mxu0 %v8993_v16  ;;  %v9351_v16 = vcombine.high %v4353_v63, %v4357_v40  ;;  %v9073_v42 = vcombine.high %v4074_v33, %v4078_v37  ;;  %v4449_v23 = vld [vmem:[#allocation8 + $0xf48] sm:$0xff]  ;;  %v4042_v53 = vld [vmem:[#allocation8 + $0x290] sm:$0xff] }
 0x365   :  { %7312 = vmatmul.mubr.bf16.vlgmr.msra.gmra.mxu1 %v10093_v35  ;;  %v4453_v61 = vld [vmem:[#allocation8 + $0xf68] sm:$0xff]  ;;  %v4034_v25 = vld [vmem:[#allocation8 + $0x250] sm:$0xff] }
 0x366   :  { %7362 = vmatpush1.bf16.msra.mxu1 %v9398_v46  ;;  %7393 = vmatprep.mubr.bf16.mxu1 %v10140_v47  ;;  %v4070_v46 = vld [vmem:[#allocation8 + $0x370] sm:$0xff]  ;;  %v4441_v15 = vld [vmem:[#allocation8 + $0xf08] sm:$0xff] }
 0x367   :  { %7409 = vmatpush1.bf16.msra.mxu0 %v8992_v51  ;;  %7363 = vmatprep.subr.bf16.mxu1 %v9391_v54  ;;  %v9350_v51 = vcombine.low %v4353_v63, %v4357_v40  ;;  %v9072_v54 = vcombine.low %v4074_v33, %v4078_v37  ;;  %v9065_v55 = vcombine.high %v4066_v45, %v4070_v46  ;;  %v4445_v21 = vld [vmem:[#allocation8 + $0xf28] sm:$0xff]  ;;  %v4026_v37 = vld [vmem:[#allocation8 + $0x210] sm:$0xff] }
 0x368   :  { %7410 = vmatprep.subr.bf16.mxu0 %v8985_v32  ;;  %v9343_v32 = vcombine.high %v4345_v44, %v4349_v52  ;;  %v4433_v40 = vld [vmem:[#allocation8 + $0xec8] sm:$0xff] }
 0x369   :  { %v4437_v33 = vld [vmem:[#allocation8 + $0xee8] sm:$0xff] }
 0x36a   :  { %7364 = vmatpush1.bf16.msra.mxu1 %v9390_v1  ;;  %v4062_v1 = vld [vmem:[#allocation8 + $0x330] sm:$0xff] }
 0x36b   :  { %7411 = vmatpush1.bf16.msra.mxu0 %v8984_v2  ;;  %7365 = vmatprep.subr.bf16.mxu1 %v9383_v3  ;;  %v9342_v2 = vcombine.low %v4345_v44, %v4349_v52  ;;  %v9064_v3 = vcombine.low %v4066_v45, %v4070_v46  ;;  %v9057_v4 = vcombine.high %v4058_v60, %v4062_v1  ;;  %v4425_v52 = vld [vmem:[#allocation8 + $0xe88] sm:$0xff]  ;;  %v4274_v46 = vld [vmem:[#allocation8 + $0x9d0] sm:$0xff] }
 0x36c   :  { %7412 = vmatprep.subr.bf16.mxu0 %v8977_v50  ;;  %v9463_v50 = vcombine.high %v4465_v56, %v4469_v59  ;;  %v4429_v45 = vld [vmem:[#allocation8 + $0xea8] sm:$0xff] }
 0x36e   :  { %7366 = vmatpush1.bf16.msra.mxu1 %v9382_v10  ;;  %v4054_v10 = vld [vmem:[#allocation8 + $0x2f0] sm:$0xff] }
 0x36f   :  { %7413 = vmatpush1.bf16.msra.mxu0 %v8976_v14  ;;  %7367 = vmatprep.subr.bf16.mxu1 %v9375_v18  ;;  %v9462_v14 = vcombine.low %v4465_v56, %v4469_v59  ;;  %v9056_v18 = vcombine.low %v4058_v60, %v4062_v1  ;;  %v9049_v24 = vcombine.high %v4050_v8, %v4054_v10  ;;  %v4417_v59 = vld [vmem:[#allocation8 + $0xe48] sm:$0xff]  ;;  %v4266_v1 = vld [vmem:[#allocation8 + $0x990] sm:$0xff] }
 0x370   :  { %7414 = vmatprep.subr.bf16.mxu0 %v8969_v22  ;;  %v9455_v22 = vcombine.high %v4457_v6, %v4461_v7  ;;  %v4421_v60 = vld [vmem:[#allocation8 + $0xe68] sm:$0xff] }
 0x372   :  { %7368 = vmatpush1.bf16.msra.mxu1 %v9374_v20  ;;  %v4046_v20 = vld [vmem:[#allocation8 + $0x2b0] sm:$0xff] }
 0x373   :  { %7415 = vmatpush1.bf16.msra.mxu0 %v8968_v17  ;;  %7369 = vmatprep.subr.bf16.mxu1 %v9367_v28  ;;  %v9454_v17 = vcombine.low %v4457_v6, %v4461_v7  ;;  %v9048_v28 = vcombine.low %v4050_v8, %v4054_v10  ;;  %v9041_v38 = vcombine.high %v4042_v53, %v4046_v20  ;;  %v4409_v7 = vld [vmem:[#allocation8 + $0xe08] sm:$0xff] }
 0x374   :  { %7416 = vmatprep.subr.bf16.mxu0 %v8961_v19  ;;  %v9447_v19 = vcombine.high %v4449_v23, %v4453_v61  ;;  %v4413_v8 = vld [vmem:[#allocation8 + $0xe28] sm:$0xff] }
 0x376   :  { %7370 = vmatpush1.bf16.msra.mxu1 %v9366_v27  ;;  %v4038_v27 = vld [vmem:[#allocation8 + $0x270] sm:$0xff] }
 0x377   :  { %7417 = vmatpush1.bf16.msra.mxu0 %v8960_v41  ;;  %7371 = vmatprep.subr.bf16.mxu1 %v9359_v11  ;;  %v9446_v41 = vcombine.low %v4449_v23, %v4453_v61  ;;  %v9040_v11 = vcombine.low %v4042_v53, %v4046_v20  ;;  %v9033_v63 = vcombine.high %v4034_v25, %v4038_v27 }
 0x378   :  { %7418 = vmatprep.subr.bf16.mxu0 %v9081_v29  ;;  %v9439_v29 = vcombine.high %v4441_v15, %v4445_v21  ;;  %v9407_v53 = vcombine.high %v4409_v7, %v4413_v8 }
 0x37a   :  { %7372 = vmatpush1.bf16.msra.mxu1 %v9358_v36  ;;  %v4030_v36 = vld [vmem:[#allocation8 + $0x230] sm:$0xff] }
 0x37b   :  { %7419 = vmatpush2.bf16.msra.mxu0 %v9080_v57  ;;  %7373 = vmatprep.subr.bf16.mxu1 %v9351_v16  ;;  %v9438_v57 = vcombine.low %v4441_v15, %v4445_v21  ;;  %v9032_v16 = vcombine.low %v4034_v25, %v4038_v27  ;;  %v9025_v44 = vcombine.high %v4026_v37, %v4030_v36  ;;  %v4254_v15 = vld [vmem:[#allocation8 + $0x930] sm:$0xff] }
 0x37c   :  { %7420 = vmatprep.subr.bf16.mxu0 %v9073_v42  ;;  %v9431_v42 = vcombine.high %v4433_v40, %v4437_v33  ;;  %v9406_v21 = vcombine.low %v4409_v7, %v4413_v8  ;;  %v4222_v7 = vld [vmem:[#allocation8 + $0x830] sm:$0xff] }
 0x37e   :  { %7374 = vmatpush1.bf16.msra.mxu1 %v9350_v51  ;;  %v4278_v51 = vld [vmem:[#allocation8 + $0x9f0] sm:$0xff] }
 0x37f   :  { %7421 = vmatpush2.bf16.msra.mxu0 %v9072_v54  ;;  %7375 = vmatprep.subr.bf16.mxu1 %v9343_v32  ;;  %v9430_v54 = vcombine.low %v4433_v40, %v4437_v33  ;;  %v9024_v32 = vcombine.low %v4026_v37, %v4030_v36  ;;  %v9273_v56 = vcombine.high %v4274_v46, %v4278_v51  ;;  %v4246_v40 = vld [vmem:[#allocation8 + $0x8f0] sm:$0xff] }
 0x380   :  { %7422 = vmatprep.subr.bf16.mxu0 %v9065_v55  ;;  %v9423_v55 = vcombine.high %v4425_v52, %v4429_v45 }
 0x382   :  { %7376 = vmatpush1.bf16.msra.mxu1 %v9342_v2  ;;  %v4270_v2 = vld [vmem:[#allocation8 + $0x9b0] sm:$0xff] }
 0x383   :  { %7423 = vmatpush2.bf16.msra.mxu0 %v9064_v3  ;;  %7377 = vmatprep.subr.bf16.mxu1 %v9463_v50  ;;  %v9422_v3 = vcombine.low %v4425_v52, %v4429_v45  ;;  %v9272_v50 = vcombine.low %v4274_v46, %v4278_v51  ;;  %v9265_v6 = vcombine.high %v4266_v1, %v4270_v2  ;;  %v4238_v52 = vld [vmem:[#allocation8 + $0x8b0] sm:$0xff] }
 0x384   :  { %7424 = vmatprep.subr.bf16.mxu0 %v9057_v4  ;;  %v9415_v4 = vcombine.high %v4417_v59, %v4421_v60  ;;  %v9264_v61 = vcombine.low %v4266_v1, %v4270_v2 }
 0x386   :  { %7378 = vmatpush2.bf16.msra.mxu1 %v9462_v14  ;;  %v4258_v14 = vld [vmem:[#allocation8 + $0x950] sm:$0xff] }
 0x387   :  { %7425 = vmatpush2.bf16.msra.mxu0 %v9056_v18  ;;  %7379 = vmatprep.subr.bf16.mxu1 %v9455_v22  ;;  %v4262_v18 = vld [vmem:[#allocation8 + $0x970] sm:$0xff] }
 0x388   :  { %7426 = vmatprep.subr.bf16.mxu0 %v9049_v24  ;;  %v9414_v24 = vcombine.low %v4417_v59, %v4421_v60  ;;  %v9256_v27 = vcombine.low %v4258_v14, %v4262_v18  ;;  %v4230_v59 = vld [vmem:[#allocation8 + $0x870] sm:$0xff] }
 0x38a   :  { %7380 = vmatpush2.bf16.msra.mxu1 %v9454_v17  ;;  %v9257_v17 = vcombine.high %v4258_v14, %v4262_v18 }
 0x38b   :  { %7427 = vmatpush2.bf16.msra.mxu0 %v9048_v28  ;;  %7381 = vmatprep.subr.bf16.mxu1 %v9447_v19  ;;  %v4146_v28 = vld [vmem:[#allocation8 + $0x5d0] sm:$0xff] }
 0x38c   :  { %7428 = vmatprep.subr.bf16.mxu0 %v9041_v38  ;;  %v4150_v19 = vld [vmem:[#allocation8 + $0x5f0] sm:$0xff] }
 0x38d   :  { %v4250_v38 = vld [vmem:[#allocation8 + $0x910] sm:$0xff]  ;;  %v9144_v33 = vcombine.low %v4146_v28, %v4150_v19 }
 0x38e   :  { %7382 = vmatpush2.bf16.msra.mxu1 %v9446_v41  ;;  %v9145_v41 = vcombine.high %v4146_v28, %v4150_v19  ;;  %v9248_v37 = vcombine.low %v4250_v38, %v4254_v15 }
 0x38f   :  { %7429 = vmatpush2.bf16.msra.mxu0 %v9040_v11  ;;  %7383 = vmatprep.subr.bf16.mxu1 %v9439_v29  ;;  %v9249_v11 = vcombine.high %v4250_v38, %v4254_v15  ;;  %v4138_v29 = vld [vmem:[#allocation8 + $0x590] sm:$0xff] }
 0x390   :  { %7430 = vmatprep.subr.bf16.mxu0 %v9033_v63  ;;  %v4242_v63 = vld [vmem:[#allocation8 + $0x8d0] sm:$0xff] }
 0x391   :  { %v9240_v46 = vcombine.low %v4242_v63, %v4246_v40  ;;  %v4098_v38 = vld [vmem:[#allocation8 + $0x450] sm:$0xff] }
 0x392   :  { %7384 = vmatpush2.bf16.msra.mxu1 %v9438_v57  ;;  %v9241_v57 = vcombine.high %v4242_v63, %v4246_v40  ;;  %v4102_v15 = vld [vmem:[#allocation8 + $0x470] sm:$0xff] }
 0x393   :  { %7431 = vmatpush2.bf16.msra.mxu0 %v9032_v16  ;;  %7385 = vmatprep.subr.bf16.mxu1 %v9431_v42  ;;  %v4130_v16 = vld [vmem:[#allocation8 + $0x550] sm:$0xff] }
 0x394   :  { %7432 = vmatprep.subr.bf16.mxu0 %v9025_v44  ;;  %v4134_v42 = vld [vmem:[#allocation8 + $0x570] sm:$0xff] }
 0x395   :  { %v4234_v44 = vld [vmem:[#allocation8 + $0x890] sm:$0xff]  ;;  %v9129_v51 = vcombine.high %v4130_v16, %v4134_v42  ;;  %v9128_v60 = vcombine.low %v4130_v16, %v4134_v42 }
 0x396   :  { %7386 = vmatpush2.bf16.msra.mxu1 %v9430_v54  ;;  %v9233_v54 = vcombine.high %v4234_v44, %v4238_v52  ;;  %v9232_v1 = vcombine.low %v4234_v44, %v4238_v52  ;;  %v4094_v63 = vld [vmem:[#allocation8 + $0x430] sm:$0xff] }
 0x397   :  { %7433 = vmatpush2.bf16.msra.mxu0 %v9024_v32  ;;  %7387 = vmatprep.subr.bf16.mxu1 %v9423_v55  ;;  %v4122_v32 = vld [vmem:[#allocation8 + $0x510] sm:$0xff] }
 0x398   :  { %7484 = vmatprep.subr.bf16.mxu0 %v9273_v56  ;;  %v4126_v55 = vld [vmem:[#allocation8 + $0x530] sm:$0xff] }
 0x399   :  { %v7190_v10 = vpop.f32.mrf.mxu0  ;;  %v4226_v56 = vld [vmem:[#allocation8 + $0x850] sm:$0xff]  ;;  %v9121_v2 = vcombine.high %v4122_v32, %v4126_v55  ;;  %v9120_v8 = vcombine.low %v4122_v32, %v4126_v55 }
 0x39a   :  { %v10163_v22 = vadd.f32 %v7190_v10, %v10156_v26  ;;  %7388 = vmatpush2.bf16.msra.mxu1 %v9422_v3  ;;  %7435 = vmatmul.mubr.bf16.vlgmr.msra.gmra.mxu0 %v10091_v39  ;;  %v9225_v3 = vcombine.high %v4226_v56, %v4230_v59  ;;  %v9224_v10 = vcombine.low %v4226_v56, %v4230_v59  ;;  %v4322_v40 = vld [vmem:[#allocation8 + $0xb50] sm:$0xff] }
 0x39b   :  { %7485 = vmatpush1.bf16.msra.mxu0 %v9272_v50  ;;  %7516 = vmatprep.mubr.bf16.mxu0 %v10102_v12  ;;  %v7192_v23 = vpop.f32.mrf.mxu0  ;;  %v4114_v50 = vld [vmem:[#allocation8 + $0x4d0] sm:$0xff] }
 0x39c   :  { %v10168_v20 = vadd.f32 %v7192_v23, %v10158_v31  ;;  %7389 = vmatprep.subr.bf16.mxu1 %v9415_v4  ;;  %7486 = vmatprep.subr.bf16.mxu0 %v9265_v6  ;;  %v4142_v31 = vld [vmem:[#allocation8 + $0x5b0] sm:$0xff] }
 0x39d   :  { %v7194_v26 = vpop.f32.mrf.mxu0  ;;  %v9137_v36 = vcombine.high %v4138_v29, %v4142_v31  ;;  %v9136_v45 = vcombine.low %v4138_v29, %v4142_v31  ;;  %v4118_v4 = vld [vmem:[#allocation8 + $0x4f0] sm:$0xff] }
 0x39e   :  { %7390 = vmatpush2.bf16.msra.mxu1 %v9414_v24  ;;  %v4218_v6 = vld [vmem:[#allocation8 + $0x810] sm:$0xff]  ;;  %v9113_v14 = vcombine.high %v4114_v50, %v4118_v4 }
 0x39f   :  { %7487 = vmatpush1.bf16.msra.mxu0 %v9264_v61  ;;  %v7195_v25 = vpop.f32.mrf.mxu0  ;;  %7391 = vmatprep.subr.bf16.mxu1 %v9407_v53  ;;  %v9217_v18 = vcombine.high %v4218_v6, %v4222_v7  ;;  %v4106_v24 = vld [vmem:[#allocation8 + $0x490] sm:$0xff]  ;;  %v9216_v28 = vcombine.low %v4218_v6, %v4222_v7 }
 0x3a0   :  { %7488 = vmatprep.subr.bf16.mxu0 %v9257_v17  ;;  %v4110_v23 = vld [vmem:[#allocation8 + $0x4b0] sm:$0xff]  ;;  %v9112_v17 = vcombine.low %v4114_v50, %v4118_v4 }
 0x3a1   :  { %v4338_v61 = vld [vmem:[#allocation8 + $0xbd0] sm:$0xff]  ;;  %v9105_v19 = vcombine.high %v4106_v24, %v4110_v23 }
 0x3a2   :  { %7392 = vmatpush2.bf16.msra.mxu1 %v9406_v21  ;;  %v4342_v53 = vld [vmem:[#allocation8 + $0xbf0] sm:$0xff] }
 0x3a3   :  { %7489 = vmatpush1.bf16.msra.mxu0 %v9256_v27  ;;  %7443 = vmatprep.subr.bf16.mxu1 %v9145_v41  ;;  %v9337_v26 = vcombine.high %v4338_v61, %v4342_v53  ;;  %v4330_v21 = vld [vmem:[#allocation8 + $0xb90] sm:$0xff]  ;;  %v9104_v27 = vcombine.low %v4106_v24, %v4110_v23  ;;  %v9336_v41 = vcombine.low %v4338_v61, %v4342_v53 }
 0x3a4   :  { %7490 = vmatprep.subr.bf16.mxu0 %v9249_v11  ;;  %v4334_v25 = vld [vmem:[#allocation8 + $0xbb0] sm:$0xff]  ;;  %v9097_v11 = vcombine.high %v4098_v38, %v4102_v15 }
 0x3a5   :  { %7394 = vmatmul.mubr.bf16.vlgmr.msra.gmra.mxu1 %v10142_v49  ;;  %v9329_v29 = vcombine.high %v4330_v21, %v4334_v25  ;;  %v4090_v31 = vld [vmem:[#allocation8 + $0x410] sm:$0xff] }
 0x3a6   :  { %7444 = vmatpush1.bf16.msra.mxu1 %v9144_v33  ;;  %7475 = vmatprep.mubr.bf16.mxu1 %v10073_v13  ;;  %v4326_v33 = vld [vmem:[#allocation8 + $0xb70] sm:$0xff] }
 0x3a7   :  { %7491 = vmatpush1.bf16.msra.mxu0 %v9248_v37  ;;  %7445 = vmatprep.subr.bf16.mxu1 %v9137_v36  ;;  %v9096_v37 = vcombine.low %v4098_v38, %v4102_v15  ;;  %v9328_v36 = vcombine.low %v4330_v21, %v4334_v25  ;;  %v9321_v16 = vcombine.high %v4322_v40, %v4326_v33  ;;  %v4210_v42 = vld [vmem:[#allocation8 + $0x7d0] sm:$0xff] }
 0x3a8   :  { %7492 = vmatprep.subr.bf16.mxu0 %v9241_v57  ;;  %v9089_v57 = vcombine.high %v4090_v31, %v4094_v63  ;;  %v4214_v44 = vld [vmem:[#allocation8 + $0x7f0] sm:$0xff] }
 0x3a9   :  { %v4314_v52 = vld [vmem:[#allocation8 + $0xb10] sm:$0xff] }
 0x3aa   :  { %7446 = vmatpush1.bf16.msra.mxu1 %v9136_v45  ;;  %v4318_v45 = vld [vmem:[#allocation8 + $0xb30] sm:$0xff] }
 0x3ab   :  { %7493 = vmatpush1.bf16.msra.mxu0 %v9240_v46  ;;  %7447 = vmatprep.subr.bf16.mxu1 %v9129_v51  ;;  %v9088_v46 = vcombine.low %v4090_v31, %v4094_v63  ;;  %v9320_v51 = vcombine.low %v4322_v40, %v4326_v33  ;;  %v9313_v32 = vcombine.high %v4314_v52, %v4318_v45  ;;  %v4202_v55 = vld [vmem:[#allocation8 + $0x790] sm:$0xff]  ;;  %v4019_v33 = vld [vmem:[#allocation8 + $0x1d8] sm:$0xff] }
 0x3ac   :  { %7494 = vmatprep.subr.bf16.mxu0 %v9233_v54  ;;  %v9209_v54 = vcombine.high %v4210_v42, %v4214_v44  ;;  %v4206_v56 = vld [vmem:[#allocation8 + $0x7b0] sm:$0xff] }
 0x3ad   :  { %v4306_v59 = vld [vmem:[#allocation8 + $0xad0] sm:$0xff] }
 0x3ae   :  { %7448 = vmatpush1.bf16.msra.mxu1 %v9128_v60  ;;  %v4310_v60 = vld [vmem:[#allocation8 + $0xaf0] sm:$0xff] }
 0x3af   :  { %7495 = vmatpush1.bf16.msra.mxu0 %v9232_v1  ;;  %7449 = vmatprep.subr.bf16.mxu1 %v9121_v2  ;;  %v9208_v1 = vcombine.low %v4210_v42, %v4214_v44  ;;  %v9312_v2 = vcombine.low %v4314_v52, %v4318_v45  ;;  %v9305_v50 = vcombine.high %v4306_v59, %v4310_v60  ;;  %v4194_v4 = vld [vmem:[#allocation8 + $0x750] sm:$0xff]  ;;  %v4011_v45 = vld [vmem:[#allocation8 + $0x198] sm:$0xff] }
 0x3b0   :  { %7496 = vmatprep.subr.bf16.mxu0 %v9225_v3  ;;  %v9201_v3 = vcombine.high %v4202_v55, %v4206_v56  ;;  %v4198_v6 = vld [vmem:[#allocation8 + $0x770] sm:$0xff] }
 0x3b1   :  { %v4298_v7 = vld [vmem:[#allocation8 + $0xa90] sm:$0xff] }
 0x3b2   :  { %7450 = vmatpush1.bf16.msra.mxu1 %v9120_v8  ;;  %v4302_v8 = vld [vmem:[#allocation8 + $0xab0] sm:$0xff] }
 0x3b3   :  { %7497 = vmatpush1.bf16.msra.mxu0 %v9224_v10  ;;  %7451 = vmatprep.subr.bf16.mxu1 %v9113_v14  ;;  %v9200_v10 = vcombine.low %v4202_v55, %v4206_v56  ;;  %v9304_v14 = vcombine.low %v4306_v59, %v4310_v60  ;;  %v9297_v24 = vcombine.high %v4298_v7, %v4302_v8  ;;  %v4186_v23 = vld [vmem:[#allocation8 + $0x710] sm:$0xff] }
 0x3b4   :  { %7498 = vmatprep.subr.bf16.mxu0 %v9217_v18  ;;  %v9193_v18 = vcombine.high %v4194_v4, %v4198_v6  ;;  %v4190_v61 = vld [vmem:[#allocation8 + $0x730] sm:$0xff] }
 0x3b5   :  { %v4290_v53 = vld [vmem:[#allocation8 + $0xa50] sm:$0xff] }
 0x3b6   :  { %7452 = vmatpush1.bf16.msra.mxu1 %v9112_v17  ;;  %v4294_v17 = vld [vmem:[#allocation8 + $0xa70] sm:$0xff] }
 0x3b7   :  { %7499 = vmatpush1.bf16.msra.mxu0 %v9216_v28  ;;  %7453 = vmatprep.subr.bf16.mxu1 %v9105_v19  ;;  %v9192_v28 = vcombine.low %v4194_v4, %v4198_v6  ;;  %v9296_v19 = vcombine.low %v4298_v7, %v4302_v8  ;;  %v9289_v38 = vcombine.high %v4290_v53, %v4294_v17  ;;  %v4178_v15 = vld [vmem:[#allocation8 + $0x6d0] sm:$0xff] }
 0x3b8   :  { %7500 = vmatprep.subr.bf16.mxu0 %v9337_v26  ;;  %v9185_v26 = vcombine.high %v4186_v23, %v4190_v61  ;;  %v4182_v21 = vld [vmem:[#allocation8 + $0x6f0] sm:$0xff] }
 0x3b9   :  { %v4282_v25 = vld [vmem:[#allocation8 + $0xa10] sm:$0xff] }
 0x3ba   :  { %7454 = vmatpush1.bf16.msra.mxu1 %v9104_v27  ;;  %v4286_v27 = vld [vmem:[#allocation8 + $0xa30] sm:$0xff] }
 0x3bb   :  { %7501 = vmatpush2.bf16.msra.mxu0 %v9336_v41  ;;  %7455 = vmatprep.subr.bf16.mxu1 %v9097_v11  ;;  %v9184_v41 = vcombine.low %v4186_v23, %v4190_v61  ;;  %v9288_v11 = vcombine.low %v4290_v53, %v4294_v17  ;;  %v9281_v31 = vcombine.high %v4282_v25, %v4286_v27  ;;  %v4170_v63 = vld [vmem:[#allocation8 + $0x690] sm:$0xff] }
 0x3bc   :  { %7502 = vmatprep.subr.bf16.mxu0 %v9329_v29  ;;  %v9177_v29 = vcombine.high %v4178_v15, %v4182_v21  ;;  %v4174_v40 = vld [vmem:[#allocation8 + $0x6b0] sm:$0xff] }
 0x3bd   :  { %v4162_v44 = vld [vmem:[#allocation8 + $0x650] sm:$0xff] }
 0x3be   :  { %7456 = vmatpush1.bf16.msra.mxu1 %v9096_v37  ;;  %v4023_v37 = vld [vmem:[#allocation8 + $0x1f8] sm:$0xff]  ;;  %v4166_v52 = vld [vmem:[#allocation8 + $0x670] sm:$0xff] }
 0x3bf   :  { %7503 = vmatpush2.bf16.msra.mxu0 %v9328_v36  ;;  %7457 = vmatprep.subr.bf16.mxu1 %v9089_v57  ;;  %v9176_v36 = vcombine.low %v4178_v15, %v4182_v21  ;;  %v9280_v57 = vcombine.low %v4282_v25, %v4286_v27  ;;  %v9019_v42 = vcombine.high %v4019_v33, %v4023_v37  ;;  %v4154_v56 = vld [vmem:[#allocation8 + $0x610] sm:$0xff] }
 0x3c0   :  { %7504 = vmatprep.subr.bf16.mxu0 %v9321_v16  ;;  %v9169_v16 = vcombine.high %v4170_v63, %v4174_v40  ;;  %v4158_v59 = vld [vmem:[#allocation8 + $0x630] sm:$0xff] }
 0x3c1   :  { %v9153_v6 = vcombine.high %v4154_v56, %v4158_v59  ;;  %v4402_v8 = vld [vmem:[#allocation8 + $0xdd0] sm:$0xff]  ;;  %v9152_v23 = vcombine.low %v4154_v56, %v4158_v59 }
 0x3c2   :  { %7458 = vmatpush1.bf16.msra.mxu1 %v9088_v46  ;;  %v4015_v46 = vld [vmem:[#allocation8 + $0x1b8] sm:$0xff]  ;;  %v4370_v59 = vld [vmem:[#allocation8 + $0xcd0] sm:$0xff] }
 0x3c3   :  { %7505 = vmatpush2.bf16.msra.mxu0 %v9320_v51  ;;  %7459 = vmatprep.subr.bf16.mxu1 %v9209_v54  ;;  %v9168_v51 = vcombine.low %v4170_v63, %v4174_v40  ;;  %v9018_v54 = vcombine.low %v4019_v33, %v4023_v37  ;;  %v9011_v55 = vcombine.high %v4011_v45, %v4015_v46  ;;  %v3983_v63 = vld [vmem:[#allocation8 + $0xb8] sm:$0xff] }
 0x3c4   :  { %7506 = vmatprep.subr.bf16.mxu0 %v9313_v32  ;;  %v9161_v32 = vcombine.high %v4162_v44, %v4166_v52  ;;  %v9010_v4 = vcombine.low %v4011_v45, %v4015_v46  ;;  %v3971_v46 = vld [vmem:[#allocation8 + $0x58] sm:$0xff] }
 0x3c6   :  { %7460 = vmatpush2.bf16.msra.mxu1 %v9208_v1  ;;  %v4003_v1 = vld [vmem:[#allocation8 + $0x158] sm:$0xff] }
 0x3c7   :  { %7507 = vmatpush2.bf16.msra.mxu0 %v9312_v2  ;;  %7461 = vmatprep.subr.bf16.mxu1 %v9201_v3  ;;  %v4007_v2 = vld [vmem:[#allocation8 + $0x178] sm:$0xff]  ;;  %v9160_v3 = vcombine.low %v4162_v44, %v4166_v52  ;;  %v4378_v44 = vld [vmem:[#allocation8 + $0xd10] sm:$0xff] }
 0x3c8   :  { %7508 = vmatprep.subr.bf16.mxu0 %v9305_v50  ;;  %v9003_v7 = vcombine.high %v4003_v1, %v4007_v2  ;;  %v9002_v53 = vcombine.low %v4003_v1, %v4007_v2  ;;  %v4382_v52 = vld [vmem:[#allocation8 + $0xd30] sm:$0xff]  ;;  %v3967_v2 = vld [vmem:[#allocation8 + $0x38] sm:$0xff] }
 0x3c9   :  { %v4374_v1 = vld [vmem:[#allocation8 + $0xcf0] sm:$0xff] }
 0x3ca   :  { %7462 = vmatpush2.bf16.msra.mxu1 %v9200_v10  ;;  %v4406_v10 = vld [vmem:[#allocation8 + $0xdf0] sm:$0xff] }
 0x3cb   :  { %7509 = vmatpush2.bf16.msra.mxu0 %v9304_v14  ;;  %7463 = vmatprep.subr.bf16.mxu1 %v9193_v18  ;;  %v3995_v18 = vld [vmem:[#allocation8 + $0x118] sm:$0xff]  ;;  %v9401_v17 = vcombine.high %v4402_v8, %v4406_v10  ;;  %v9400_v15 = vcombine.low %v4402_v8, %v4406_v10  ;;  %v4362_v8 = vld [vmem:[#allocation8 + $0xc90] sm:$0xff] }
 0x3cc   :  { %7510 = vmatprep.subr.bf16.mxu0 %v9297_v24  ;;  %v3999_v24 = vld [vmem:[#allocation8 + $0x138] sm:$0xff]  ;;  %v4366_v10 = vld [vmem:[#allocation8 + $0xcb0] sm:$0xff] }
 0x3cd   :  { %v8994_v21 = vcombine.low %v3995_v18, %v3999_v24 }
 0x3ce   :  { %7464 = vmatpush2.bf16.msra.mxu1 %v9192_v28  ;;  %v4394_v28 = vld [vmem:[#allocation8 + $0xd90] sm:$0xff] }
 0x3cf   :  { %7511 = vmatpush2.bf16.msra.mxu0 %v9296_v19  ;;  %7465 = vmatprep.subr.bf16.mxu1 %v9185_v26  ;;  %v4398_v19 = vld [vmem:[#allocation8 + $0xdb0] sm:$0xff]  ;;  %v3987_v26 = vld [vmem:[#allocation8 + $0xd8] sm:$0xff] }
 0x3d0   :  { %7512 = vmatprep.subr.bf16.mxu0 %v9289_v38  ;;  %v3991_v38 = vld [vmem:[#allocation8 + $0xf8] sm:$0xff]  ;;  %v9393_v25 = vcombine.high %v4394_v28, %v4398_v19  ;;  %v9392_v33 = vcombine.low %v4394_v28, %v4398_v19 }
 0x3d1   :  { %v8987_v27 = vcombine.high %v3987_v26, %v3991_v38  ;;  %v4075_v28 = vld [vmem:[#allocation8 + $0x398] sm:$0xff] }
 0x3d2   :  { %7466 = vmatpush2.bf16.msra.mxu1 %v9184_v41  ;;  %v4386_v41 = vld [vmem:[#allocation8 + $0xd50] sm:$0xff]  ;;  %v4079_v19 = vld [vmem:[#allocation8 + $0x3b8] sm:$0xff] }
 0x3d3   :  { %7513 = vmatpush2.bf16.msra.mxu0 %v9288_v11  ;;  %7467 = vmatprep.subr.bf16.mxu1 %v9177_v29  ;;  %v4390_v11 = vld [vmem:[#allocation8 + $0xd70] sm:$0xff] }
 0x3d4   :  { %7514 = vmatprep.subr.bf16.mxu0 %v9281_v31  ;;  %v3979_v31 = vld [vmem:[#allocation8 + $0x98] sm:$0xff] }
 0x3d6   :  { %7468 = vmatpush2.bf16.msra.mxu1 %v9176_v36  ;;  %v8986_v36 = vcombine.low %v3987_v26, %v3991_v38  ;;  %v9360_v26 = vcombine.low %v4362_v8, %v4366_v10 }
 0x3d7   :  { %7515 = vmatpush2.bf16.msra.mxu0 %v9280_v57  ;;  %7469 = vmatprep.subr.bf16.mxu1 %v9169_v16  ;;  %v9385_v57 = vcombine.high %v4386_v41, %v4390_v11 }
 0x3d8   :  { %7566 = vmatprep.subr.bf16.mxu0 %v9019_v42  ;;  %v8979_v42 = vcombine.high %v3979_v31, %v3983_v63 }
 0x3d9   :  { %v10172_v60 = vpop.f32.mrf.mxu0 }
 0x3da   :  { %7470 = vmatpush2.bf16.msra.mxu1 %v9168_v51  ;;  %7517 = vmatmul.mubr.bf16.vlgmr.msra.gmra.mxu0 %v10116_v30  ;;  %v9384_v51 = vcombine.low %v4386_v41, %v4390_v11  ;;  %v4067_v41 = vld [vmem:[#allocation8 + $0x358] sm:$0xff] }
 0x3db   :  { %7567 = vmatpush1.bf16.msra.mxu0 %v9018_v54  ;;  %7598 = vmatprep.mubr.bf16.mxu0 %v10070_v48  ;;  %v10176_v50 = vpop.f32.mrf.mxu0  ;;  %v8995_v48 = vcombine.high %v3995_v18, %v3999_v24  ;;  %v4087_v18 = vld [vmem:[#allocation8 + $0x3f8] sm:$0xff]  ;;  %v9368_v24 = vcombine.low %v4370_v59, %v4374_v1 }
 0x3dc   :  { %7471 = vmatprep.subr.bf16.mxu1 %v9161_v32  ;;  %7568 = vmatprep.subr.bf16.mxu0 %v9011_v55  ;;  %v8978_v32 = vcombine.low %v3979_v31, %v3983_v63  ;;  %v9377_v55 = vcombine.high %v4378_v44, %v4382_v52  ;;  %v4071_v11 = vld [vmem:[#allocation8 + $0x378] sm:$0xff]  ;;  %v9074_v31 = vcombine.low %v4075_v28, %v4079_v19 }
 0x3dd   :  { %v7276_v14 = vpop.f32.mrf.mxu0 }
 0x3de   :  { %7472 = vmatpush2.bf16.msra.mxu1 %v9160_v3  ;;  %v9376_v3 = vcombine.low %v4378_v44, %v4382_v52  ;;  %v4083_v14 = vld [vmem:[#allocation8 + $0x3d8] sm:$0xff]  ;;  %v9066_v52 = vcombine.low %v4067_v41, %v4071_v11 }
 0x3df   :  { %7569 = vmatpush1.bf16.msra.mxu0 %v9010_v4  ;;  %v7277_v61 = vpop.f32.mrf.mxu0  ;;  %7473 = vmatprep.subr.bf16.mxu1 %v9153_v6  ;;  %v9369_v6 = vcombine.high %v4370_v59, %v4374_v1  ;;  %v9082_v38 = vcombine.low %v4083_v14, %v4087_v18 }
 0x3e0   :  { %7570 = vmatprep.subr.bf16.mxu0 %v9003_v7  ;;  %v9361_v61 = vcombine.high %v4362_v8, %v4366_v10 }
 0x3e2   :  { %7474 = vmatpush2.bf16.msra.mxu1 %v9152_v23 }
 0x3e3   :  { %7571 = vmatpush1.bf16.msra.mxu0 %v9002_v53  ;;  %7525 = vmatprep.subr.bf16.mxu1 %v9401_v17  ;;  %v9083_v53 = vcombine.high %v4083_v14, %v4087_v18  ;;  %v4354_v17 = vld [vmem:[#allocation8 + $0xc50] sm:$0xff] }
 0x3e4   :  { %7572 = vmatprep.subr.bf16.mxu0 %v8995_v48  ;;  %v4358_v48 = vld [vmem:[#allocation8 + $0xc70] sm:$0xff] }
 0x3e5   :  { %7476 = vmatmul.mubr.bf16.vlgmr.msra.gmra.mxu1 %v10093_v35  ;;  %v7231_v29 = vpop.f32.mrf.mxu1  ;;  %v4442_v14 = vld [vmem:[#allocation8 + $0xf10] sm:$0xff] }
 0x3e6   :  { %v10180_v40 = vadd.f32 %v7231_v29, %v10163_v22  ;;  %7526 = vmatpush1.bf16.msra.mxu1 %v9400_v15  ;;  %7557 = vmatprep.mubr.bf16.mxu1 %v10140_v47  ;;  %v3975_v22 = vld [vmem:[#allocation8 + $0x78] sm:$0xff]  ;;  %v9353_v15 = vcombine.high %v4354_v17, %v4358_v48  ;;  %v9352_v29 = vcombine.low %v4354_v17, %v4358_v48  ;;  %v4446_v18 = vld [vmem:[#allocation8 + $0xf30] sm:$0xff] }
 0x3e7   :  { %7573 = vmatpush1.bf16.msra.mxu0 %v8994_v21  ;;  %v7233_v37 = vpop.f32.mrf.mxu1  ;;  %7527 = vmatprep.subr.bf16.mxu1 %v9393_v25  ;;  %v8971_v56 = vcombine.high %v3971_v46, %v3975_v22  ;;  %v8970_v4 = vcombine.low %v3971_v46, %v3975_v22  ;;  %v9075_v21 = vcombine.high %v4075_v28, %v4079_v19  ;;  %v4346_v25 = vld [vmem:[#allocation8 + $0xc10] sm:$0xff] }
 0x3e8   :  { %v10184_v16 = vadd.f32 %v7233_v37, %v10168_v20  ;;  %7574 = vmatprep.subr.bf16.mxu0 %v8987_v27  ;;  %v3963_v20 = vld [vmem:[#allocation8 + $0x18] sm:$0xff]  ;;  %v4350_v27 = vld [vmem:[#allocation8 + $0xc30] sm:$0xff]  ;;  %v9441_v17 = vcombine.high %v4442_v14, %v4446_v18 }
 0x3e9   :  { %v7235_v45 = vpop.f32.mrf.mxu1  ;;  %v8963_v7 = vcombine.high %v3963_v20, %v3967_v2  ;;  %v8962_v23 = vcombine.low %v3963_v20, %v3967_v2  ;;  %v9345_v63 = vcombine.high %v4346_v25, %v4350_v27  ;;  %v4466_v37 = vld [vmem:[#allocation8 + $0xfd0] sm:$0xff]  ;;  %v9344_v44 = vcombine.low %v4346_v25, %v4350_v27 }
 0x3ea   :  { %7528 = vmatpush1.bf16.msra.mxu1 %v9392_v33  ;;  %v9067_v33 = vcombine.high %v4067_v41, %v4071_v11  ;;  %v4458_v22 = vld [vmem:[#allocation8 + $0xf90] sm:$0xff] }
 0x3eb   :  { %7575 = vmatpush1.bf16.msra.mxu0 %v8986_v36  ;;  %v7236_v54 = vpop.f32.mrf.mxu1  ;;  %7529 = vmatprep.subr.bf16.mxu1 %v9385_v57  ;;  %v4470_v36 = vld [vmem:[#allocation8 + $0xff0] sm:$0xff]  ;;  %v4059_v57 = vld [vmem:[#allocation8 + $0x318] sm:$0xff] }
 0x3ec   :  { %7576 = vmatprep.subr.bf16.mxu0 %v8979_v42  ;;  %v4063_v42 = vld [vmem:[#allocation8 + $0x338] sm:$0xff]  ;;  %v9465_v45 = vcombine.high %v4466_v37, %v4470_v36  ;;  %v4450_v20 = vld [vmem:[#allocation8 + $0xf50] sm:$0xff] }
 0x3ed   :  { %v9059_v46 = vcombine.high %v4059_v57, %v4063_v42  ;;  %v4051_v54 = vld [vmem:[#allocation8 + $0x2d8] sm:$0xff]  ;;  %v4454_v2 = vld [vmem:[#allocation8 + $0xf70] sm:$0xff] }
 0x3ee   :  { %7530 = vmatpush1.bf16.msra.mxu1 %v9384_v51  ;;  %v4462_v51 = vld [vmem:[#allocation8 + $0xfb0] sm:$0xff]  ;;  %v9449_v8 = vcombine.high %v4450_v20, %v4454_v2 }
 0x3ef   :  { %7577 = vmatpush1.bf16.msra.mxu0 %v8978_v32  ;;  %7531 = vmatprep.subr.bf16.mxu1 %v9377_v55  ;;  %v4055_v32 = vld [vmem:[#allocation8 + $0x2f8] sm:$0xff]  ;;  %v9464_v55 = vcombine.low %v4466_v37, %v4470_v36  ;;  %v9457_v59 = vcombine.high %v4458_v22, %v4462_v51  ;;  %v4434_v28 = vld [vmem:[#allocation8 + $0xed0] sm:$0xff] }
 0x3f0   :  { %7578 = vmatprep.subr.bf16.mxu0 %v8971_v56  ;;  %v9058_v56 = vcombine.low %v4059_v57, %v4063_v42  ;;  %v9051_v1 = vcombine.high %v4051_v54, %v4055_v32  ;;  %v4438_v19 = vld [vmem:[#allocation8 + $0xef0] sm:$0xff] }
 0x3f1   :  { %v9433_v25 = vcombine.high %v4434_v28, %v4438_v19  ;;  %v4426_v41 = vld [vmem:[#allocation8 + $0xe90] sm:$0xff] }
 0x3f2   :  { %7532 = vmatpush1.bf16.msra.mxu1 %v9376_v3  ;;  %v4043_v3 = vld [vmem:[#allocation8 + $0x298] sm:$0xff]  ;;  %v4430_v11 = vld [vmem:[#allocation8 + $0xeb0] sm:$0xff] }
 0x3f3   :  { %7579 = vmatpush1.bf16.msra.mxu0 %v8970_v4  ;;  %7533 = vmatprep.subr.bf16.mxu1 %v9369_v6  ;;  %v4047_v4 = vld [vmem:[#allocation8 + $0x2b8] sm:$0xff]  ;;  %v9456_v6 = vcombine.low %v4458_v22, %v4462_v51  ;;  %v9425_v37 = vcombine.high %v4426_v41, %v4430_v11  ;;  %v4418_v57 = vld [vmem:[#allocation8 + $0xe50] sm:$0xff] }
 0x3f4   :  { %7580 = vmatprep.subr.bf16.mxu0 %v8963_v7  ;;  %v9050_v7 = vcombine.low %v4051_v54, %v4055_v32  ;;  %v9043_v10 = vcombine.high %v4043_v3, %v4047_v4  ;;  %v4422_v42 = vld [vmem:[#allocation8 + $0xe70] sm:$0xff] }
 0x3f5   :  { %v9417_v22 = vcombine.high %v4418_v57, %v4422_v42  ;;  %v4410_v54 = vld [vmem:[#allocation8 + $0xe10] sm:$0xff] }
 0x3f6   :  { %7534 = vmatpush1.bf16.msra.mxu1 %v9368_v24  ;;  %v4035_v24 = vld [vmem:[#allocation8 + $0x258] sm:$0xff]  ;;  %v4414_v32 = vld [vmem:[#allocation8 + $0xe30] sm:$0xff] }
 0x3f7   :  { %7581 = vmatpush1.bf16.msra.mxu0 %v8962_v23  ;;  %7535 = vmatprep.subr.bf16.mxu1 %v9361_v61  ;;  %v4039_v23 = vld [vmem:[#allocation8 + $0x278] sm:$0xff]  ;;  %v9448_v61 = vcombine.low %v4450_v20, %v4454_v2  ;;  %v9409_v2 = vcombine.high %v4410_v54, %v4414_v32 }
 0x3f8   :  { %7582 = vmatprep.subr.bf16.mxu0 %v9083_v53  ;;  %v9042_v53 = vcombine.low %v4043_v3, %v4047_v4  ;;  %v9035_v48 = vcombine.high %v4035_v24, %v4039_v23 }
 0x3fa   :  { %7536 = vmatpush1.bf16.msra.mxu1 %v9360_v26  ;;  %v4027_v26 = vld [vmem:[#allocation8 + $0x218] sm:$0xff] }
 0x3fb   :  { %7583 = vmatpush2.bf16.msra.mxu0 %v9082_v38  ;;  %7537 = vmatprep.subr.bf16.mxu1 %v9353_v15  ;;  %v4031_v38 = vld [vmem:[#allocation8 + $0x238] sm:$0xff]  ;;  %v9440_v15 = vcombine.low %v4442_v14, %v4446_v18  ;;  %v9408_v18 = vcombine.low %v4410_v54, %v4414_v32 }
 0x3fc   :  { %7584 = vmatprep.subr.bf16.mxu0 %v9075_v21  ;;  %v9034_v21 = vcombine.low %v4035_v24, %v4039_v23  ;;  %v9027_v27 = vcombine.high %v4027_v26, %v4031_v38  ;;  %v10190_v23 = vld [vmem:[#allocation10] sm:$0xff] }
 0x3fe   :  { %7538 = vmatpush1.bf16.msra.mxu1 %v9352_v29  ;;  %v4275_v29 = vld [vmem:[#allocation8 + $0x9d8] sm:$0xff] }
 0x3ff   :  { %7585 = vmatpush2.bf16.msra.mxu0 %v9074_v31  ;;  %7539 = vmatprep.subr.bf16.mxu1 %v9345_v63  ;;  %v4279_v31 = vld [vmem:[#allocation8 + $0x9f8] sm:$0xff]  ;;  %v9432_v63 = vcombine.low %v4434_v28, %v4438_v19 }
 0x400   :  { %7586 = vmatprep.subr.bf16.mxu0 %v9067_v33  ;;  %v9026_v33 = vcombine.low %v4027_v26, %v4031_v38  ;;  %v9275_v36 = vcombine.high %v4275_v29, %v4279_v31  ;;  %v4243_v28 = vld [vmem:[#allocation8 + $0x8d8] sm:$0xff]  ;;  %v4489_v26 = vrot.slane %v10190_v23, %v644_v0 }
 0x401   :  { %v4247_v19 = vld [vmem:[#allocation8 + $0x8f8] sm:$0xff] }
 0x402   :  { %7540 = vmatpush1.bf16.msra.mxu1 %v9344_v44  ;;  %v4267_v44 = vld [vmem:[#allocation8 + $0x998] sm:$0xff] }
 0x403   :  { %7587 = vmatpush2.bf16.msra.mxu0 %v9066_v52  ;;  %7541 = vmatprep.subr.bf16.mxu1 %v9465_v45  ;;  %v4271_v52 = vld [vmem:[#allocation8 + $0x9b8] sm:$0xff]  ;;  %v9424_v45 = vcombine.low %v4426_v41, %v4430_v11 }
 0x404   :  { %7588 = vmatprep.subr.bf16.mxu0 %v9059_v46  ;;  %v9274_v46 = vcombine.low %v4275_v29, %v4279_v31  ;;  %v9267_v51 = vcombine.high %v4267_v44, %v4271_v52  ;;  %v9266_v20 = vcombine.low %v4267_v44, %v4271_v52  ;;  %v4135_v41 = vld [vmem:[#allocation8 + $0x578] sm:$0xff] }
 0x405   :  { %v4235_v29 = vld [vmem:[#allocation8 + $0x898] sm:$0xff] }
 0x406   :  { %7542 = vmatpush2.bf16.msra.mxu1 %v9464_v55  ;;  %v4259_v55 = vld [vmem:[#allocation8 + $0x958] sm:$0xff] }
 0x407   :  { %7589 = vmatpush2.bf16.msra.mxu0 %v9058_v56  ;;  %7543 = vmatprep.subr.bf16.mxu1 %v9457_v59  ;;  %v4263_v56 = vld [vmem:[#allocation8 + $0x978] sm:$0xff] }
 0x408   :  { %7590 = vmatprep.subr.bf16.mxu0 %v9051_v1  ;;  %v9416_v1 = vcombine.low %v4418_v57, %v4422_v42  ;;  %v9259_v4 = vcombine.high %v4259_v55, %v4263_v56  ;;  %v4239_v31 = vld [vmem:[#allocation8 + $0x8b8] sm:$0xff] }
 0x409   :  { %v9235_v42 = vcombine.high %v4235_v29, %v4239_v31  ;;  %v4123_v44 = vld [vmem:[#allocation8 + $0x518] sm:$0xff]  ;;  %v9234_v32 = vcombine.low %v4235_v29, %v4239_v31 }
 0x40a   :  { %7544 = vmatpush2.bf16.msra.mxu1 %v9456_v6  ;;  %v4147_v6 = vld [vmem:[#allocation8 + $0x5d8] sm:$0xff] }
 0x40b   :  { %7591 = vmatpush2.bf16.msra.mxu0 %v9050_v7  ;;  %7545 = vmatprep.subr.bf16.mxu1 %v9449_v8  ;;  %v4151_v7 = vld [vmem:[#allocation8 + $0x5f8] sm:$0xff] }
 0x40c   :  { %7592 = vmatprep.subr.bf16.mxu0 %v9043_v10  ;;  %v4251_v8 = vld [vmem:[#allocation8 + $0x918] sm:$0xff]  ;;  %v9147_v24 = vcombine.high %v4147_v6, %v4151_v7  ;;  %v9146_v38 = vcombine.low %v4147_v6, %v4151_v7 }
 0x40d   :  { %v4255_v10 = vld [vmem:[#allocation8 + $0x938] sm:$0xff] }
 0x40e   :  { %7546 = vmatpush2.bf16.msra.mxu1 %v9448_v61  ;;  %v4127_v52 = vld [vmem:[#allocation8 + $0x538] sm:$0xff] }
 0x40f   :  { %7593 = vmatpush2.bf16.msra.mxu0 %v9042_v53  ;;  %7547 = vmatprep.subr.bf16.mxu1 %v9441_v17  ;;  %v9251_v53 = vcombine.high %v4251_v8, %v4255_v10  ;;  %v4139_v17 = vld [vmem:[#allocation8 + $0x598] sm:$0xff] }
 0x410   :  { %7594 = vmatprep.subr.bf16.mxu0 %v9035_v48  ;;  %v4143_v48 = vld [vmem:[#allocation8 + $0x5b8] sm:$0xff] }
 0x412   :  { %7548 = vmatpush2.bf16.msra.mxu1 %v9440_v15  ;;  %v9250_v15 = vcombine.low %v4251_v8, %v4255_v10  ;;  %v4107_v8 = vld [vmem:[#allocation8 + $0x498] sm:$0xff] }
 0x413   :  { %7595 = vmatpush2.bf16.msra.mxu0 %v9034_v21  ;;  %7549 = vmatprep.subr.bf16.mxu1 %v9433_v25  ;;  %v9139_v21 = vcombine.high %v4139_v17, %v4143_v48  ;;  %v4111_v10 = vld [vmem:[#allocation8 + $0x4b8] sm:$0xff] }
 0x414   :  { %7596 = vmatprep.subr.bf16.mxu0 %v9027_v27  ;;  %v4131_v27 = vld [vmem:[#allocation8 + $0x558] sm:$0xff] }
 0x416   :  { %7550 = vmatpush2.bf16.msra.mxu1 %v9432_v63  ;;  %v7275_v63 = vadd.f32 %v10176_v50, %v4489_v26  ;;  %v4227_v50 = vld [vmem:[#allocation8 + $0x858] sm:$0xff] }
 0x417   :  { %7597 = vmatpush2.bf16.msra.mxu0 %v9026_v33  ;;  %7551 = vmatprep.subr.bf16.mxu1 %v9425_v37  ;;  %v9138_v33 = vcombine.low %v4139_v17, %v4143_v48  ;;  %v4103_v17 = vld [vmem:[#allocation8 + $0x478] sm:$0xff] }
 0x418   :  { %7648 = vmatprep.subr.bf16.mxu0 %v9275_v36  ;;  %v9131_v36 = vcombine.high %v4131_v27, %v4135_v41  ;;  %v4331_v48 = vld [vmem:[#allocation8 + $0xb98] sm:$0xff] }
 0x41a   :  { %v10186_v59 = vpop.f32.mrf.mxu0  ;;  %7552 = vmatpush2.bf16.msra.mxu1 %v9424_v45  ;;  %7599 = vmatmul.mubr.bf16.vlgmr.msra.gmra.mxu0 %v10091_v39  ;;  %v9258_v39 = vcombine.low %v4259_v55, %v4263_v56  ;;  %v9123_v55 = vcombine.high %v4123_v44, %v4127_v52 }
 0x41b   :  { %7649 = vmatpush1.bf16.msra.mxu0 %v9274_v46  ;;  %7680 = vmatprep.mubr.bf16.mxu0 %v10102_v12  ;;  %v4485_v12 = vrot.slane %v10190_v23, %v640_v58  ;;  %v9243_v58 = vcombine.high %v4243_v28, %v4247_v19 }
 0x41c   :  { %v7356_v3 = vpop.f32.mrf.mxu0  ;;  %7553 = vmatprep.subr.bf16.mxu1 %v9417_v22  ;;  %7650 = vmatprep.subr.bf16.mxu0 %v9267_v51  ;;  %v4231_v22 = vld [vmem:[#allocation8 + $0x878] sm:$0xff]  ;;  %v9130_v51 = vcombine.low %v4131_v27, %v4135_v41 }
 0x41d   :  { %v7273_v25 = vadd.f32 %v10172_v60, %v4485_v12  ;;  %v9242_v60 = vcombine.low %v4243_v28, %v4247_v19  ;;  %v9227_v56 = vcombine.high %v4227_v50, %v4231_v22  ;;  %v9226_v6 = vcombine.low %v4227_v50, %v4231_v22  ;;  %v4335_v28 = vld [vmem:[#allocation8 + $0xbb8] sm:$0xff] }
 0x41e   :  { %v7358_v14 = vpop.f32.mrf.mxu0  ;;  %7554 = vmatpush2.bf16.msra.mxu1 %v9416_v1  ;;  %v4115_v1 = vld [vmem:[#allocation8 + $0x4d8] sm:$0xff]  ;;  %v9107_v12 = vcombine.high %v4107_v8, %v4111_v10  ;;  %v9106_v19 = vcombine.low %v4107_v8, %v4111_v10 }
 0x41f   :  { %7651 = vmatpush1.bf16.msra.mxu0 %v9266_v20  ;;  %7555 = vmatprep.subr.bf16.mxu1 %v9409_v2  ;;  %v4119_v20 = vld [vmem:[#allocation8 + $0x4f8] sm:$0xff] }
 0x420   :  { %v7359_v61 = vpop.f32.mrf.mxu0  ;;  %7652 = vmatprep.subr.bf16.mxu0 %v9259_v4  ;;  %v4219_v2 = vld [vmem:[#allocation8 + $0x818] sm:$0xff]  ;;  %v9115_v7 = vcombine.high %v4115_v1, %v4119_v20 }
 0x421   :  { %v4223_v4 = vld [vmem:[#allocation8 + $0x838] sm:$0xff] }
 0x422   :  { %7556 = vmatpush2.bf16.msra.mxu1 %v9408_v18  ;;  %v4339_v14 = vld [vmem:[#allocation8 + $0xbd8] sm:$0xff] }
 0x423   :  { %7653 = vmatpush1.bf16.msra.mxu0 %v9258_v39  ;;  %7607 = vmatprep.subr.bf16.mxu1 %v9147_v24  ;;  %v4343_v18 = vld [vmem:[#allocation8 + $0xbf8] sm:$0xff]  ;;  %v9114_v39 = vcombine.low %v4115_v1, %v4119_v20  ;;  %v9218_v24 = vcombine.low %v4219_v2, %v4223_v4 }
 0x424   :  { %7654 = vmatprep.subr.bf16.mxu0 %v9251_v53  ;;  %v9339_v61 = vcombine.high %v4339_v14, %v4343_v18  ;;  %v4099_v53 = vld [vmem:[#allocation8 + $0x458] sm:$0xff]  ;;  %v9338_v26 = vcombine.low %v4339_v14, %v4343_v18 }
 0x425   :  { %v7313_v11 = vpop.f32.mrf.mxu1  ;;  %7558 = vmatmul.mubr.bf16.vlgmr.msra.gmra.mxu1 %v10142_v49  ;;  %v4327_v27 = vld [vmem:[#allocation8 + $0xb78] sm:$0xff]  ;;  %v9098_v41 = vcombine.low %v4099_v53, %v4103_v17 }
 0x426   :  { %v7314_v0 = vadd.f32 %v7313_v11, %v7273_v25  ;;  %7608 = vmatpush1.bf16.msra.mxu1 %v9146_v38  ;;  %7639 = vmatprep.mubr.bf16.mxu1 %v10073_v13  ;;  %v9099_v38 = vcombine.high %v4099_v53, %v4103_v17  ;;  %v4095_v25 = vld [vmem:[#allocation8 + $0x438] sm:$0xff]  ;;  %v9330_v11 = vcombine.low %v4331_v48, %v4335_v28 }
 0x427   :  { %v7315_v37 = vpop.f32.mrf.mxu1  ;;  %7655 = vmatpush1.bf16.msra.mxu0 %v9250_v15  ;;  %7609 = vmatprep.subr.bf16.mxu1 %v9139_v21  ;;  %v9331_v15 = vcombine.high %v4331_v48, %v4335_v28  ;;  %v4091_v21 = vld [vmem:[#allocation8 + $0x418] sm:$0xff] }
 0x428   :  { %v7316_v57 = vadd.f32 %v7315_v37, %v7275_v63  ;;  %7656 = vmatprep.subr.bf16.mxu0 %v9243_v58  ;;  %v10203_v45 = vadd.f32 %v10186_v59, %v7314_v0  ;;  %v9122_v59 = vcombine.low %v4123_v44, %v4127_v52  ;;  %v4323_v58 = vld [vmem:[#allocation8 + $0xb58] sm:$0xff]  ;;  %v9091_v29 = vcombine.high %v4091_v21, %v4095_v25 }
 0x429   :  { %v7317_v46 = vpop.f32.mrf.mxu1  ;;  %v9323_v31 = vcombine.high %v4323_v58, %v4327_v27  ;;  %v4211_v63 = vld [vmem:[#allocation8 + $0x7d8] sm:$0xff] }
 0x42a   :  { %7610 = vmatpush1.bf16.msra.mxu1 %v9138_v33  ;;  %v10205_v13 = vadd.f32 %v7356_v3, %v7316_v57  ;;  %v9219_v3 = vcombine.high %v4219_v2, %v4223_v4  ;;  %v4215_v0 = vld [vmem:[#allocation8 + $0x7f8] sm:$0xff] }
 0x42b   :  { %v7318_v54 = vpop.f32.mrf.mxu1  ;;  %7657 = vmatpush1.bf16.msra.mxu0 %v9242_v60  ;;  %7611 = vmatprep.subr.bf16.mxu1 %v9131_v36  ;;  %v4315_v33 = vld [vmem:[#allocation8 + $0xb18] sm:$0xff]  ;;  %v9090_v60 = vcombine.low %v4091_v21, %v4095_v25  ;;  %v9322_v36 = vcombine.low %v4323_v58, %v4327_v27  ;;  %v9211_v57 = vcombine.high %v4211_v63, %v4215_v0  ;;  %v9635_v27 = vld [vmem:[#allocation11 + $0x78] sm:$0xff]  }
 0x42c   :  { %7658 = vmatprep.subr.bf16.mxu0 %v9235_v42  ;;  %v4319_v37 = vld [vmem:[#allocation8 + $0xb38] sm:$0xff]  ;;  %v9210_v22 = vcombine.low %v4211_v63, %v4215_v0  ;;  %v9636_v63 = vld [vmem:[#allocation11 + $0x38] sm:$0xff]  }
 0x42d   :  { %v9315_v42 = vcombine.high %v4315_v33, %v4319_v37  ;;  %v4203_v44 = vld [vmem:[#allocation8 + $0x798] sm:$0xff] }
 0x42e   :  { %7612 = vmatpush1.bf16.msra.mxu1 %v9130_v51  ;;  %v4207_v52 = vld [vmem:[#allocation8 + $0x7b8] sm:$0xff]  ;;  %v9314_v51 = vcombine.low %v4315_v33, %v4319_v37 }
 0x42f   :  { %7659 = vmatpush1.bf16.msra.mxu0 %v9234_v32  ;;  %7613 = vmatprep.subr.bf16.mxu1 %v9123_v55  ;;  %v4307_v46 = vld [vmem:[#allocation8 + $0xad8] sm:$0xff]  ;;  %v9203_v54 = vcombine.high %v4203_v44, %v4207_v52  ;;  %v9202_v2 = vcombine.low %v4203_v44, %v4207_v52 }
 0x430   :  { %7660 = vmatprep.subr.bf16.mxu0 %v9227_v56  ;;  %v4311_v50 = vld [vmem:[#allocation8 + $0xaf8] sm:$0xff] }
 0x431   :  { %v9307_v32 = vcombine.high %v4307_v46, %v4311_v50  ;;  %v4195_v55 = vld [vmem:[#allocation8 + $0x758] sm:$0xff]  ;;  %v9306_v4 = vcombine.low %v4307_v46, %v4311_v50  ;;  %v9639_v46 = vld [vmem:[#allocation11 + $0x68] sm:$0xff]  }
 0x432   :  { %7614 = vmatpush1.bf16.msra.mxu1 %v9122_v59  ;;  %v4199_v56 = vld [vmem:[#allocation8 + $0x778] sm:$0xff] }
 0x433   :  { %7661 = vmatpush1.bf16.msra.mxu0 %v9226_v6  ;;  %7615 = vmatprep.subr.bf16.mxu1 %v9115_v7  ;;  %v4299_v1 = vld [vmem:[#allocation8 + $0xa98] sm:$0xff]  ;;  %v9195_v59 = vcombine.high %v4195_v55, %v4199_v56  ;;  %v9194_v14 = vcombine.low %v4195_v55, %v4199_v56  ;;  %v9641_v56 = vld [vmem:[#allocation11 + $0x60] sm:$0xff]  }
 0x434   :  { %7662 = vmatprep.subr.bf16.mxu0 %v9219_v3  ;;  %v4303_v20 = vld [vmem:[#allocation8 + $0xab8] sm:$0xff] }
 0x435   :  { %v9299_v6 = vcombine.high %v4299_v1, %v4303_v20  ;;  %v4187_v7 = vld [vmem:[#allocation8 + $0x718] sm:$0xff]  ;;  %v9298_v18 = vcombine.low %v4299_v1, %v4303_v20 }
 0x436   :  { %7616 = vmatpush1.bf16.msra.mxu1 %v9114_v39  ;;  %v4191_v3 = vld [vmem:[#allocation8 + $0x738] sm:$0xff] }
 0x437   :  { %7663 = vmatpush1.bf16.msra.mxu0 %v9218_v24  ;;  %7617 = vmatprep.subr.bf16.mxu1 %v9107_v12  ;;  %v4291_v8 = vld [vmem:[#allocation8 + $0xa58] sm:$0xff]  ;;  %v9187_v39 = vcombine.high %v4187_v7, %v4191_v3  ;;  %v9186_v48 = vcombine.low %v4187_v7, %v4191_v3 }
 0x438   :  { %7664 = vmatprep.subr.bf16.mxu0 %v9339_v61  ;;  %v4295_v10 = vld [vmem:[#allocation8 + $0xa78] sm:$0xff] }
 0x439   :  { %v9291_v24 = vcombine.high %v4291_v8, %v4295_v10  ;;  %v4179_v12 = vld [vmem:[#allocation8 + $0x6d8] sm:$0xff]  ;;  %v9290_v28 = vcombine.low %v4291_v8, %v4295_v10 }
 0x43a   :  { %7618 = vmatpush1.bf16.msra.mxu1 %v9106_v19  ;;  %v4183_v61 = vld [vmem:[#allocation8 + $0x6f8] sm:$0xff] }
 0x43b   :  { %7665 = vmatpush2.bf16.msra.mxu0 %v9338_v26  ;;  %7619 = vmatprep.subr.bf16.mxu1 %v9099_v38  ;;  %v4283_v53 = vld [vmem:[#allocation8 + $0xa18] sm:$0xff]  ;;  %v9179_v19 = vcombine.high %v4179_v12, %v4183_v61  ;;  %v9178_v21 = vcombine.low %v4179_v12, %v4183_v61 }
 0x43c   :  { %7666 = vmatprep.subr.bf16.mxu0 %v9331_v15  ;;  %v4287_v17 = vld [vmem:[#allocation8 + $0xa38] sm:$0xff] }
 0x43d   :  { %v9283_v26 = vcombine.high %v4283_v53, %v4287_v17  ;;  %v4171_v38 = vld [vmem:[#allocation8 + $0x698] sm:$0xff]  ;;  %v9282_v25 = vcombine.low %v4283_v53, %v4287_v17 }
 0x43e   :  { %7620 = vmatpush1.bf16.msra.mxu1 %v9098_v41  ;;  %v4175_v15 = vld [vmem:[#allocation8 + $0x6b8] sm:$0xff]  ;;  %v7731_v41 = vmax.f32 %v10184_v16, 0.0 }
 0x43f   :  { %7667 = vmatpush2.bf16.msra.mxu0 %v9330_v11  ;;  %7621 = vmatprep.subr.bf16.mxu1 %v9091_v29  ;;  %v9171_v58 = vcombine.high %v4171_v38, %v4175_v15  ;;  %v4163_v11 = vld [vmem:[#allocation8 + $0x658] sm:$0xff] }
 0x440   :  { %7668 = vmatprep.subr.bf16.mxu0 %v9323_v31  ;;  %v4167_v29 = vld [vmem:[#allocation8 + $0x678] sm:$0xff]  ;;  %v9170_v31 = vcombine.low %v4171_v38, %v4175_v15  ;;  %v9648_v15 = vld [vmem:[#allocation11 + $0x8] sm:$0xff]  }
 0x441   :  { %v9163_v0 = vcombine.high %v4163_v11, %v4167_v29  ;;  %v9637_v33 = vld [vmem:[#allocation11 + $0x70] sm:$0xff]  }
 0x442   :  { %7622 = vmatpush1.bf16.msra.mxu1 %v9090_v60  ;;  %v4155_v37 = vld [vmem:[#allocation8 + $0x618] sm:$0xff] }
 0x443   :  { %7669 = vmatpush2.bf16.msra.mxu0 %v9322_v36  ;;  %7623 = vmatprep.subr.bf16.mxu1 %v9211_v57  ;;  %v4159_v60 = vld [vmem:[#allocation8 + $0x638] sm:$0xff]  ;;  %v7739_v36 = vpack.c.bf16 %v7731_v41, %v7731_v41 }
 0x444   :  { %7670 = vmatprep.subr.bf16.mxu0 %v9315_v42  ;;  %v9162_v42 = vcombine.low %v4163_v11, %v4167_v29  ;;  %v9638_v16 = vld [vmem:[#allocation11 + $0x30] sm:$0xff]   ;;  %v9155_v44 = vcombine.high %v4155_v37, %v4159_v60  ;;  %v9650_v11 = vld [vmem:[#allocation11] sm:$0xff]  }
 0x445   :  { %v4403_v50 = vld [vmem:[#allocation8 + $0xdd8] sm:$0xff] }
 0x446   :  { %7624 = vmatpush2.bf16.msra.mxu1 %v9210_v22  ;;  %v4407_v22 = vld [vmem:[#allocation8 + $0xdf8] sm:$0xff] }
 0x447   :  { %7671 = vmatpush2.bf16.msra.mxu0 %v9314_v51  ;;  %7625 = vmatprep.subr.bf16.mxu1 %v9203_v54  ;;  %v9154_v54 = vcombine.low %v4155_v37, %v4159_v60  ;;  %v9403_v55 = vcombine.high %v4403_v50, %v4407_v22  ;;  %v4395_v1 = vld [vmem:[#allocation8 + $0xd98] sm:$0xff] }
 0x448   :  { %7672 = vmatprep.subr.bf16.mxu0 %v9307_v32  ;;  %v9640_v32 = vld [vmem:[#allocation11 + $0x28] sm:$0xff]   ;;  %v4399_v20 = vld [vmem:[#allocation8 + $0xdb8] sm:$0xff] }
 0x449   :  { %v4387_v7 = vld [vmem:[#allocation8 + $0xd58] sm:$0xff] }
 0x44a   :  { %7626 = vmatpush2.bf16.msra.mxu1 %v9202_v2  ;;  %v9402_v2 = vcombine.low %v4403_v50, %v4407_v22  ;;  %v4391_v3 = vld [vmem:[#allocation8 + $0xd78] sm:$0xff] }
 0x44b   :  { %7673 = vmatpush2.bf16.msra.mxu0 %v9306_v4  ;;  %7627 = vmatprep.subr.bf16.mxu1 %v9195_v59  ;;  %v9642_v4 = vld [vmem:[#allocation11 + $0x20] sm:$0xff]   ;;  %v9395_v59 = vcombine.high %v4395_v1, %v4399_v20  ;;  %v9645_v12 = vld [vmem:[#allocation11 + $0x50] sm:$0xff]  }
 0x44c   :  { %7674 = vmatprep.subr.bf16.mxu0 %v9299_v6  ;;  %v9643_v6 = vld [vmem:[#allocation11 + $0x58] sm:$0xff]   ;;  %v4379_v61 = vld [vmem:[#allocation8 + $0xd18] sm:$0xff] }
 0x44d   :  { %v4383_v53 = vld [vmem:[#allocation8 + $0xd38] sm:$0xff] }
 0x44e   :  { %7628 = vmatpush2.bf16.msra.mxu1 %v9194_v14  ;;  %v9394_v14 = vcombine.low %v4395_v1, %v4399_v20  ;;  %v9378_v38 = vcombine.low %v4379_v61, %v4383_v53  ;;  %v9670_v22 = vld [vmem:[#allocation11 + $0x130] sm:$0xff]  }
 0x44f   :  { %7675 = vmatpush2.bf16.msra.mxu0 %v9298_v18  ;;  %7629 = vmatprep.subr.bf16.mxu1 %v9187_v39  ;;  %v9644_v39 = vld [vmem:[#allocation11 + $0x18] sm:$0xff]   ;;  %v4459_v1 = vld [vmem:[#allocation8 + $0xf98] sm:$0xff] }
 0x450   :  { %7676 = vmatprep.subr.bf16.mxu0 %v9291_v24  ;;  %v9387_v24 = vcombine.high %v4387_v7, %v4391_v3  ;;  %v4463_v20 = vld [vmem:[#allocation8 + $0xfb8] sm:$0xff] }
 0x452   :  { %7630 = vmatpush2.bf16.msra.mxu1 %v9186_v48 }
 0x453   :  { %7677 = vmatpush2.bf16.msra.mxu0 %v9290_v28  ;;  %7631 = vmatprep.subr.bf16.mxu1 %v9179_v19  ;;  %v9379_v28 = vcombine.high %v4379_v61, %v4383_v53  ;;  %v4371_v19 = vld [vmem:[#allocation8 + $0xcd8] sm:$0xff] }
 0x454   :  { %7678 = vmatprep.subr.bf16.mxu0 %v9283_v26  ;;  %v4375_v26 = vld [vmem:[#allocation8 + $0xcf8] sm:$0xff] }
 0x455   :  { %v9370_v41 = vcombine.low %v4371_v19, %v4375_v26  ;;  %v4447_v61 = vld [vmem:[#allocation8 + $0xf38] sm:$0xff] }
 0x456   :  { %7632 = vmatpush2.bf16.msra.mxu1 %v9178_v21  ;;  %v9371_v21 = vcombine.high %v4371_v19, %v4375_v26  ;;  %v9677_v53 = vld [vmem:[#allocation11 + $0x150] sm:$0xff]  }
 0x457   :  { %7679 = vmatpush2.bf16.msra.mxu0 %v9282_v25  ;;  %7633 = vmatprep.subr.bf16.mxu1 %v9171_v58  ;;  %v9649_v25 = vld [vmem:[#allocation11 + $0x40] sm:$0xff]   ;;  %v4363_v58 = vld [vmem:[#allocation8 + $0xc98] sm:$0xff] }
 0x458   :  { %9533 = vmatprep.subr.bf16.mxu0 %v9635_v27  ;;  %v4367_v27 = vld [vmem:[#allocation8 + $0xcb8] sm:$0xff] }
 0x459   :  { %v9363_v29 = vcombine.high %v4363_v58, %v4367_v27  ;;  %v9362_v37 = vcombine.low %v4363_v58, %v4367_v27 }
 0x45a   :  { %v10208_v57 = vpop.f32.mrf.mxu0  ;;  %7634 = vmatpush2.bf16.msra.mxu1 %v9170_v31  ;;  %7681 = vmatmul.mubr.bf16.vlgmr.msra.gmra.mxu0 %v10116_v30  ;;  %v7730_v31 = vmax.f32 %v10180_v40, 0.0 }
 0x45b   :  { %9534 = vmatpush3.bf16.msra.mxu0 %v9636_v63  ;;  %8297 = vmatprep.mubr.bf16.mxu0 %v7739_v36  ;;  %v4355_v63 = vld [vmem:[#allocation8 + $0xc58] sm:$0xff]  ;;  %v9668_v36 = vld [vmem:[#allocation11 + $0x138] sm:$0xff]  }
 0x45c   :  { %v10211_v52 = vpop.f32.mrf.mxu0  ;;  %7635 = vmatprep.subr.bf16.mxu1 %v9163_v0  ;;  %9535 = vmatprep.subr.bf16.mxu0 %v9637_v33  ;;  %v4359_v0 = vld [vmem:[#allocation8 + $0xc78] sm:$0xff]  ;;  %v9667_v33 = vld [vmem:[#allocation11 + $0x178] sm:$0xff]  }
 0x45d   :  { %v9355_v60 = vcombine.high %v4355_v63, %v4359_v0  ;;  %v9354_v50 = vcombine.low %v4355_v63, %v4359_v0  ;;  %v4411_v0 = vld [vmem:[#allocation8 + $0xe18] sm:$0xff] }
 0x45e   :  { %v7440_v51 = vpop.f32.mrf.mxu0  ;;  %7636 = vmatpush2.bf16.msra.mxu1 %v9162_v42  ;;  %v7738_v42 = vpack.c.bf16 %v7730_v31, %v7730_v31 }
 0x45f   :  { %9536 = vmatpush3.bf16.msra.mxu0 %v9638_v16  ;;  %7637 = vmatprep.subr.bf16.mxu1 %v9155_v44  ;;  %v4347_v16 = vld [vmem:[#allocation8 + $0xc18] sm:$0xff] }
 0x460   :  { %v7441_v30 = vpop.f32.mrf.mxu0  ;;  %9537 = vmatprep.subr.bf16.mxu0 %v9639_v46  ;;  %v4351_v44 = vld [vmem:[#allocation8 + $0xc38] sm:$0xff] }
 0x461   :  { %v9669_v46 = vld [vmem:[#allocation11 + $0x170] sm:$0xff]   ;;  %v9347_v40 = vcombine.high %v4347_v16, %v4351_v44 }
 0x462   :  { %7638 = vmatpush2.bf16.msra.mxu1 %v9154_v54  ;;  %v4467_v51 = vld [vmem:[#allocation8 + $0xfd8] sm:$0xff] }
 0x463   :  { %9538 = vmatpush3.bf16.msra.mxu0 %v9640_v32  ;;  %7689 = vmatprep.subr.bf16.mxu1 %v9403_v55  ;;  %v4471_v54 = vld [vmem:[#allocation8 + $0xff8] sm:$0xff]  ;;  %v9671_v32 = vld [vmem:[#allocation11 + $0x168] sm:$0xff]   ;;  %v9346_v55 = vcombine.low %v4347_v16, %v4351_v44 }
 0x464   :  { %9539 = vmatprep.subr.bf16.mxu0 %v9641_v56  ;;  %v9467_v30 = vcombine.high %v4467_v51, %v4471_v54  ;;  %v9672_v56 = vld [vmem:[#allocation11 + $0x128] sm:$0xff]  }
 0x465   :  { %v7395_v8 = vpop.f32.mrf.mxu1  ;;  %7640 = vmatmul.mubr.bf16.vlgmr.msra.gmra.mxu1 %v10093_v35  ;;  %v9386_v35 = vcombine.low %v4387_v7, %v4391_v3  ;;  %v4451_v7 = vld [vmem:[#allocation8 + $0xf58] sm:$0xff] }
 0x466   :  { %v10215_v10 = vadd.f32 %v7395_v8, %v10203_v45  ;;  %7690 = vmatpush1.bf16.msra.mxu1 %v9402_v2  ;;  %7721 = vmatprep.mubr.bf16.mxu1 %v10140_v47  ;;  %v9646_v45 = vld [vmem:[#allocation11 + $0x10] sm:$0xff]   ;;  %v9647_v47 = vld [vmem:[#allocation11 + $0x48] sm:$0xff]   ;;  %v9673_v2 = vld [vmem:[#allocation11 + $0x160] sm:$0xff]  }
 0x467   :  { %v10218_v18 = vpop.f32.mrf.mxu1  ;;  %9540 = vmatpush3.bf16.msra.mxu0 %v9642_v4  ;;  %7691 = vmatprep.subr.bf16.mxu1 %v9395_v59  ;;  %v9466_v4 = vcombine.low %v4467_v51, %v4471_v54  ;;  %v9459_v59 = vcombine.high %v4459_v1, %v4463_v20  ;;  %v4455_v3 = vld [vmem:[#allocation8 + $0xf78] sm:$0xff]  ;;  %v9675_v8 = vld [vmem:[#allocation11 + $0x158] sm:$0xff]   ;;  %v4497_v54 = vrot.slane %v10190_v23, %v652_v5 }
 0x468   :  { %9541 = vmatprep.subr.bf16.mxu0 %v9643_v6  ;;  %v9674_v6 = vld [vmem:[#allocation11 + $0x120] sm:$0xff]  }
 0x469   :  { %v7399_v17 = vpop.f32.mrf.mxu1 }
 0x46a   :  { %7692 = vmatpush1.bf16.msra.mxu1 %v9394_v14  ;;  %v9458_v14 = vcombine.low %v4459_v1, %v4463_v20  ;;  %v9450_v17 = vcombine.low %v4451_v7, %v4455_v3 }
 0x46b   :  { %v7400_v48 = vpop.f32.mrf.mxu1  ;;  %9542 = vmatpush3.bf16.msra.mxu0 %v9644_v39  ;;  %7693 = vmatprep.subr.bf16.mxu1 %v9387_v24  ;;  %v9451_v39 = vcombine.high %v4451_v7, %v4455_v3  ;;  %v9676_v24 = vld [vmem:[#allocation11 + $0x118] sm:$0xff]   ;;  %v9657_v3 = vld [vmem:[#allocation11 + $0xe0] sm:$0xff]  }
 0x46c   :  { %9543 = vmatprep.subr.bf16.mxu0 %v9645_v12  ;;  %v4443_v12 = vld [vmem:[#allocation8 + $0xf18] sm:$0xff] }
 0x46d   :  { %v9678_v48 = vld [vmem:[#allocation11 + $0x110] sm:$0xff]   ;;  %v9442_v19 = vcombine.low %v4443_v12, %v4447_v61 }
 0x46e   :  { %7694 = vmatpush1.bf16.msra.mxu1 %v9386_v35  ;;  %v9443_v35 = vcombine.high %v4443_v12, %v4447_v61  ;;  %v9664_v12 = vld [vmem:[#allocation11 + $0x88] sm:$0xff]   ;;  %v9665_v61 = vld [vmem:[#allocation11 + $0xc0] sm:$0xff]  }
 0x46f   :  { %9544 = vmatpush3.bf16.msra.mxu0 %v9646_v45  ;;  %7695 = vmatprep.subr.bf16.mxu1 %v9379_v28  ;;  %v4435_v45 = vld [vmem:[#allocation8 + $0xed8] sm:$0xff] }
 0x470   :  { %9545 = vmatprep.subr.bf16.mxu0 %v9647_v47  ;;  %v4439_v28 = vld [vmem:[#allocation8 + $0xef8] sm:$0xff]  ;;  %v9679_v47 = vld [vmem:[#allocation11 + $0x148] sm:$0xff]  }
 0x471   :  { %v9435_v26 = vcombine.high %v4435_v45, %v4439_v28  ;;  %v9434_v58 = vcombine.low %v4435_v45, %v4439_v28  ;;  %v9685_v28 = vld [vmem:[#allocation11 + $0x1f0] sm:$0xff]  }
 0x472   :  { %7696 = vmatpush1.bf16.msra.mxu1 %v9378_v38  ;;  %v9680_v38 = vld [vmem:[#allocation11 + $0x108] sm:$0xff]  }
 0x473   :  { %9546 = vmatpush3.bf16.msra.mxu0 %v9648_v15  ;;  %7697 = vmatprep.subr.bf16.mxu1 %v9371_v21  ;;  %v4427_v15 = vld [vmem:[#allocation8 + $0xe98] sm:$0xff] }
 0x474   :  { %9547 = vmatprep.subr.bf16.mxu0 %v9649_v25  ;;  %v4431_v21 = vld [vmem:[#allocation8 + $0xeb8] sm:$0xff]  ;;  %v9681_v25 = vld [vmem:[#allocation11 + $0x140] sm:$0xff]  }
 0x475   :  { %v9427_v27 = vcombine.high %v4427_v15, %v4431_v21  ;;  %v9426_v31 = vcombine.low %v4427_v15, %v4431_v21  ;;  %v9690_v15 = vld [vmem:[#allocation11 + $0x1a0] sm:$0xff]   ;;  %v9692_v21 = vld [vmem:[#allocation11 + $0x198] sm:$0xff]  }
 0x476   :  { %7698 = vmatpush1.bf16.msra.mxu1 %v9370_v41  ;;  %v9682_v41 = vld [vmem:[#allocation11 + $0x100] sm:$0xff]  }
 0x477   :  { %9548 = vmatpush3.bf16.msra.mxu0 %v9650_v11  ;;  %7699 = vmatprep.subr.bf16.mxu1 %v9363_v29  ;;  %v4419_v11 = vld [vmem:[#allocation8 + $0xe58] sm:$0xff] }
 0x478   :  { %9577 = vmatprep.subr.bf16.mxu0 %v9667_v33  ;;  %v4423_v29 = vld [vmem:[#allocation8 + $0xe78] sm:$0xff] }
 0x479   :  { %v9419_v63 = vcombine.high %v4419_v11, %v4423_v29  ;;  %v4415_v33 = vld [vmem:[#allocation8 + $0xe38] sm:$0xff] }
 0x47a   :  { %7700 = vmatpush1.bf16.msra.mxu1 %v9362_v37  ;;  %8298 = vmatmul.mubr.bf16.vlgmr.msra.gmra.mxu0 %v7738_v42  ;;  %v7398_v42 = vadd.f32 %v10218_v18, %v10205_v13  ;;  %v9653_v13 = vld [vmem:[#allocation11 + $0xf0] sm:$0xff]  }
 0x47b   :  { %7701 = vmatprep.subr.bf16.mxu1 %v9355_v60  ;;  %9578 = vmatpush3.bf16.msra.mxu0 %v9668_v36  ;;  %v9418_v60 = vcombine.low %v4419_v11, %v4423_v29  ;;  %v9411_v36 = vcombine.high %v4411_v0, %v4415_v33 }
 0x47c   :  { %9579 = vmatprep.subr.bf16.mxu0 %v9669_v46  ;;  %v9410_v46 = vcombine.low %v4411_v0, %v4415_v33  ;;  %v9695_v0 = vld [vmem:[#allocation11 + $0x1c8] sm:$0xff]  }
 0x47e   :  { %7702 = vmatpush1.bf16.msra.mxu1 %v9354_v50  ;;  %v9651_v50 = vld [vmem:[#allocation11 + $0xf8] sm:$0xff]  }
 0x47f   :  { %7703 = vmatprep.subr.bf16.mxu1 %v9347_v40  ;;  %9580 = vmatpush3.bf16.msra.mxu0 %v9670_v22  ;;  %v4493_v40 = vrot.slane %v10190_v23, %v648_v34  ;;  %v7733_v22 = vmax.f32 %v7398_v42, 0.0  ;;  %v9654_v34 = vld [vmem:[#allocation11 + $0xb0] sm:$0xff]  }
 0x480   :  { %9581 = vmatprep.subr.bf16.mxu0 %v9671_v32  ;;  %v9652_v32 = vld [vmem:[#allocation11 + $0xb8] sm:$0xff]  }
 0x481   :  { %v7437_v18 = vadd.f32 %v10208_v57, %v4493_v40 }
 0x482   :  { %7704 = vmatpush1.bf16.msra.mxu1 %v9346_v55  ;;  %v7741_v55 = vpack.c.bf16 %v7733_v22, %v7733_v22 }
 0x483   :  { %7705 = vmatprep.subr.bf16.mxu1 %v9467_v30  ;;  %9582 = vmatpush3.bf16.msra.mxu0 %v9672_v56  ;;  %v7439_v56 = vadd.f32 %v10211_v52, %v4497_v54  ;;  %v9659_v52 = vld [vmem:[#allocation11 + $0xd8] sm:$0xff]  }
 0x484   :  { %9583 = vmatprep.subr.bf16.mxu0 %v9673_v2  ;;  %v9655_v2 = vld [vmem:[#allocation11 + $0xe8] sm:$0xff]  }
 0x486   :  { %7706 = vmatpush2.bf16.msra.mxu1 %v9466_v4 }
 0x487   :  { %7707 = vmatprep.subr.bf16.mxu1 %v9459_v59  ;;  %9584 = vmatpush3.bf16.msra.mxu0 %v9674_v6  ;;  %v9656_v6 = vld [vmem:[#allocation11 + $0xa8] sm:$0xff]  }
 0x488   :  { %9585 = vmatprep.subr.bf16.mxu0 %v9675_v8  ;;  %v9660_v8 = vld [vmem:[#allocation11 + $0x98] sm:$0xff]  }
 0x48a   :  { %7708 = vmatpush2.bf16.msra.mxu1 %v9458_v14  ;;  %v9661_v14 = vld [vmem:[#allocation11 + $0xd0] sm:$0xff]  }
 0x48b   :  { %7709 = vmatprep.subr.bf16.mxu1 %v9451_v39  ;;  %9586 = vmatpush3.bf16.msra.mxu0 %v9676_v24  ;;  %v9662_v39 = vld [vmem:[#allocation11 + $0x90] sm:$0xff]   ;;  %v9663_v24 = vld [vmem:[#allocation11 + $0xc8] sm:$0xff]  }
 0x48c   :  { %9587 = vmatprep.subr.bf16.mxu0 %v9677_v53  ;;  %v9666_v53 = vld [vmem:[#allocation11 + $0x80] sm:$0xff]  }
 0x48e   :  { %7710 = vmatpush2.bf16.msra.mxu1 %v9450_v17  ;;  %v7732_v17 = vmax.f32 %v10215_v10, 0.0  ;;  %v9691_v10 = vld [vmem:[#allocation11 + $0x1d8] sm:$0xff]  }
 0x48f   :  { %7711 = vmatprep.subr.bf16.mxu1 %v9443_v35  ;;  %9588 = vmatpush3.bf16.msra.mxu0 %v9678_v48  ;;  %v9683_v35 = vld [vmem:[#allocation11 + $0x1f8] sm:$0xff]  }
 0x490   :  { %9589 = vmatprep.subr.bf16.mxu0 %v9679_v47  ;;  %v9684_v48 = vld [vmem:[#allocation11 + $0x1b8] sm:$0xff]   ;;  %v7740_v45 = vpack.c.bf16 %v7732_v17, %v7732_v17  ;;  %v9686_v47 = vld [vmem:[#allocation11 + $0x1b0] sm:$0xff]  }
 0x492   :  { %7712 = vmatpush2.bf16.msra.mxu1 %v9442_v19  ;;  %v9687_v19 = vld [vmem:[#allocation11 + $0x1e8] sm:$0xff]  }
 0x493   :  { %7713 = vmatprep.subr.bf16.mxu1 %v9435_v26  ;;  %9590 = vmatpush3.bf16.msra.mxu0 %v9680_v38  ;;  %v9688_v26 = vld [vmem:[#allocation11 + $0x1a8] sm:$0xff]   ;;  %v9689_v38 = vld [vmem:[#allocation11 + $0x1e0] sm:$0xff]  }
 0x494   :  { %9591 = vmatprep.subr.bf16.mxu0 %v9681_v25  ;;  %v9693_v25 = vld [vmem:[#allocation11 + $0x1d0] sm:$0xff]  }
 0x496   :  { %7714 = vmatpush2.bf16.msra.mxu1 %v9434_v58  ;;  %v9694_v58 = vld [vmem:[#allocation11 + $0x190] sm:$0xff]  }
 0x497   :  { %7715 = vmatprep.subr.bf16.mxu1 %v9427_v27  ;;  %9592 = vmatpush3.bf16.msra.mxu0 %v9682_v41 }
 0x49a   :  { %v7518_v37 = vpop.f32.mrf.mxu0  ;;  %7716 = vmatpush2.bf16.msra.mxu1 %v9426_v31 }
 0x49b   :  { %7717 = vmatprep.subr.bf16.mxu1 %v9419_v63 }
 0x49c   :  { %v7520_v16 = vpop.f32.mrf.mxu0 }
 0x49e   :  { %v7522_v44 = vpop.f32.mrf.mxu0  ;;  %7718 = vmatpush2.bf16.msra.mxu1 %v9418_v60 }
 0x49f   :  { %7719 = vmatprep.subr.bf16.mxu1 %v9411_v36  ;;  %v9697_v44 = vld [vmem:[#allocation11 + $0x1c0] sm:$0xff]  }
 0x4a0   :  { %v7523_v51 = vpop.f32.mrf.mxu0 }
 0x4a2   :  { %7720 = vmatpush2.bf16.msra.mxu1 %v9410_v46 }
 0x4a3   :  { %9555 = vmatprep.subr.bf16.mxu1 %v9651_v50  ;;  %v9698_v50 = vld [vmem:[#allocation11 + $0x180] sm:$0xff]  }
 0x4a5   :  { %v7477_v30 = vpop.f32.mrf.mxu1  ;;  %7722 = vmatmul.mubr.bf16.vlgmr.msra.gmra.mxu1 %v10142_v49  ;;  %v9658_v49 = vld [vmem:[#allocation11 + $0xa0] sm:$0xff]  }
 0x4a6   :  { %v7478_v1 = vadd.f32 %v7477_v30, %v7437_v18  ;;  %9556 = vmatpush3.bf16.msra.mxu1 %v9652_v32  ;;  %8337 = vmatprep.mubr.bf16.mxu1 %v7741_v55  ;;  %v4505_v55 = vrot.slane %v10190_v23, %v660_v62 }
 0x4a7   :  { %v7479_v20 = vpop.f32.mrf.mxu1  ;;  %9557 = vmatprep.subr.bf16.mxu1 %v9653_v13  ;;  %v4501_v13 = vrot.slane %v10190_v23, %v656_v9 }
 0x4a8   :  { %v7480_v5 = vadd.f32 %v7479_v20, %v7439_v56  ;;  %v7519_v4 = vadd.f32 %v7518_v37, %v7478_v1  ;;  %v9696_v37 = vld [vmem:[#allocation11 + $0x188] sm:$0xff]  }
 0x4a9   :  { %v7481_v59 = vpop.f32.mrf.mxu1 }
 0x4aa   :  { %9558 = vmatpush3.bf16.msra.mxu1 %v9654_v34  ;;  %v7521_v7 = vadd.f32 %v7520_v16, %v7480_v5 }
 0x4ab   :  { %v7482_v57 = vpop.f32.mrf.mxu1  ;;  %9559 = vmatprep.subr.bf16.mxu1 %v9655_v2 }
 0x4ae   :  { %9560 = vmatpush3.bf16.msra.mxu1 %v9656_v6 }
 0x4af   :  { %9561 = vmatprep.subr.bf16.mxu1 %v9657_v3 }
 0x4b2   :  { %9562 = vmatpush3.bf16.msra.mxu1 %v9658_v49 }
 0x4b3   :  { %9563 = vmatprep.subr.bf16.mxu1 %v9659_v52 }
 0x4b6   :  { %9564 = vmatpush3.bf16.msra.mxu1 %v9660_v8 }
 0x4b7   :  { %9565 = vmatprep.subr.bf16.mxu1 %v9661_v14 }
 0x4ba   :  { %9566 = vmatpush3.bf16.msra.mxu1 %v9662_v39 }
 0x4bb   :  { %9567 = vmatprep.subr.bf16.mxu1 %v9663_v24 }
 0x4be   :  { %9568 = vmatpush3.bf16.msra.mxu1 %v9664_v12 }
 0x4bf   :  { %9569 = vmatprep.subr.bf16.mxu1 %v9665_v61 }
 0x4c2   :  { %9570 = vmatpush3.bf16.msra.mxu1 %v9666_v53  ;;  %v9468_v53 = vld [vmem:[#allocation13] ss:$0 sm:$0xff] }
 0x4c3   :  { %9599 = vmatprep.subr.bf16.mxu1 %v9683_v35 }
 0x4c5   :  { %8338 = vmatmul.mubr.bf16.vlgmr.msra.gmra.mxu1 %v7740_v45 }
 0x4c6   :  { %9600 = vmatpush3.bf16.msra.mxu1 %v9684_v48 }
 0x4c7   :  { %9601 = vmatprep.subr.bf16.mxu1 %v9685_v28 }
 0x4ca   :  { %9602 = vmatpush3.bf16.msra.mxu1 %v9686_v47 }
 0x4cb   :  { %9603 = vmatprep.subr.bf16.mxu1 %v9687_v19 }
 0x4ce   :  { %9604 = vmatpush3.bf16.msra.mxu1 %v9688_v26 }
 0x4cf   :  { %9605 = vmatprep.subr.bf16.mxu1 %v9689_v38 }
 0x4d2   :  { %9606 = vmatpush3.bf16.msra.mxu1 %v9690_v15 }
 0x4d3   :  { %9607 = vmatprep.subr.bf16.mxu1 %v9691_v10 }
 0x4d6   :  { %9608 = vmatpush3.bf16.msra.mxu1 %v9692_v21 }
 0x4d7   :  { %9609 = vmatprep.subr.bf16.mxu1 %v9693_v25 }
 0x4da   :  { %v7600_v27 = vpop.f32.mrf.mxu0  ;;  %9610 = vmatpush3.bf16.msra.mxu1 %v9694_v58 }
 0x4db   :  { %9611 = vmatprep.subr.bf16.mxu1 %v9695_v0  ;;  %v7601_v30 = vadd.f32 %v7600_v27, %v4501_v13 }
 0x4dc   :  { %v7602_v41 = vpop.f32.mrf.mxu0 }
 0x4dd   :  { %v7603_v1 = vadd.f32 %v7602_v41, %v4505_v55 }
 0x4de   :  { %v7604_v11 = vpop.f32.mrf.mxu0  ;;  %9612 = vmatpush3.bf16.msra.mxu1 %v9696_v37 }
 0x4df   :  { %9613 = vmatprep.subr.bf16.mxu1 %v9697_v44 }
 0x4e0   :  { %v7605_v29 = vpop.f32.mrf.mxu0 }
 0x4e2   :  { %9614 = vmatpush3.bf16.msra.mxu1 %v9698_v50 }
 0x4e5   :  { %v7559_v31 = vpop.f32.mrf.mxu1 }
 0x4e6   :  { %v7560_v63 = vadd.f32 %v7559_v31, %v7519_v4 }
 0x4e7   :  { %v7561_v33 = vpop.f32.mrf.mxu1 }
 0x4e8   :  { %v7562_v60 = vadd.f32 %v7561_v33, %v7521_v7  ;;  %v7734_v36 = vmax.f32 %v7560_v63, 0.0 }
 0x4e9   :  { %v7563_v42 = vpop.f32.mrf.mxu1 }
 0x4ea   :  { %v7735_v16 = vmax.f32 %v7562_v60, 0.0  ;;  %v7742_v22 = vpack.c.bf16 %v7734_v36, %v7734_v36 }
 0x4eb   :  { %v7564_v46 = vpop.f32.mrf.mxu1 }
 0x4ec   :  { %v7743_v40 = vpack.c.bf16 %v7735_v16, %v7735_v16 }
 0x4ee   :  { %8377 = vmatprep.mubr.bf16.mxu0 %v7743_v40 }
 0x4ef   :  { %8378 = vmatmul.mubr.bf16.vlgmr.msra.gmra.mxu0 %v7742_v22 }
 0x51a   :  { %v7682_v51 = vpop.f32.mrf.mxu0 }
 0x51c   :  { %v7684_v54 = vpop.f32.mrf.mxu0 }
 0x51e   :  { %v7686_v32 = vpop.f32.mrf.mxu0 }
 0x520   :  { %v7687_v18 = vpop.f32.mrf.mxu0 }
 0x525   :  { %v7641_v56 = vpop.f32.mrf.mxu1 }
 0x526   :  { %v7642_v34 = vadd.f32 %v7641_v56, %v7601_v30 }
 0x527   :  { %v7643_v20 = vpop.f32.mrf.mxu1 }
 0x528   :  { %v7644_v2 = vadd.f32 %v7643_v20, %v7603_v1  ;;  %v7683_v5 = vadd.f32 %v7682_v51, %v7642_v34 }
 0x529   :  { %v7645_v4 = vpop.f32.mrf.mxu1 }
 0x52a   :  { %v7685_v59 = vadd.f32 %v7684_v54, %v7644_v2 }
 0x52b   :  { %v7646_v6 = vpop.f32.mrf.mxu1 }
 0x53a   :  { %v9549_v7 = vpop.f32.mrf.mxu0 }
 0x53c   :  { %v9550_v57 = vpop.f32.mrf.mxu0 }
 0x53d   :  { %v9551_v3 = vadd.f32 %v9550_v57, %v9549_v7 }
 0x53e   :  { %v9552_v49 = vpop.f32.mrf.mxu0 }
 0x53f   :  { %v8300_v48 = vadd.f32 %v9551_v3, %v9468_v53 }
 0x540   :  { %v9553_v9 = vpop.f32.mrf.mxu0 }
 0x565   :  { %v7723_v52 = vpop.f32.mrf.mxu1 }
 0x566   :  { %v7724_v8 = vadd.f32 %v7723_v52, %v7683_v5 }
 0x567   :  { %v7725_v43 = vpop.f32.mrf.mxu1 }
 0x568   :  { %v7726_v14 = vadd.f32 %v7725_v43, %v7685_v59  ;;  %v7736_v62 = vmax.f32 %v7724_v8, 0.0 }
 0x569   :  { %v7727_v23 = vpop.f32.mrf.mxu1 }
 0x56a   :  { %v7737_v39 = vmax.f32 %v7726_v14, 0.0  ;;  %v7744_v61 = vpack.c.bf16 %v7736_v62, %v7736_v62 }
 0x56b   :  { %v7728_v24 = vpop.f32.mrf.mxu1 }
 0x56c   :  { %v7745_v12 = vpack.c.bf16 %v7737_v39, %v7737_v39 }
 0x56e   :  { %8417 = vmatprep.mubr.bf16.mxu1 %v7745_v12 }
 0x56f   :  { %8418 = vmatmul.mubr.bf16.vlgmr.msra.gmra.mxu1 %v7744_v61 }
 0x585   :  { %v9571_v17 = vpop.f32.mrf.mxu1 }
 0x587   :  { %v9572_v35 = vpop.f32.mrf.mxu1 }
 0x588   :  { %v9573_v45 = vadd.f32 %v9572_v35, %v9571_v17 }
 0x589   :  { %v9574_v28 = vpop.f32.mrf.mxu1 }
 0x58a   :  { %v8340_v47 = vadd.f32 %v9573_v45, %v8300_v48 }
 0x58b   :  { %v9575_v19 = vpop.f32.mrf.mxu1 }
 0x5af   :  { %v9593_v26 = vpop.f32.mrf.mxu0 }
 0x5b1   :  { %v9594_v38 = vpop.f32.mrf.mxu0 }
 0x5b2   :  { %v9595_v15 = vadd.f32 %v9594_v38, %v9593_v26 }
 0x5b3   :  { %v9596_v10 = vpop.f32.mrf.mxu0 }
 0x5b4   :  { %v8380_v21 = vadd.f32 %v9595_v15, %v8340_v47 }
 0x5b5   :  { %v9597_v25 = vpop.f32.mrf.mxu0 }
 0x62f   :  { %v9615_v58 = vpop.f32.mrf.mxu1 }
 0x631   :  { %v9616_v27 = vpop.f32.mrf.mxu1 }
 0x632   :  { %v9617_v41 = vadd.f32 %v9616_v27, %v9615_v58 }
 0x633   :  { %v9618_v11 = vpop.f32.mrf.mxu1 }
 0x634   :  { %v8420_v29 = vadd.f32 %v9617_v41, %v8380_v21 }
 0x635   :  { %v9619_v31 = vpop.f32.mrf.mxu1 }
 0x636   :  { %8425 = vst [vmem:[#allocation14] sm:$0x3] %v8420_v29 }
 0x637   :  { %9853 = shalt.err (!%p9850_p11)
}
 0x638   :  { %8435 = dma.vmem_to_hbm [thread:$0]  %s8433_s6, 32, %s10249_s7, [#allocation4]  }
 0x639   :  { %9870 = dma.done.wait [#allocation4], 32  }
 0x63a   :  { %9871 = vsyncadd [#allocation4], 4294967264 }
 0x63b   :  { %8439 = vsyncpa [#allocation3], 1 }
 0x63c   :  { %8440 = vsyncpa [#allocation6], 1 }
 0x63d   :  { %8441 = vsyncpa [#allocation9], 1 }
 0x63e   :  { %8442 = vsyncpa [#allocation12], 1 }
 0x63f   :  { %8443 = vsyncpa [#allocation4], 1 }

</bundles_post_ra>
